<compile_context>
chip_gen: v6e
topology: v6e:2x2x1
jax: 0.10.0
libtpu: 0.0.40
codegen_flags: <defaults>
</compile_context>

<pallas_src>
import math

import jax
import jax.numpy as jnp
from jax.experimental import pallas as pl
from jax.experimental.pallas import tpu as pltpu

# ---- model dims (consistent with the module) ----
IN_DIM = 16
HIDDEN = 32            # hidden_size
SECOND = 1000          # self.second_size = 1000
SECOND_PAD = 1024      # padded to a multiple of 128 lanes
OUT_DIM = 4            # number of actions
ATOM = 8               # atom_size
NA = OUT_DIM * ATOM    # 32
OUT_PAD = 128          # lane-dense padded output width
STD_INIT = 0.5

TILE_B = 128           # batch tile (MXU M-dim); weights stay resident across tiles
BATCH = 256            # demo batch (2 grid steps)


def densenet_kernel(x_ref, wf_ref, bf_ref, wh_ref, bh_ref, wo_ref, bo_ref,
                    seg_ref, sup_ref, q_ref):
    """One batch tile of DenseNet.forward.

    x   : (TILE_B, IN_DIM)            bf16
    wf  : (IN_DIM, HIDDEN)            bf16   feature layer
    bf  : (1, HIDDEN)                 f32
    wh  : (HIDDEN, 2*SECOND_PAD)      bf16   fused [adv_hidden | val_hidden]
    bh  : (1, 2*SECOND_PAD)           f32
    wo  : (2*SECOND_PAD, NA)          bf16   fused mean-centered adv + replicated value
    bo  : (1, NA)                     f32
    seg : (NA, NA)                    bf16   block-diagonal ones (segment-sum matmul)
    sup : (NA, OUT_PAD)               f32    block-diagonal support, lane-padded
    q   : (TILE_B, OUT_PAD)           f32    columns [OUT_DIM:) are zero
    """
    # feature_layer: Linear + ReLU
    feat = jnp.dot(x_ref[...], wf_ref[...],
                   preferred_element_type=jnp.float32) + bf_ref[...]
    feat = jnp.maximum(feat, 0.0).astype(jnp.bfloat16)                  # (Tb, HIDDEN)

    # fused advantage/value hidden NoisyLinear + ReLU (one wide matmul)
    hid = jnp.dot(feat, wh_ref[...],
                  preferred_element_type=jnp.float32) + bh_ref[...]
    hid = jnp.maximum(hid, 0.0).astype(jnp.bfloat16)                    # (Tb, 2*SECOND_PAD)

    # fused output matmul directly yields q_atoms = value + adv - adv.mean(dim=1)
    q_atoms = jnp.dot(hid, wo_ref[...],
                      preferred_element_type=jnp.float32) + bo_ref[...]  # (Tb, NA)

    # vectorized per-action softmax over atoms:
    #   global row max is still a valid stabilizer for each 8-atom segment;
    #   segment sums are broadcast back via one block-diagonal-ones matmul.
    m = jnp.max(q_atoms, axis=-1, keepdims=True)                        # (Tb, 1)
    e = jnp.exp(q_atoms - m)                                            # (Tb, NA) f32
    seg_sum = jnp.dot(e.astype(jnp.bfloat16), seg_ref[...],
                      preferred_element_type=jnp.float32)               # (Tb, NA)
    dist = jnp.maximum(e * pl.reciprocal(seg_sum, approx=True), 0.001)  # clamp(min=0.001)

    # expected Q: one block-diagonal-support matmul, lane-dense (Tb, 128) store
    q_ref[...] = jnp.dot(dist, sup_ref[...], preferred_element_type=jnp.float32)


# ------------------ parameter setup (plain JAX glue) ------------------

def _scale_noise(key, size):
    x = jax.random.normal(key, (size,), dtype=jnp.float32)
    return jnp.sign(x) * jnp.sqrt(jnp.abs(x))


def _noisy_linear_effective(key, in_f, out_f, std_init=STD_INIT):
    """Effective (W, b) of a NoisyLinear: mu + sigma * factorized-gaussian eps."""
    k_wmu, k_bmu, k_ein, k_eout = jax.random.split(key, 4)
    mu_range = 1.0 / math.sqrt(in_f)
    weight_mu = jax.random.uniform(k_wmu, (out_f, in_f), jnp.float32, -mu_range, mu_range)
    weight_sigma = jnp.full((out_f, in_f), std_init / math.sqrt(in_f), jnp.float32)
    bias_mu = jax.random.uniform(k_bmu, (out_f,), jnp.float32, -mu_range, mu_range)
    bias_sigma = jnp.full((out_f,), std_init / math.sqrt(out_f), jnp.float32)
    eps_in = _scale_noise(k_ein, in_f)
    eps_out = _scale_noise(k_eout, out_f)
    W = weight_mu + weight_sigma * jnp.outer(eps_out, eps_in)
    b = bias_mu + bias_sigma * eps_out
    return W, b


def _plain_linear(key, in_f, out_f):
    """PyTorch-default-style uniform init for nn.Linear."""
    k_w, k_b = jax.random.split(key)
    bound = 1.0 / math.sqrt(in_f)
    W = jax.random.uniform(k_w, (out_f, in_f), jnp.float32, -bound, bound)
    b = jax.random.uniform(k_b, (out_f,), jnp.float32, -bound, bound)
    return W, b


def make_params(key):
    k_feat, k_ah, k_a, k_vh, k_v = jax.random.split(key, 5)
    Wf, bf = _plain_linear(k_feat, IN_DIM, HIDDEN)                 # (32,16), (32,)
    Wah, bah = _noisy_linear_effective(k_ah, HIDDEN, SECOND)       # (1000,32), (1000,)
    Wa, ba = _noisy_linear_effective(k_a, SECOND, NA)              # (32,1000), (32,)
    Wvh, bvh = _noisy_linear_effective(k_vh, HIDDEN, SECOND)       # (1000,32), (1000,)
    Wv, bv = _noisy_linear_effective(k_v, SECOND, ATOM)            # (8,1000), (8,)
    support = jnp.linspace(-10.0, 10.0, ATOM, dtype=jnp.float32)   # (8,)

    # --- fused hidden weight [adv_hidden | val_hidden], padded 1000 -> 1024 ---
    # (zero-padded columns 1000..1023 / 2024..2047 stay zero through ReLU because
    #  bh is zero there; keep that invariant.)
    wh = jnp.zeros((HIDDEN, 2 * SECOND_PAD), jnp.float32)
    wh = wh.at[:, :SECOND].set(Wah.T)
    wh = wh.at[:, SECOND_PAD:SECOND_PAD + SECOND].set(Wvh.T)
    bh = jnp.zeros((1, 2 * SECOND_PAD), jnp.float32)
    bh = bh.at[0, :SECOND].set(bah)
    bh = bh.at[0, SECOND_PAD:SECOND_PAD + SECOND].set(bvh)

    # --- dueling mean-centering matrix M = I - (1/OUT_DIM) * [same atom] ---
    idx = jnp.arange(NA)
    same_atom = ((idx[:, None] % ATOM) == (idx[None, :] % ATOM)).astype(jnp.float32)
    M = jnp.eye(NA, dtype=jnp.float32) - same_atom / OUT_DIM

    # --- fused output weight: centered advantage block + replicated value block ---
    wo = jnp.zeros((2 * SECOND_PAD, NA), jnp.float32)
    wo = wo.at[:SECOND, :].set(Wa.T @ M)                               # advantage rows
    wo = wo.at[SECOND_PAD:SECOND_PAD + SECOND, :].set(jnp.tile(Wv.T, (1, OUT_DIM)))
    bo = (ba @ M + jnp.tile(bv, OUT_DIM))[None, :]                     # (1, NA)

    # --- block-diagonal ones for the vectorized segment-sum (softmax denom) ---
    blk = ((idx[:, None] // ATOM) == (idx[None, :] // ATOM)).astype(jnp.float32)

    # --- block-diagonal support, lane-padded to 128 output columns ---
    sup_bd = jnp.zeros((NA, OUT_PAD), jnp.float32)
    for o in range(OUT_DIM):
        sup_bd = sup_bd.at[o * ATOM:(o + 1) * ATOM, o].set(support)

    return dict(
        wf=Wf.T.astype(jnp.bfloat16), bf=bf[None, :],
        wh=wh.astype(jnp.bfloat16), bh=bh,
        wo=wo.astype(jnp.bfloat16), bo=bo,
        seg=blk.astype(jnp.bfloat16),
        sup=sup_bd,
    )


def densenet_forward(x, params, tile_b=TILE_B):
    """Run the fused DenseNet forward.  Returns (B, OUT_DIM) f32 Q-values."""
    B = x.shape[0]
    n_tiles = pl.cdiv(B, tile_b)
    b_pad = n_tiles * tile_b

    xb = x.astype(jnp.bfloat16)                      # pre-cast: halves input DMA
    if b_pad != B:
        xb = jnp.pad(xb, ((0, b_pad - B), (0, 0)))

    const = lambda b: (0, 0)                         # weights: DMA'd once, VMEM-resident
    q_pad = pl.pallas_call(
        densenet_kernel,
        out_shape=jax.ShapeDtypeStruct((b_pad, OUT_PAD), jnp.float32),
        grid_spec=pltpu.PrefetchScalarGridSpec(
            num_scalar_prefetch=0,
            grid=(n_tiles,),
            in_specs=[
                pl.BlockSpec((tile_b, IN_DIM), lambda b: (b, 0)),        # x (batch-tiled)
                pl.BlockSpec((IN_DIM, HIDDEN), const),                   # wf
                pl.BlockSpec((1, HIDDEN), const),                        # bf
                pl.BlockSpec((HIDDEN, 2 * SECOND_PAD), const),           # wh
                pl.BlockSpec((1, 2 * SECOND_PAD), const),                # bh
                pl.BlockSpec((2 * SECOND_PAD, NA), const),               # wo
                pl.BlockSpec((1, NA), const),                            # bo
                pl.BlockSpec((NA, NA), const),                           # seg
                pl.BlockSpec((NA, OUT_PAD), const),                      # sup
            ],
            out_specs=pl.BlockSpec((tile_b, OUT_PAD), lambda b: (b, 0)),
        ),
        compiler_params=pltpu.CompilerParams(
            dimension_semantics=("parallel",),       # shards batch tiles across v7x TCs
        ),
    )(
        xb,
        params["wf"], params["bf"],
        params["wh"], params["bh"],
        params["wo"], params["bo"],
        params["seg"], params["sup"],
    )
    return q_pad[:B, :OUT_DIM]


if __name__ == "__main__":
    key = jax.random.PRNGKey(0)
    k_x, k_p = jax.random.split(key)
    x = jax.random.normal(k_x, (BATCH, IN_DIM), dtype=jnp.float32)
    params = make_params(k_p)

    q = densenet_forward(x, params)
    jax.block_until_ready(q)
    assert q.shape == (BATCH, OUT_DIM)
    assert bool(jnp.all(jnp.isfinite(q)))
    print("KERNEL_OK")
</pallas_src>

<mosaic_0001>
module attributes {stable_mosaic.version = 11 : i64} {
  func.func @densenet_kernel(%arg0: i32, %arg1: memref<128x16xbf16, #tpu.memory_space<vmem>>, %arg2: memref<16x32xbf16, #tpu.memory_space<vmem>>, %arg3: memref<1x32xf32, #tpu.memory_space<vmem>>, %arg4: memref<32x2048xbf16, #tpu.memory_space<vmem>>, %arg5: memref<1x2048xf32, #tpu.memory_space<vmem>>, %arg6: memref<2048x32xbf16, #tpu.memory_space<vmem>>, %arg7: memref<1x32xf32, #tpu.memory_space<vmem>>, %arg8: memref<32x32xbf16, #tpu.memory_space<vmem>>, %arg9: memref<32x128xf32, #tpu.memory_space<vmem>>, %arg10: memref<128x128xf32, #tpu.memory_space<vmem>>) attributes {dimension_semantics = [#tpu.dimension_semantics<parallel>], iteration_bounds = array<i64: 2>, scalar_prefetch = 0 : i64, scratch_operands = 0 : i64, tpu.core_type = #tpu.core_type<tc>, window_params = [{transform_indices = @transform_0, window_bounds = array<i64: 128, 16>}, {pipeline_mode = #tpu.pipeline_mode<synchronous>, transform_indices = @transform_1, window_bounds = array<i64: 16, 32>}, {pipeline_mode = #tpu.pipeline_mode<synchronous>, transform_indices = @transform_2, window_bounds = array<i64: 1, 32>}, {pipeline_mode = #tpu.pipeline_mode<synchronous>, transform_indices = @transform_3, window_bounds = array<i64: 32, 2048>}, {pipeline_mode = #tpu.pipeline_mode<synchronous>, transform_indices = @transform_4, window_bounds = array<i64: 1, 2048>}, {pipeline_mode = #tpu.pipeline_mode<synchronous>, transform_indices = @transform_5, window_bounds = array<i64: 2048, 32>}, {pipeline_mode = #tpu.pipeline_mode<synchronous>, transform_indices = @transform_6, window_bounds = array<i64: 1, 32>}, {pipeline_mode = #tpu.pipeline_mode<synchronous>, transform_indices = @transform_7, window_bounds = array<i64: 32, 32>}, {pipeline_mode = #tpu.pipeline_mode<synchronous>, transform_indices = @transform_8, window_bounds = array<i64: 32, 128>}, {transform_indices = @transform_9, window_bounds = array<i64: 128, 128>}]} {
    %c0 = arith.constant 0 : index
    %c0_0 = arith.constant 0 : index
    %0 = vector.load %arg1[%c0, %c0_0] : memref<128x16xbf16, #tpu.memory_space<vmem>>, vector<128x16xbf16>
    %c0_1 = arith.constant 0 : index
    %c0_2 = arith.constant 0 : index
    %1 = vector.load %arg2[%c0_1, %c0_2] : memref<16x32xbf16, #tpu.memory_space<vmem>>, vector<16x32xbf16>
    %cst = arith.constant dense<0.000000e+00> : vector<128x32xf32>
    %2 = tpu.matmul %0, %1, %cst {dimension_numbers = #tpu.dot_dimension_numbers<[1], [0], [0], [1], [0, 0, 1, 1], [], []>} : vector<128x16xbf16>, vector<16x32xbf16>, vector<128x32xf32> -> vector<128x32xf32>
    %c0_3 = arith.constant 0 : index
    %c0_4 = arith.constant 0 : index
    %3 = vector.load %arg3[%c0_3, %c0_4] : memref<1x32xf32, #tpu.memory_space<vmem>>, vector<1x32xf32>
    %4 = vector.broadcast %3 : vector<1x32xf32> to vector<128x32xf32>
    %5 = arith.addf %2, %4 : vector<128x32xf32>
    %cst_5 = arith.constant 0.000000e+00 : f32
    %6 = vector.broadcast %cst_5 : f32 to vector<128x32xf32>
    %7 = arith.maximumf %5, %6 : vector<128x32xf32>
    %8 = arith.truncf %7 : vector<128x32xf32> to vector<128x32xbf16>
    %c0_6 = arith.constant 0 : index
    %c0_7 = arith.constant 0 : index
    %9 = vector.load %arg4[%c0_6, %c0_7] : memref<32x2048xbf16, #tpu.memory_space<vmem>>, vector<32x2048xbf16>
    %cst_8 = arith.constant dense<0.000000e+00> : vector<128x2048xf32>
    %10 = tpu.matmul %8, %9, %cst_8 {dimension_numbers = #tpu.dot_dimension_numbers<[1], [0], [0], [1], [0, 0, 1, 1], [], []>} : vector<128x32xbf16>, vector<32x2048xbf16>, vector<128x2048xf32> -> vector<128x2048xf32>
    %c0_9 = arith.constant 0 : index
    %c0_10 = arith.constant 0 : index
    %11 = vector.load %arg5[%c0_9, %c0_10] : memref<1x2048xf32, #tpu.memory_space<vmem>>, vector<1x2048xf32>
    %12 = vector.broadcast %11 : vector<1x2048xf32> to vector<128x2048xf32>
    %13 = arith.addf %10, %12 : vector<128x2048xf32>
    %cst_11 = arith.constant 0.000000e+00 : f32
    %14 = vector.broadcast %cst_11 : f32 to vector<128x2048xf32>
    %15 = arith.maximumf %13, %14 : vector<128x2048xf32>
    %16 = arith.truncf %15 : vector<128x2048xf32> to vector<128x2048xbf16>
    %c0_12 = arith.constant 0 : index
    %c0_13 = arith.constant 0 : index
    %17 = vector.load %arg6[%c0_12, %c0_13] : memref<2048x32xbf16, #tpu.memory_space<vmem>>, vector<2048x32xbf16>
    %cst_14 = arith.constant dense<0.000000e+00> : vector<128x32xf32>
    %18 = tpu.matmul %16, %17, %cst_14 {dimension_numbers = #tpu.dot_dimension_numbers<[1], [0], [0], [1], [0, 0, 1, 1], [], []>} : vector<128x2048xbf16>, vector<2048x32xbf16>, vector<128x32xf32> -> vector<128x32xf32>
    %c0_15 = arith.constant 0 : index
    %c0_16 = arith.constant 0 : index
    %19 = vector.load %arg7[%c0_15, %c0_16] : memref<1x32xf32, #tpu.memory_space<vmem>>, vector<1x32xf32>
    %20 = vector.broadcast %19 : vector<1x32xf32> to vector<128x32xf32>
    %21 = arith.addf %18, %20 : vector<128x32xf32>
    %cst_17 = arith.constant dense<0xFF800000> : vector<128xf32>
    %22 = vector.multi_reduction <maximumf>, %21, %cst_17 [1] : vector<128x32xf32> to vector<128xf32>
    %23 = vector.shape_cast %22 : vector<128xf32> to vector<128x1xf32>
    %24 = vector.broadcast %23 : vector<128x1xf32> to vector<128x32xf32>
    %25 = arith.subf %21, %24 : vector<128x32xf32>
    %26 = math.exp %25 : vector<128x32xf32>
    %27 = arith.truncf %26 : vector<128x32xf32> to vector<128x32xbf16>
    %c0_18 = arith.constant 0 : index
    %c0_19 = arith.constant 0 : index
    %28 = vector.load %arg8[%c0_18, %c0_19] : memref<32x32xbf16, #tpu.memory_space<vmem>>, vector<32x32xbf16>
    %cst_20 = arith.constant dense<0.000000e+00> : vector<128x32xf32>
    %29 = tpu.matmul %27, %28, %cst_20 {dimension_numbers = #tpu.dot_dimension_numbers<[1], [0], [0], [1], [0, 0, 1, 1], [], []>} : vector<128x32xbf16>, vector<32x32xbf16>, vector<128x32xf32> -> vector<128x32xf32>
    %30 = tpu.reciprocal %29 {approx = true} : vector<128x32xf32> -> vector<128x32xf32>
    %31 = arith.mulf %26, %30 : vector<128x32xf32>
    %cst_21 = arith.constant 1.000000e-03 : f32
    %32 = vector.broadcast %cst_21 : f32 to vector<128x32xf32>
    %33 = arith.maximumf %31, %32 : vector<128x32xf32>
    %c0_22 = arith.constant 0 : index
    %c0_23 = arith.constant 0 : index
    %34 = vector.load %arg9[%c0_22, %c0_23] : memref<32x128xf32, #tpu.memory_space<vmem>>, vector<32x128xf32>
    %cst_24 = arith.constant dense<0.000000e+00> : vector<128x128xf32>
    %35 = tpu.matmul %33, %34, %cst_24 {dimension_numbers = #tpu.dot_dimension_numbers<[1], [0], [0], [1], [0, 0, 1, 1], [], []>} : vector<128x32xf32>, vector<32x128xf32>, vector<128x128xf32> -> vector<128x128xf32>
    %c0_25 = arith.constant 0 : index
    %c0_26 = arith.constant 0 : index
    %36 = vector.load %arg10[%c0_25, %c0_26] : memref<128x128xf32, #tpu.memory_space<vmem>>, vector<128x128xf32>
    tpu.vector_store %arg10[%c0_25, %c0_26], %35 {strides = array<i32>} : memref<128x128xf32, #tpu.memory_space<vmem>>, vector<128x128xf32>,
    return
  }
  func.func @transform_0(%arg0: i32) -> (i32, i32) {
    %c0_i32 = arith.constant 0 : i32
    %c0_i32_0 = arith.constant 0 : i32
    return %arg0, %c0_i32 : i32, i32
  }
  func.func @transform_1(%arg0: i32) -> (i32, i32) {
    %c0_i32 = arith.constant 0 : i32
    %c0_i32_0 = arith.constant 0 : i32
    %c0_i32_1 = arith.constant 0 : i32
    return %c0_i32, %c0_i32_0 : i32, i32
  }
  func.func @transform_2(%arg0: i32) -> (i32, i32) {
    %c0_i32 = arith.constant 0 : i32
    %c0_i32_0 = arith.constant 0 : i32
    %c0_i32_1 = arith.constant 0 : i32
    return %c0_i32, %c0_i32_0 : i32, i32
  }
  func.func @transform_3(%arg0: i32) -> (i32, i32) {
    %c0_i32 = arith.constant 0 : i32
    %c0_i32_0 = arith.constant 0 : i32
    %c0_i32_1 = arith.constant 0 : i32
    return %c0_i32, %c0_i32_0 : i32, i32
  }
  func.func @transform_4(%arg0: i32) -> (i32, i32) {
    %c0_i32 = arith.constant 0 : i32
    %c0_i32_0 = arith.constant 0 : i32
    %c0_i32_1 = arith.constant 0 : i32
    return %c0_i32, %c0_i32_0 : i32, i32
  }
  func.func @transform_5(%arg0: i32) -> (i32, i32) {
    %c0_i32 = arith.constant 0 : i32
    %c0_i32_0 = arith.constant 0 : i32
    %c0_i32_1 = arith.constant 0 : i32
    return %c0_i32, %c0_i32_0 : i32, i32
  }
  func.func @transform_6(%arg0: i32) -> (i32, i32) {
    %c0_i32 = arith.constant 0 : i32
    %c0_i32_0 = arith.constant 0 : i32
    %c0_i32_1 = arith.constant 0 : i32
    return %c0_i32, %c0_i32_0 : i32, i32
  }
  func.func @transform_7(%arg0: i32) -> (i32, i32) {
    %c0_i32 = arith.constant 0 : i32
    %c0_i32_0 = arith.constant 0 : i32
    %c0_i32_1 = arith.constant 0 : i32
    return %c0_i32, %c0_i32_0 : i32, i32
  }
  func.func @transform_8(%arg0: i32) -> (i32, i32) {
    %c0_i32 = arith.constant 0 : i32
    %c0_i32_0 = arith.constant 0 : i32
    %c0_i32_1 = arith.constant 0 : i32
    return %c0_i32, %c0_i32_0 : i32, i32
  }
  func.func @transform_9(%arg0: i32) -> (i32, i32) {
    %c0_i32 = arith.constant 0 : i32
    %c0_i32_0 = arith.constant 0 : i32
    return %arg0, %c0_i32 : i32, i32
  }
}

</mosaic_0001>

<bundles_post_ra>
// kernel: tpu_custom_call.1
= control target key start
LH: loop header
LB: loop body
LE: loop exit
PB: predicated region body
PF: predicated region fallthrough
CT: control target
= control target key end

     0   :  { %14 = vsyncpa [#allocation3], 0  ;;  %s8262_s0 = inlined_call_operand.vmem [shape: bf16[256,16], index: 0, kind: input, shape index: {}]   ;;  %s8263_s1 = inlined_call_operand.vmem [shape: bf16[16,32], index: 1, kind: input, shape index: {}]   ;;  %s8264_s2 = inlined_call_operand.vmem [shape: f32[1,32], index: 2, kind: input, shape index: {}]   ;;  %s8265_s3 = inlined_call_operand.vmem [shape: bf16[32,2048], index: 3, kind: input, shape index: {}]   ;;  %s8266_s4 = inlined_call_operand.vmem [shape: f32[1,2048], index: 4, kind: input, shape index: {}]   ;;  %s8267_s5 = inlined_call_operand.vmem [shape: bf16[2048,32], index: 5, kind: input, shape index: {}]   ;;  %s8268_s6 = inlined_call_operand.vmem [shape: f32[1,32], index: 6, kind: input, shape index: {}]   ;;  %s8269_s7 = inlined_call_operand.vmem [shape: bf16[32,32], index: 7, kind: input, shape index: {}]   ;;  %s8270_s8 = inlined_call_operand.vmem [shape: f32[32,128], index: 8, kind: input, shape index: {}]   ;;  %s8271_s9 = inlined_call_operand.hbm [shape: f32[256,128], index: 9, kind: output, shape index: {}]  }
   0x1   :  { %16 = vsyncpa [#allocation3 + $0x1], 0  ;;  %s5792_s30 = smov 0   ;;  %s5794_s10 = smov 0  }
   0x2   :  { %s5796_s11 = smov 0   ;;  %s5798_s12 = smov 0  }
   0x3 LB: > { %s5813_s13 = sadd.s32 4294967295, %s5736_s12   ;;  %s4526_s14 = sadd.s32 4294967294, %s5736_s12   ;;  %s5736_s12 = sphi %s5798_s12, %s8463_s12   ;;  %s5732_s11 = sphi %s5796_s11, %s8462_s11   ;;  %s5728_s10 = sphi %s5794_s10, %s8461_s10   ;;  %s5724_s30 = sphi %s5792_s30, %s8460_s30  }
   0x4   : > { %s5817_s15 = sadd.s32 1, %s5736_s12   ;;  %s223_s16 = sadd.s32 1, %s5732_s11 }
   0x5   : > { %s220_s17 = ssub.s32 %s5736_s12, %s5817_s15  ;;  %p233_p0 = scmp.ne.s32.totalorder %s5732_s11, %s5728_s10 }
   0x6   : > { %p221_p1 = scmp.eq.s32.totalorder %s220_s17, 0  ;;  %p234_p2 = scmp.eq.s32.totalorder %s5813_s13, 1 }
   0x7   : > { %p239_p3 = scmp.ne.s32.totalorder %s5728_s10, %s5724_s30  ;;  %p240_p4 = scmp.eq.s32.totalorder %s4526_s14, 1 }
   0x8   : > { %s5828_s18 = scalar_select %p221_p1, %s5732_s11, %s223_s16  }
   0x9   : > { %p5830_p5 = por %p234_p2, %p233_p0  ;;  %p5834_p6 = por %p240_p4, %p239_p3 }
   0xa   : > { %p4529_p7 = scmp.ge.s32.totalorder %s5736_s12, 1  ;;  %p291_p8 = scmp.lt.s32.totalorder %s5736_s12, 3 }
   0xc   : > { %p292_p9 = pnand %p4529_p7, %p291_p8 }
   0xe   : > { %295 = sbr.rel (%p292_p9) target bundleno = 1530 (0x5fa), region = 56 }
  0x13   : > { %v5473_v0 = vld [vmem:[%s8263_s1] sm:$0xff]   ;;  %s4531_s23 = sshll.u32 %s5813_s13, 4  ;;  %v569_v3 = vld [vmem:[%s8265_s3 + $0x88] sm:$0xff]  ;;  %vm406_vm0 = vcmask 130048   ;;  %v5738_v25 = vmov 0   ;;  %v570_v26 = vld [vmem:[%s8265_s3 + $0x90] sm:$0xff] }
  0x14   : > { %p328_p10 = scmp.lt.s32.totalorder %s4531_s23, 31  ;;  %v568_v1 = vld [vmem:[%s8265_s3 + $0x80] sm:$0xff]  ;;  %5359 = vmatprep.subr.bf16.mxu0 %v5473_v0  ;;  %5429 = vmatprep.subr.bf16.mxu1 %v5473_v0  ;;  %v577_v5 = vld [vmem:[%s8265_s3 + $0xc8] sm:$0xff]  ;;  %v578_v27 = vld [vmem:[%s8265_s3 + $0xd0] sm:$0xff]  ;;  %vm828_vm1 = vcmask 261120   ;;  %s5739_s29 = smov [#allocation2]  }
  0x15   : > { %v576_v2 = vld [vmem:[%s8265_s3 + $0xc0] sm:$0xff]  ;;  %5360 = vmatpush3.bf16.msra.mxu0 %v5473_v0  ;;  %5430 = vmatpush3.bf16.msra.mxu1 %v5473_v0  ;;  %v4570_v6 = vcombine.high %v569_v3, %v577_v5  ;;  %v4569_v8 = vcombine.low %v569_v3, %v577_v5  ;;  %v553_v19 = vld [vmem:[%s8265_s3 + $0x8] sm:$0xff]  ;;  %v4571_v28 = vcombine.low %v570_v26, %v578_v27  ;;  %v571_v30 = vld [vmem:[%s8265_s3 + $0x98] sm:$0xff]  ;;  %s5680_s14 = sshll.u32 %s5739_s29, 4  ;;  %s5681_s14 = int_to_ptr.vmem [resolvable:$false] %s5680_s14 }
  0x16   : > { %v4568_v4 = vcombine.high %v568_v1, %v576_v2  ;;  %s8465_s23 = smov (!%p328_p10, %s4531_s23), 31  ;;  %v4567_v12 = vcombine.low %v568_v1, %v576_v2  ;;  %v552_v17 = vld [vmem:[%s8265_s3] sm:$0xff]  ;;  %v561_v21 = vld [vmem:[%s8265_s3 + $0x48] sm:$0xff]  ;;  %v4572_v29 = vcombine.high %v570_v26, %v578_v27  ;;  %v579_v31 = vld [vmem:[%s8265_s3 + $0xd8] sm:$0xff]  ;;  %s5682_s16 = scalar_lea.vmem %s5681_s14, 4096 }
  0x17   : > { %s4532_s17 = sshll.u32 %s8465_s23, 2  ;;  %978 = vmatprep.subr.bf16.mxu0 %v4570_v6  ;;  %v560_v18 = vld [vmem:[%s8265_s3 + $0x40] sm:$0xff]  ;;  %v4553_v23 = vcombine.low %v553_v19, %v561_v21  ;;  %v4554_v24 = vcombine.high %v553_v19, %v561_v21  ;;  %v4573_v32 = vcombine.low %v571_v30, %v579_v31  ;;  %v4574_v33 = vcombine.high %v571_v30, %v579_v31  ;;  %v554_v42 = vld [vmem:[%s8265_s3 + $0x10] sm:$0xff]  ;;  %v555_v46 = vld [vmem:[%s8265_s3 + $0x18] sm:$0xff] }
  0x18   : > { %865 = vmatprep.subr.bf16.mxu1 %v4568_v4  ;;  %s331_s24 = scalar_lea.vmem %s8262_s0, %s4532_s17  ;;  %v4552_v20 = vcombine.high %v552_v17, %v560_v18  ;;  %v4551_v22 = vcombine.low %v552_v17, %v560_v18  ;;  %v5896_v36 = vld [vmem:[%s8264_s2] ss:$0 sm:$0xff]  ;;  %v562_v45 = vld [vmem:[%s8265_s3 + $0x50] sm:$0xff]  ;;  %v563_v47 = vld [vmem:[%s8265_s3 + $0x58] sm:$0xff]  ;;  %s324_s17 = sand.u32 1, %s5728_s10  }
  0x19   : > { %v5474_v7 = vld [vmem:[%s331_s24] sm:$0xff]   ;;  %v5475_v9 = vld [vmem:[%s331_s24 + $0x8] sm:$0xff]   ;;  %v5476_v10 = vld [vmem:[%s331_s24 + $0x10] sm:$0xff]   ;;  %v4556_v53 = vcombine.high %v554_v42, %v562_v45  ;;  %v4558_v54 = vcombine.high %v555_v46, %v563_v47  ;;  %v4555_v59 = vcombine.low %v554_v42, %v562_v45  ;;  %v4557_v60 = vcombine.low %v555_v46, %v563_v47  ;;  %s4530_s21 = sshll.u32 %s324_s17, 7  ;;  %s8222_s28 = scalar_lea.sflag [#allocation3], %s324_s17 }
  0x1a   : > { %5361 = vmatprep.mubr.msk.bf16.mxu0 %vm406_vm0, %v5474_v7  ;;  %v5478_v11 = vld [vmem:[%s331_s24 + $0x20] sm:$0xff]   ;;  %v5479_v13 = vld [vmem:[%s331_s24 + $0x28] sm:$0xff]   ;;  %v5480_v14 = vld [vmem:[%s331_s24 + $0x30] sm:$0xff]   ;;  %s8193_s22 = scalar_lea.vmem [#allocation2], %s4530_s21 }
  0x1b   : > { %5362 = vmatmul.mubr.msk.bf16.vlgmr.msra.gmra.mxu0 %vm406_vm0, %v5475_v9  ;;  %5369 = vmatprep.mubr.msk.bf16.mxu1 %vm406_vm0, %v5478_v11  ;;  %v5477_v15 = vld [vmem:[%s331_s24 + $0x18] sm:$0xff]   ;;  %v5918_v51 = vld [vmem:[%s8265_s3 + $0xa0] sm:$0xff]  ;;  %v5928_v56 = vld [vmem:[%s8265_s3 + $0xa8] sm:$0xff]  ;;  %s4464_s23 = sshll.u32 %s8193_s22, 4  ;;  %s8216_s23 = int_to_ptr.vmem [resolvable:$true] %s4464_s23 }
  0x1c   : > { %5365 = vmatprep.mubr.msk.bf16.mxu0 %vm406_vm0, %v5476_v10  ;;  %979 = vmatpush1.bf16.msra.mxu0 %v4569_v8  ;;  %v5481_v16 = vld [vmem:[%s331_s24 + $0x38] sm:$0xff]   ;;  %v5923_v55 = vld [vmem:[%s8265_s3 + $0xe0] sm:$0xff]  ;;  %v5933_v57 = vld [vmem:[%s8265_s3 + $0xe8] sm:$0xff]  ;;  %s4807_s24 = sshll.u32 %s5813_s13, 11  ;;  %s5676_s13 = scalar_lea.vmem %s8216_s23, 2048 }
  0x1d   : > { %5370 = vmatmul.mubr.msk.bf16.vlgmr.msra.gmra.mxu1 %vm406_vm0, %v5479_v13  ;;  %980 = vmatprep.subr.bf16.mxu0 %v4554_v24  ;;  %v4576_v62 = vcombine.high %v5918_v51, %v5923_v55  ;;  %v4578_v63 = vcombine.high %v5928_v56, %v5933_v57  ;;  %v565_v45 = vld [vmem:[%s8265_s3 + $0x68] sm:$0xff]  ;;  %v4575_v46 = vcombine.low %v5918_v51, %v5923_v55  ;;  %v583_v51 = vld [vmem:[%s8265_s3 + $0xf8] sm:$0xff]  ;;  %s8214_s27 = scalar_lea.hbm %s8271_s9, %s4807_s24  ;;  %p5677_p11 = scmp.ne.s32.totalorder %s8216_s23, %s5676_s13 }
  0x1e   : > { %5373 = vmatprep.mubr.msk.bf16.mxu1 %vm406_vm0, %v5480_v14  ;;  %866 = vmatpush1.bf16.msra.mxu1 %v4567_v12  ;;  %v4577_v47 = vcombine.low %v5928_v56, %v5933_v57  ;;  %p5683_p0 = scmp.lt.s32.totalorder %s8216_s23, %s5681_s14  ;;  %p5684_p1 = scmp.lt.s32.totalorder %s5682_s16, %s5676_s13 }
  0x1f   : > { %867 = vmatprep.subr.bf16.mxu1 %v4552_v20  ;;  %p5678_p12 = pnand %p5677_p11, %p5830_p5 }
  0x20   : > { %981 = vmatpush1.bf16.msra.mxu0 %v4553_v23  ;;  %p5685_p2 = por %p5684_p1, %p5683_p0 }
  0x21   : > { %1204 = vmatprep.subr.bf16.mxu0 %v4574_v33  ;;  %p5679_p13 = pneg %p5678_p12 }
  0x22   : > { %868 = vmatpush1.bf16.msra.mxu1 %v4551_v22 }
  0x23   : > { %5366 = vmatmul.mubr.msk.bf16.gmra.mxu0 %vm406_vm0, %v5477_v15  ;;  %1091 = vmatprep.subr.bf16.mxu1 %v4572_v29  ;;  %p5686_p3 = pnand %p5685_p2, %p5679_p13 }
  0x24   : > { %998 = vmatprep.mubr.bf16.mxu0 %v5738_v25 }
  0x25   : > { %5374 = vmatmul.mubr.msk.bf16.gmra.mxu1 %vm406_vm0, %v5481_v16 }
  0x26   : > { %885 = vmatprep.mubr.bf16.mxu1 %v5738_v25 }
  0xdb   : > { %v5363_v34 = vpop.f32.mrf.mxu0 }
  0xdc   : > { %v474_v58 = vadd.f32 %v5363_v34, %v5896_v36 }
  0xdd   : > { %v465_v35 = vpop.f32.mrf.mxu0  ;;  %v5371_v5 = vpop.f32.mrf.mxu1 }
  0xde   : > { %v466_v38 = vadd.f32 %v5896_v36, %v465_v35  ;;  %v530_v1 = vmax.f32 %v474_v58, 0.0  ;;  %v506_v23 = vadd.f32 %v5371_v5, %v5896_v36 }
  0xdf   : > { %v5364_v37 = vpop.f32.mrf.mxu0  ;;  %v497_v8 = vpop.f32.mrf.mxu1 }
  0xe0   : > { %v528_v43 = vmax.f32 %v466_v38, 0.0  ;;  %v477_v49 = vadd.f32 %v5364_v37, %v5896_v36  ;;  %v498_v17 = vadd.f32 %v5896_v36, %v497_v8  ;;  %v5483_v8 = vld [vmem:[%s8267_s5 + $0x38] sm:$0xff]  }
  0xe1   : > { %v468_v39 = vpop.f32.mrf.mxu0  ;;  %v5372_v12 = vpop.f32.mrf.mxu1 }
  0xe2   : > { %v469_v40 = vadd.f32 %v5896_v36, %v468_v39  ;;  %v531_v61 = vmax.f32 %v477_v49, 0.0  ;;  %v536_v20 = vmax.f32 %v498_v17, 0.0  ;;  %v509_v24 = vadd.f32 %v5372_v12, %v5896_v36  ;;  %v5488_v12 = vld [vmem:[%s8267_s5 + $0xf0] sm:$0xff]  }
  0xe3   : > { %v5367_v41 = vpop.f32.mrf.mxu0  ;;  %v500_v15 = vpop.f32.mrf.mxu1  ;;  %v5489_v17 = vld [vmem:[%s8267_s5 + $0xb0] sm:$0xff]  }
  0xe4   : > { %v529_v44 = vmax.f32 %v469_v40, 0.0  ;;  %v5946_v2 = vpack.c.bf16 %v531_v61, %v530_v1  ;;  %v490_v9 = vadd.f32 %v5367_v41, %v5896_v36  ;;  %v501_v18 = vadd.f32 %v5896_v36, %v500_v15  ;;  %v559_v61 = vld [vmem:[%s8265_s3 + $0x38] sm:$0xff]  ;;  %v5487_v15 = vld [vmem:[%s8267_s5 + $0x30] sm:$0xff]  }
  0xe5   : > { %v481_v48 = vpop.f32.mrf.mxu0  ;;  %v5375_v19 = vpop.f32.mrf.mxu1  ;;  %v539_v29 = vmax.f32 %v509_v24, 0.0 }
  0xe6   : > { %v5913_v50 = vpack.c.bf16 %v529_v44, %v528_v43  ;;  %v482_v3 = vadd.f32 %v5896_v36, %v481_v48  ;;  %v534_v13 = vmax.f32 %v490_v9, 0.0  ;;  %v537_v21 = vmax.f32 %v501_v18, 0.0  ;;  %v564_v43 = vld [vmem:[%s8265_s3 + $0x60] sm:$0xff]  ;;  %v557_v44 = vld [vmem:[%s8265_s3 + $0x28] sm:$0xff]  ;;  %v574_v48 = vld [vmem:[%s8265_s3 + $0xb0] sm:$0xff] }
  0xe7   : > { %v5368_v52 = vpop.f32.mrf.mxu0  ;;  %v513_v22 = vpop.f32.mrf.mxu1  ;;  %v522_v37 = vadd.f32 %v5375_v19, %v5896_v36  ;;  %v4561_v56 = vcombine.low %v557_v44, %v565_v45  ;;  %v5485_v9 = vld [vmem:[%s8267_s5 + $0xb8] sm:$0xff]  }
  0xe8   : > { %4583 = vmatmul.mubr.msk.bf16.vlgmr.msra.gmra.mxu1 %vm828_vm1, %v5913_v50  ;;  %4591 = vmatmul.mubr.msk.bf16.vlgmr.msra.gmra.mxu0 %vm828_vm1, %v5913_v50  ;;  %v532_v6 = vmax.f32 %v482_v3, 0.0  ;;  %v493_v10 = vadd.f32 %v5368_v52, %v5896_v36  ;;  %v5978_v26 = vpack.c.bf16 %v537_v21, %v536_v20  ;;  %v4562_v52 = vcombine.high %v557_v44, %v565_v45  ;;  %v5492_v20 = vld [vmem:[%s8267_s5 + $0xe8] sm:$0xff]   ;;  %v5499_v45 = vld [vmem:[%s8267_s5 + $0x18] sm:$0xff]  }
  0xe9   : > { %1092 = vmatpush1.bf16.msra.mxu1 %v4571_v28  ;;  %1205 = vmatpush1.bf16.msra.mxu0 %v4573_v32  ;;  %v484_v0 = vpop.f32.mrf.mxu0  ;;  %v5376_v27 = vpop.f32.mrf.mxu1  ;;  %v538_v28 = vmax.f32 %v506_v23, 0.0  ;;  %v514_v32 = vadd.f32 %v5896_v36, %v513_v22  ;;  %v542_v40 = vmax.f32 %v522_v37, 0.0  ;;  %v5495_v37 = vld [vmem:[%s8267_s5 + $0x20] sm:$0xff]  }
  0xea   : > { %895 = vmatprep.mubr.bf16.mxu1 %v5738_v25  ;;  %1008 = vmatprep.mubr.bf16.mxu0 %v5738_v25  ;;  %v485_v4 = vadd.f32 %v5896_v36, %v484_v0  ;;  %v535_v14 = vmax.f32 %v493_v10, 0.0  ;;  %v525_v38 = vadd.f32 %v5376_v27, %v5896_v36  ;;  %v5486_v10 = vld [vmem:[%s8267_s5 + $0x70] sm:$0xff]   ;;  %v5491_v27 = vld [vmem:[%s8267_s5 + $0x28] sm:$0xff]  }
  0xeb   : > { %1093 = vmatprep.subr.bf16.mxu1 %v4556_v53  ;;  %1206 = vmatprep.subr.bf16.mxu0 %v4558_v54  ;;  %v516_v30 = vpop.f32.mrf.mxu1  ;;  %v5986_v31 = vpack.c.bf16 %v539_v29, %v538_v28  ;;  %v540_v34 = vmax.f32 %v514_v32, 0.0  ;;  %v582_v53 = vld [vmem:[%s8265_s3 + $0xf0] sm:$0xff]  ;;  %v575_v54 = vld [vmem:[%s8265_s3 + $0xb8] sm:$0xff]  ;;  %v5493_v28 = vld [vmem:[%s8267_s5 + $0xa8] sm:$0xff]  }
  0xec   : > { %v533_v7 = vmax.f32 %v485_v4, 0.0  ;;  %v5966_v16 = vpack.c.bf16 %v535_v14, %v534_v13  ;;  %v517_v33 = vadd.f32 %v5896_v36, %v516_v30  ;;  %v543_v41 = vmax.f32 %v525_v38, 0.0  ;;  %v556_v36 = vld [vmem:[%s8265_s3 + $0x20] sm:$0xff] }
  0xed   : > { %1094 = vmatpush1.bf16.msra.mxu1 %v4555_v59  ;;  %1207 = vmatpush1.bf16.msra.mxu0 %v4557_v60  ;;  %v4560_v49 = vcombine.high %v556_v36, %v564_v43  ;;  %v4559_v55 = vcombine.low %v556_v36, %v564_v43  ;;  %v4580_v57 = vcombine.high %v574_v48, %v582_v53  ;;  %v558_v59 = vld [vmem:[%s8265_s3 + $0x30] sm:$0xff]  ;;  %v5494_v29 = vld [vmem:[%s8267_s5 + $0x60] sm:$0xff]  }
  0xee   : > { %1317 = vmatprep.subr.bf16.mxu1 %v4576_v62  ;;  %1430 = vmatprep.subr.bf16.mxu0 %v4578_v63  ;;  %v5958_v11 = vpack.c.bf16 %v533_v7, %v532_v6  ;;  %v541_v35 = vmax.f32 %v517_v33, 0.0  ;;  %v6006_v42 = vpack.c.bf16 %v543_v41, %v542_v40  ;;  %v4582_v58 = vcombine.high %v575_v54, %v583_v51  ;;  %v566_v60 = vld [vmem:[%s8265_s3 + $0x70] sm:$0xff]  ;;  %v567_v62 = vld [vmem:[%s8265_s3 + $0x78] sm:$0xff]  ;;  %v5496_v30 = vld [vmem:[%s8267_s5 + $0xe0] sm:$0xff]  }
  0xef   : > { %v4579_v63 = vcombine.low %v574_v48, %v582_v53  ;;  %v4581_v0 = vcombine.low %v575_v54, %v583_v51  ;;  %v4564_v1 = vcombine.high %v558_v59, %v566_v60  ;;  %v4566_v3 = vcombine.high %v559_v61, %v567_v62  ;;  %v5482_v6 = vld [vmem:[%s8267_s5 + $0x78] sm:$0xff]   ;;  %v5497_v38 = vld [vmem:[%s8267_s5 + $0xa0] sm:$0xff]   ;;  %v5504_v48 = vld [vmem:[%s8267_s5 + $0xd0] sm:$0xff]  }
  0xf0   : > { %4584 = vmatmul.mubr.msk.bf16.gmra.mxu1 %vm828_vm1, %v5946_v2  ;;  %4592 = vmatmul.mubr.msk.bf16.gmra.mxu0 %vm828_vm1, %v5946_v2  ;;  %v5998_v39 = vpack.c.bf16 %v541_v35, %v540_v34  ;;  %v4563_v4 = vcombine.low %v558_v59, %v566_v60  ;;  %v4565_v5 = vcombine.low %v559_v61, %v567_v62  ;;  %v5484_v7 = vld [vmem:[%s8267_s5 + $0xf8] sm:$0xff]   ;;  %v5503_v51 = vld [vmem:[%s8267_s5 + $0x10] sm:$0xff]   ;;  %v5507_v61 = vld [vmem:[%s8267_s5 + $0x8] sm:$0xff]  }
  0xf1   : > { %905 = vmatprep.mubr.bf16.mxu1 %v5738_v25  ;;  %1018 = vmatprep.mubr.bf16.mxu0 %v5738_v25  ;;  %v5500_v40 = vld [vmem:[%s8267_s5 + $0xd8] sm:$0xff]   ;;  %v5509_v62 = vld [vmem:[%s8267_s5 + $0x88] sm:$0xff]  }
  0xf8   : > { %4585 = vmatmul.mubr.msk.bf16.gmra.mxu1 %vm828_vm1, %v5958_v11  ;;  %4593 = vmatmul.mubr.msk.bf16.gmra.mxu0 %vm828_vm1, %v5958_v11 }
  0xf9   : > { %915 = vmatprep.mubr.bf16.mxu1 %v5738_v25  ;;  %1028 = vmatprep.mubr.bf16.mxu0 %v5738_v25 }
 0x100   : > { %4586 = vmatmul.mubr.msk.bf16.gmra.mxu1 %vm828_vm1, %v5966_v16  ;;  %4594 = vmatmul.mubr.msk.bf16.gmra.mxu0 %vm828_vm1, %v5966_v16 }
 0x101   : > { %925 = vmatprep.mubr.bf16.mxu1 %v5738_v25  ;;  %1038 = vmatprep.mubr.bf16.mxu0 %v5738_v25 }
 0x108   : > { %4587 = vmatmul.mubr.msk.bf16.gmra.mxu1 %vm828_vm1, %v5978_v26  ;;  %4595 = vmatmul.mubr.msk.bf16.gmra.mxu0 %vm828_vm1, %v5978_v26 }
 0x109   : > { %935 = vmatprep.mubr.bf16.mxu1 %v5738_v25  ;;  %1048 = vmatprep.mubr.bf16.mxu0 %v5738_v25 }
 0x110   : > { %4588 = vmatmul.mubr.msk.bf16.gmra.mxu1 %vm828_vm1, %v5986_v31  ;;  %4596 = vmatmul.mubr.msk.bf16.gmra.mxu0 %vm828_vm1, %v5986_v31 }
 0x111   : > { %945 = vmatprep.mubr.bf16.mxu1 %v5738_v25  ;;  %1058 = vmatprep.mubr.bf16.mxu0 %v5738_v25 }
 0x118   : > { %4589 = vmatmul.mubr.msk.bf16.gmra.mxu1 %vm828_vm1, %v5998_v39  ;;  %4597 = vmatmul.mubr.msk.bf16.gmra.mxu0 %vm828_vm1, %v5998_v39 }
 0x119   : > { %955 = vmatprep.mubr.bf16.mxu1 %v5738_v25  ;;  %1068 = vmatprep.mubr.bf16.mxu0 %v5738_v25 }
 0x120   : > { %4590 = vmatmul.mubr.msk.bf16.gmra.mxu1 %vm828_vm1, %v6006_v42  ;;  %4598 = vmatmul.mubr.msk.bf16.gmra.mxu0 %vm828_vm1, %v6006_v42 }
 0x121   : > { %1111 = vmatprep.mubr.bf16.mxu1 %v5738_v25  ;;  %1224 = vmatprep.mubr.bf16.mxu0 %v5738_v25 }
 0x128   : > { %4599 = vmatmul.mubr.msk.bf16.vlgmr.msra.gmra.mxu1 %vm828_vm1, %v5913_v50  ;;  %4607 = vmatmul.mubr.msk.bf16.vlgmr.msra.gmra.mxu0 %vm828_vm1, %v5913_v50 }
 0x129   : > { %1318 = vmatpush1.bf16.msra.mxu1 %v4575_v46  ;;  %1431 = vmatpush1.bf16.msra.mxu0 %v4577_v47  ;;  %v5501_v46 = vld [vmem:[%s8267_s5 + $0x98] sm:$0xff]   ;;  %v5502_v47 = vld [vmem:[%s8267_s5 + $0x50] sm:$0xff]  }
 0x12a   : > { %1121 = vmatprep.mubr.bf16.mxu1 %v5738_v25  ;;  %1234 = vmatprep.mubr.bf16.mxu0 %v5738_v25 }
 0x12b   : > { %1319 = vmatprep.subr.bf16.mxu1 %v4560_v49  ;;  %1432 = vmatprep.subr.bf16.mxu0 %v4562_v52 }
 0x12d   : > { %1320 = vmatpush1.bf16.msra.mxu1 %v4559_v55  ;;  %1433 = vmatpush1.bf16.msra.mxu0 %v4561_v56  ;;  %v5505_v55 = vld [vmem:[%s8267_s5 + $0x90] sm:$0xff]   ;;  %v5508_v56 = vld [vmem:[%s8267_s5 + $0xc8] sm:$0xff]  }
 0x12e   : > { %1543 = vmatprep.subr.bf16.mxu1 %v4580_v57  ;;  %1656 = vmatprep.subr.bf16.mxu0 %v4582_v58 }
 0x130   : > { %4600 = vmatmul.mubr.msk.bf16.gmra.mxu1 %vm828_vm1, %v5946_v2  ;;  %4608 = vmatmul.mubr.msk.bf16.gmra.mxu0 %vm828_vm1, %v5946_v2 }
 0x131   : > { %1131 = vmatprep.mubr.bf16.mxu1 %v5738_v25  ;;  %1244 = vmatprep.mubr.bf16.mxu0 %v5738_v25 }
 0x138   : > { %4601 = vmatmul.mubr.msk.bf16.gmra.mxu1 %vm828_vm1, %v5958_v11  ;;  %4609 = vmatmul.mubr.msk.bf16.gmra.mxu0 %vm828_vm1, %v5958_v11 }
 0x139   : > { %1141 = vmatprep.mubr.bf16.mxu1 %v5738_v25  ;;  %1254 = vmatprep.mubr.bf16.mxu0 %v5738_v25 }
 0x140   : > { %4602 = vmatmul.mubr.msk.bf16.gmra.mxu1 %vm828_vm1, %v5966_v16  ;;  %4610 = vmatmul.mubr.msk.bf16.gmra.mxu0 %vm828_vm1, %v5966_v16 }
 0x141   : > { %1151 = vmatprep.mubr.bf16.mxu1 %v5738_v25  ;;  %1264 = vmatprep.mubr.bf16.mxu0 %v5738_v25 }
 0x148   : > { %4603 = vmatmul.mubr.msk.bf16.gmra.mxu1 %vm828_vm1, %v5978_v26  ;;  %4611 = vmatmul.mubr.msk.bf16.gmra.mxu0 %vm828_vm1, %v5978_v26 }
 0x149   : > { %1161 = vmatprep.mubr.bf16.mxu1 %v5738_v25  ;;  %1274 = vmatprep.mubr.bf16.mxu0 %v5738_v25 }
 0x150   : > { %4604 = vmatmul.mubr.msk.bf16.gmra.mxu1 %vm828_vm1, %v5986_v31  ;;  %4612 = vmatmul.mubr.msk.bf16.gmra.mxu0 %vm828_vm1, %v5986_v31 }
 0x151   : > { %1171 = vmatprep.mubr.bf16.mxu1 %v5738_v25  ;;  %1284 = vmatprep.mubr.bf16.mxu0 %v5738_v25 }
 0x158   : > { %4605 = vmatmul.mubr.msk.bf16.gmra.mxu1 %vm828_vm1, %v5998_v39  ;;  %4613 = vmatmul.mubr.msk.bf16.gmra.mxu0 %vm828_vm1, %v5998_v39 }
 0x159   : > { %1181 = vmatprep.mubr.bf16.mxu1 %v5738_v25  ;;  %1294 = vmatprep.mubr.bf16.mxu0 %v5738_v25 }
 0x160   : > { %4606 = vmatmul.mubr.msk.bf16.gmra.mxu1 %vm828_vm1, %v6006_v42  ;;  %4614 = vmatmul.mubr.msk.bf16.gmra.mxu0 %vm828_vm1, %v6006_v42 }
 0x161   : > { %1337 = vmatprep.mubr.bf16.mxu1 %v5738_v25  ;;  %1450 = vmatprep.mubr.bf16.mxu0 %v5738_v25 }
 0x168   : > { %4615 = vmatmul.mubr.msk.bf16.vlgmr.msra.gmra.mxu1 %vm828_vm1, %v5913_v50  ;;  %4623 = vmatmul.mubr.msk.bf16.vlgmr.msra.gmra.mxu0 %vm828_vm1, %v5913_v50 }
 0x169   : > { %1544 = vmatpush1.bf16.msra.mxu1 %v4579_v63  ;;  %1657 = vmatpush1.bf16.msra.mxu0 %v4581_v0  ;;  %v5510_v63 = vld [vmem:[%s8267_s5 + $0x40] sm:$0xff]  }
 0x16a   : > { %1347 = vmatprep.mubr.bf16.mxu1 %v5738_v25  ;;  %1460 = vmatprep.mubr.bf16.mxu0 %v5738_v25  ;;  %v5512_v0 = vld [vmem:[%s8267_s5 + $0xc0] sm:$0xff]  }
 0x16b   : > { %1545 = vmatprep.subr.bf16.mxu1 %v4564_v1  ;;  %1658 = vmatprep.subr.bf16.mxu0 %v4566_v3 }
 0x16d   : > { %1546 = vmatpush1.bf16.msra.mxu1 %v4563_v4  ;;  %1659 = vmatpush1.bf16.msra.mxu0 %v4565_v5 }
 0x16e   : > { %4817 = vmatprep.subr.bf16.mxu1 %v5482_v6  ;;  %4881 = vmatprep.subr.bf16.mxu0 %v5484_v7  ;;  %v5511_v6 = vld [vmem:[%s8267_s5] sm:$0xff]  }
 0x16f   : > { %v5513_v7 = vld [vmem:[%s8267_s5 + $0x80] sm:$0xff]  }
 0x170   : > { %4616 = vmatmul.mubr.msk.bf16.gmra.mxu1 %vm828_vm1, %v5946_v2  ;;  %4624 = vmatmul.mubr.msk.bf16.gmra.mxu0 %vm828_vm1, %v5946_v2 }
 0x171   : > { %1357 = vmatprep.mubr.bf16.mxu1 %v5738_v25  ;;  %1470 = vmatprep.mubr.bf16.mxu0 %v5738_v25 }
 0x178   : > { %4617 = vmatmul.mubr.msk.bf16.gmra.mxu1 %vm828_vm1, %v5958_v11  ;;  %4625 = vmatmul.mubr.msk.bf16.gmra.mxu0 %vm828_vm1, %v5958_v11 }
 0x179   : > { %1367 = vmatprep.mubr.bf16.mxu1 %v5738_v25  ;;  %1480 = vmatprep.mubr.bf16.mxu0 %v5738_v25 }
 0x180   : > { %4618 = vmatmul.mubr.msk.bf16.gmra.mxu1 %vm828_vm1, %v5966_v16  ;;  %4626 = vmatmul.mubr.msk.bf16.gmra.mxu0 %vm828_vm1, %v5966_v16 }
 0x181   : > { %1377 = vmatprep.mubr.bf16.mxu1 %v5738_v25  ;;  %1490 = vmatprep.mubr.bf16.mxu0 %v5738_v25 }
 0x188   : > { %4619 = vmatmul.mubr.msk.bf16.gmra.mxu1 %vm828_vm1, %v5978_v26  ;;  %4627 = vmatmul.mubr.msk.bf16.gmra.mxu0 %vm828_vm1, %v5978_v26 }
 0x189   : > { %1387 = vmatprep.mubr.bf16.mxu1 %v5738_v25  ;;  %1500 = vmatprep.mubr.bf16.mxu0 %v5738_v25 }
 0x190   : > { %4620 = vmatmul.mubr.msk.bf16.gmra.mxu1 %vm828_vm1, %v5986_v31  ;;  %4628 = vmatmul.mubr.msk.bf16.gmra.mxu0 %vm828_vm1, %v5986_v31 }
 0x191   : > { %1397 = vmatprep.mubr.bf16.mxu1 %v5738_v25  ;;  %1510 = vmatprep.mubr.bf16.mxu0 %v5738_v25 }
 0x198   : > { %4621 = vmatmul.mubr.msk.bf16.gmra.mxu1 %vm828_vm1, %v5998_v39  ;;  %4629 = vmatmul.mubr.msk.bf16.gmra.mxu0 %vm828_vm1, %v5998_v39 }
 0x199   : > { %1407 = vmatprep.mubr.bf16.mxu1 %v5738_v25  ;;  %1520 = vmatprep.mubr.bf16.mxu0 %v5738_v25 }
 0x1a0   : > { %4622 = vmatmul.mubr.msk.bf16.gmra.mxu1 %vm828_vm1, %v6006_v42  ;;  %4630 = vmatmul.mubr.msk.bf16.gmra.mxu0 %vm828_vm1, %v6006_v42 }
 0x1a1   : > { %1563 = vmatprep.mubr.bf16.mxu1 %v5738_v25  ;;  %1676 = vmatprep.mubr.bf16.mxu0 %v5738_v25 }
 0x1a8   : > { %v6168_v13 = vpop.f32.mrf.mxu1  ;;  %v6170_v14 = vpop.f32.mrf.mxu0  ;;  %4631 = vmatmul.mubr.msk.bf16.vlgmr.msra.gmra.mxu1 %vm828_vm1, %v5913_v50  ;;  %4639 = vmatmul.mubr.msk.bf16.vlgmr.msra.gmra.mxu0 %vm828_vm1, %v5913_v50  ;;  %v5490_v50 = vld [vmem:[%s8267_s5 + $0x68] sm:$0xff]  }
 0x1a9   : > { %4818 = vmatpush3.bf16.msra.mxu1 %v5483_v8  ;;  %4882 = vmatpush3.bf16.msra.mxu0 %v5485_v9  ;;  %v5516_v8 = vld [vmem:[%s8267_s5 + $0x1f8] sm:$0xff]  }
 0x1aa   : > { %v6182_v18 = vpop.f32.mrf.mxu1  ;;  %v6184_v19 = vpop.f32.mrf.mxu0  ;;  %1573 = vmatprep.mubr.bf16.mxu1 %v5738_v25  ;;  %1686 = vmatprep.mubr.bf16.mxu0 %v5738_v25 }
 0x1ab   : > { %4819 = vmatprep.subr.bf16.mxu1 %v5486_v10  ;;  %4883 = vmatprep.subr.bf16.mxu0 %v5488_v12 }
 0x1ac   : > { %v6194_v21 = vpop.f32.mrf.mxu1  ;;  %v6196_v22 = vpop.f32.mrf.mxu0 }
 0x1ad   : > { %4820 = vmatpush3.bf16.msra.mxu1 %v5487_v15  ;;  %4884 = vmatpush3.bf16.msra.mxu0 %v5489_v17 }
 0x1ae   : > { %v6198_v23 = vpop.f32.mrf.mxu1  ;;  %v6200_v24 = vpop.f32.mrf.mxu0  ;;  %4821 = vmatprep.subr.bf16.mxu1 %v5490_v50  ;;  %4885 = vmatprep.subr.bf16.mxu0 %v5492_v20 }
 0x1b0   : > { %v6214_v32 = vpop.f32.mrf.mxu1  ;;  %v6216_v33 = vpop.f32.mrf.mxu0  ;;  %4632 = vmatmul.mubr.msk.bf16.gmra.mxu1 %vm828_vm1, %v5946_v2  ;;  %4640 = vmatmul.mubr.msk.bf16.gmra.mxu0 %vm828_vm1, %v5946_v2  ;;  %v5498_v2 = vld [vmem:[%s8267_s5 + $0x58] sm:$0xff]  }
 0x1b1   : > { %1583 = vmatprep.mubr.bf16.mxu1 %v5738_v25  ;;  %1696 = vmatprep.mubr.bf16.mxu0 %v5738_v25 }
 0x1b2   : > { %v6224_v34 = vpop.f32.mrf.mxu1  ;;  %v6226_v35 = vpop.f32.mrf.mxu0  ;;  %4822 = vmatpush3.bf16.msra.mxu1 %v5491_v27  ;;  %4886 = vmatpush3.bf16.msra.mxu0 %v5493_v28  ;;  %v588_v28 = vlaneseq }
 0x1b3   : > { %4823 = vmatprep.subr.bf16.mxu1 %v5494_v29  ;;  %4887 = vmatprep.subr.bf16.mxu0 %v5496_v30 }
 0x1b4   : > { %v6240_v41 = vpop.f32.mrf.mxu1  ;;  %v6242_v36 = vpop.f32.mrf.mxu0 }
 0x1b6   : > { %v6244_v43 = vpop.f32.mrf.mxu1  ;;  %v6246_v44 = vpop.f32.mrf.mxu0  ;;  %4824 = vmatpush3.bf16.msra.mxu1 %v5495_v37  ;;  %4888 = vmatpush3.bf16.msra.mxu0 %v5497_v38 }
 0x1b7   : > { %4825 = vmatprep.subr.bf16.mxu1 %v5498_v2  ;;  %4889 = vmatprep.subr.bf16.mxu0 %v5500_v40  ;;  %v6362_v2 = vshrl.u32 %v588_v28, 7 }
 0x1b8   : > { %v6260_v49 = vpop.f32.mrf.mxu1  ;;  %v6262_v52 = vpop.f32.mrf.mxu0  ;;  %4633 = vmatmul.mubr.msk.bf16.gmra.mxu1 %vm828_vm1, %v5958_v11  ;;  %4641 = vmatmul.mubr.msk.bf16.gmra.mxu0 %vm828_vm1, %v5958_v11  ;;  %v5506_v11 = vld [vmem:[%s8267_s5 + $0x48] sm:$0xff]  }
 0x1b9   : > { %1593 = vmatprep.mubr.bf16.mxu1 %v5738_v25  ;;  %1706 = vmatprep.mubr.bf16.mxu0 %v5738_v25  ;;  %8287 = vst [vmem:[#allocation5_spill] sm:$0xff] %v6362_v2 }
 0x1ba   : > { %v6270_v53 = vpop.f32.mrf.mxu1  ;;  %v6272_v54 = vpop.f32.mrf.mxu0  ;;  %4826 = vmatpush3.bf16.msra.mxu1 %v5499_v45  ;;  %4890 = vmatpush3.bf16.msra.mxu0 %v5501_v46  ;;  %v8273_v45 = vsub.s32 1, %v6362_v2  ;;  %v8272_v46 = vsub.s32 3, %v6362_v2 }
 0x1bb   : > { %4827 = vmatprep.subr.bf16.mxu1 %v5502_v47  ;;  %4891 = vmatprep.subr.bf16.mxu0 %v5504_v48 }
 0x1bc   : > { %v6286_v57 = vpop.f32.mrf.mxu1  ;;  %v6288_v58 = vpop.f32.mrf.mxu0 }
 0x1be   : > { %v6290_v59 = vpop.f32.mrf.mxu1  ;;  %v6292_v60 = vpop.f32.mrf.mxu0  ;;  %4828 = vmatpush3.bf16.msra.mxu1 %v5503_v51  ;;  %4892 = vmatpush3.bf16.msra.mxu0 %v5505_v55  ;;  %v6383_v51 = vld [vmem:[%s8266_s4] sm:$0xff] }
 0x1bf   : > { %4829 = vmatprep.subr.bf16.mxu1 %v5506_v11  ;;  %4893 = vmatprep.subr.bf16.mxu0 %v5508_v56  ;;  %8289 = vst [vmem:[#allocation7_spill] sm:$0xff] %v6383_v51  ;;  %v6392_v11 = vrot.slane %v6383_v51, %v8273_v45  ;;  %v6397_v56 = vrot.slane %v6383_v51, %v8272_v46 }
 0x1c0   : > { %v6306_v1 = vpop.f32.mrf.mxu1  ;;  %v6308_v3 = vpop.f32.mrf.mxu0  ;;  %4634 = vmatmul.mubr.msk.bf16.gmra.mxu1 %vm828_vm1, %v5966_v16  ;;  %4642 = vmatmul.mubr.msk.bf16.gmra.mxu0 %vm828_vm1, %v5966_v16  ;;  %v5514_v16 = vld [vmem:[%s8267_s5 + $0x178] sm:$0xff]  }
 0x1c1   : > { %1603 = vmatprep.mubr.bf16.mxu1 %v5738_v25  ;;  %1716 = vmatprep.mubr.bf16.mxu0 %v5738_v25  ;;  %v890_v28 = vadd.f32 %v6182_v18, %v6392_v11  ;;  %v8294_v18 = vsub.s32 2, %v6362_v2 }
 0x1c2   : > { %v6316_v4 = vpop.f32.mrf.mxu1  ;;  %v6318_v5 = vpop.f32.mrf.mxu0  ;;  %4830 = vmatpush3.bf16.msra.mxu1 %v5507_v61  ;;  %4894 = vmatpush3.bf16.msra.mxu0 %v5509_v62 }
 0x1c3   : > { %4831 = vmatprep.subr.bf16.mxu1 %v5510_v63  ;;  %4895 = vmatprep.subr.bf16.mxu0 %v5512_v0  ;;  %v8274_v63 = vsub.s32 0, %v6362_v2  ;;  %v894_v0 = vadd.f32 %v6198_v23, %v6392_v11  ;;  %v1003_v23 = vadd.f32 %v6184_v19, %v6397_v56 }
 0x1c4   : > { %v6332_v9 = vpop.f32.mrf.mxu1  ;;  %v6334_v10 = vpop.f32.mrf.mxu0 }
 0x1c5   : > { %v6430_v45 = vrot.slane %v6383_v51, %v8274_v63 }
 0x1c6   : > { %v6336_v12 = vpop.f32.mrf.mxu1  ;;  %v6338_v15 = vpop.f32.mrf.mxu0  ;;  %4832 = vmatpush3.bf16.msra.mxu1 %v5511_v6  ;;  %4896 = vmatpush3.bf16.msra.mxu0 %v5513_v7  ;;  %v1007_v6 = vadd.f32 %v6200_v24, %v6397_v56 }
 0x1c7   : > { %4945 = vmatprep.subr.bf16.mxu1 %v5514_v16  ;;  %5009 = vmatprep.subr.bf16.mxu0 %v5516_v8 }
 0x1c8   : > { %v6340_v17 = vpop.f32.mrf.mxu1  ;;  %v6342_v50 = vpop.f32.mrf.mxu0  ;;  %4635 = vmatmul.mubr.msk.bf16.gmra.mxu1 %vm828_vm1, %v5978_v26  ;;  %4643 = vmatmul.mubr.msk.bf16.gmra.mxu0 %vm828_vm1, %v5978_v26  ;;  %v1776_v7 = vmax.f32 %v1007_v6, 0.0  ;;  %v888_v6 = vadd.f32 %v6168_v13, %v6430_v45 }
 0x1c9   : > { %1613 = vmatprep.mubr.bf16.mxu1 %v5738_v25  ;;  %1726 = vmatprep.mubr.bf16.mxu0 %v5738_v25 }
 0x1ca   : > { %v6350_v20 = vpop.f32.mrf.mxu1  ;;  %v6352_v27 = vpop.f32.mrf.mxu0 }
 0x1cc   : > { %v6354_v29 = vpop.f32.mrf.mxu1  ;;  %v6356_v30 = vpop.f32.mrf.mxu0 }
 0x1ce   : > { %v6358_v37 = vpop.f32.mrf.mxu1  ;;  %v6360_v38 = vpop.f32.mrf.mxu0 }
 0x1d0   : > { %v6364_v26 = vpop.f32.mrf.mxu1  ;;  %v6366_v40 = vpop.f32.mrf.mxu0  ;;  %4636 = vmatmul.mubr.msk.bf16.gmra.mxu1 %vm828_vm1, %v5986_v31  ;;  %4644 = vmatmul.mubr.msk.bf16.gmra.mxu0 %vm828_vm1, %v5986_v31 }
 0x1d1   : > { %8288 = vst [vmem:[#allocation6_spill] sm:$0xff] %v6366_v40  ;;  %1623 = vmatprep.mubr.bf16.mxu1 %v5738_v25  ;;  %1736 = vmatprep.mubr.bf16.mxu0 %v5738_v25 }
 0x1d2   : > { %v6376_v47 = vpop.f32.mrf.mxu1  ;;  %v6378_v48 = vpop.f32.mrf.mxu0 }
 0x1d4   : > { %v6385_v55 = vpop.f32.mrf.mxu1  ;;  %v6387_v31 = vpop.f32.mrf.mxu0 }
 0x1d6   : > { %v6399_v61 = vpop.f32.mrf.mxu1  ;;  %v6401_v62 = vpop.f32.mrf.mxu0 }
 0x1d8   : > { %v6409_v16 = vpop.f32.mrf.mxu1  ;;  %v6411_v8 = vpop.f32.mrf.mxu0  ;;  %4637 = vmatmul.mubr.msk.bf16.gmra.mxu1 %vm828_vm1, %v5998_v39  ;;  %4645 = vmatmul.mubr.msk.bf16.gmra.mxu0 %vm828_vm1, %v5998_v39  ;;  %v1774_v39 = vmax.f32 %v894_v0, 0.0 }
 0x1d9   : > { %8290 = vst [vmem:[#allocation8_spill] sm:$0xff] %v6409_v16  ;;  %8291 = vst [vmem:[#allocation9_spill] sm:$0xff] %v6411_v8  ;;  %1633 = vmatprep.mubr.bf16.mxu1 %v5738_v25  ;;  %1746 = vmatprep.mubr.bf16.mxu0 %v5738_v25  ;;  %v6435_v8 = vrot.slane %v6383_v51, %v8294_v18  ;;  %v1758_v25 = vmax.f32 %v890_v28, 0.0  ;;  %v904_v18 = vadd.f32 %v6244_v43, %v6392_v11 }
 0x1da   : > { %v6423_v24 = vpop.f32.mrf.mxu1  ;;  %v6425_v46 = vpop.f32.mrf.mxu0  ;;  %v900_v43 = vadd.f32 %v6224_v34, %v6392_v11 }
 0x1db   : > { %8292 = vst [vmem:[#allocation10_spill] sm:$0xff] %v6423_v24  ;;  %8293 = vst [vmem:[#allocation11_spill] sm:$0xff] %v6425_v46  ;;  %v1760_v24 = vmax.f32 %v1003_v23, 0.0  ;;  %v892_v46 = vadd.f32 %v6194_v21, %v6430_v45  ;;  %v1005_v63 = vadd.f32 %v6196_v22, %v6435_v8  ;;  %v2014_v51 = vpack.c.bf16 %v1774_v39, %v1758_v25 }
 0x1dc   : > { %v6437_v19 = vpop.f32.mrf.mxu1  ;;  %v6439_v16 = vpop.f32.mrf.mxu0  ;;  %v1001_v28 = vadd.f32 %v6170_v14, %v6435_v8  ;;  %v1017_v21 = vadd.f32 %v6246_v44, %v6397_v56  ;;  %v1013_v44 = vadd.f32 %v6226_v35, %v6397_v56  ;;  %v1757_v39 = vmax.f32 %v888_v6, 0.0  ;;  %v5515_v35 = vld [vmem:[%s8267_s5 + $0x138] sm:$0xff]  }
 0x1dd   : > { %v2016_v2 = vpack.c.bf16 %v1776_v7, %v1760_v24  ;;  %v1773_v13 = vmax.f32 %v892_v46, 0.0  ;;  %v1775_v14 = vmax.f32 %v1005_v63, 0.0  ;;  %v1806_v25 = vmax.f32 %v904_v18, 0.0 }
 0x1de   : > { %v6445_v40 = vpop.f32.mrf.mxu1  ;;  %v6447_v0 = vpop.f32.mrf.mxu0  ;;  %v1808_v46 = vmax.f32 %v1017_v21, 0.0  ;;  %v898_v6 = vadd.f32 %v6214_v32, %v6430_v45  ;;  %v1792_v18 = vmax.f32 %v1013_v44, 0.0  ;;  %v5518_v32 = vld [vmem:[%s8267_s5 + $0x170] sm:$0xff]   ;;  %v1011_v44 = vadd.f32 %v6216_v33, %v6435_v8 }
 0x1df   : > { %v5519_v33 = vld [vmem:[%s8267_s5 + $0x130] sm:$0xff]  }
 0x1e0   : > { %v6457_v23 = vpop.f32.mrf.mxu1  ;;  %v6459_v22 = vpop.f32.mrf.mxu0  ;;  %4638 = vmatmul.mubr.msk.bf16.gmra.mxu1 %vm828_vm1, %v6006_v42  ;;  %4646 = vmatmul.mubr.msk.bf16.gmra.mxu0 %vm828_vm1, %v6006_v42  ;;  %v902_v42 = vadd.f32 %v6240_v41, %v6430_v45 }
 0x1e1   : > { %8295 = vst [vmem:[#allocation12_spill] sm:$0xff] %v6457_v23  ;;  %8296 = vst [vmem:[#allocation13_spill] sm:$0xff] %v6459_v22  ;;  %3204 = vmatprep.mubr.bf16.mxu1 %v2014_v51  ;;  %3301 = vmatprep.mubr.bf16.mxu0 %v2016_v2  ;;  %v1759_v22 = vmax.f32 %v1001_v28, 0.0  ;;  %v2013_v2 = vpack.c.bf16 %v1773_v13, %v1757_v39  ;;  %v1790_v51 = vmax.f32 %v900_v43, 0.0  ;;  %v5517_v13 = vld [vmem:[%s8267_s5 + $0x1b8] sm:$0xff]  }
 0x1e2   : > { %v6469_v7 = vpop.f32.mrf.mxu1  ;;  %v6471_v24 = vpop.f32.mrf.mxu0  ;;  %v1015_v28 = vadd.f32 %v6242_v36, %v6435_v8  ;;  %v914_v43 = vadd.f32 %v6290_v59, %v6392_v11  ;;  %v5520_v36 = vld [vmem:[%s8267_s5 + $0x1f0] sm:$0xff]   ;;  %v1805_v39 = vmax.f32 %v902_v42, 0.0  ;;  %v2032_v59 = vpack.c.bf16 %v1808_v46, %v1792_v18 }
 0x1e3   : > { %v2015_v63 = vpack.c.bf16 %v1775_v14, %v1759_v22  ;;  %v1027_v22 = vadd.f32 %v6292_v60, %v6397_v56  ;;  %v2030_v14 = vpack.c.bf16 %v1806_v25, %v1790_v51  ;;  %v910_v60 = vadd.f32 %v6270_v53, %v6392_v11  ;;  %v5521_v53 = vld [vmem:[%s8267_s5 + $0x1b0] sm:$0xff]  }
 0x1e4   : > { %v6475_v23 = vpop.f32.mrf.mxu1  ;;  %v6477_v34 = vpop.f32.mrf.mxu0  ;;  %v1023_v25 = vadd.f32 %v6272_v54, %v6397_v56  ;;  %v1789_v42 = vmax.f32 %v898_v6, 0.0  ;;  %v1807_v51 = vmax.f32 %v1015_v28, 0.0  ;;  %v5522_v54 = vld [vmem:[%s8267_s5 + $0x168] sm:$0xff]   ;;  %v1838_v46 = vmax.f32 %v914_v43, 0.0 }
 0x1e5   : > { %8297 = vst [vmem:[#allocation14_spill] sm:$0xff] %v6475_v23  ;;  %8298 = vst [vmem:[#allocation15_spill] sm:$0xff] %v6477_v34  ;;  %v1791_v6 = vmax.f32 %v1011_v44, 0.0  ;;  %v1025_v43 = vadd.f32 %v6288_v58, %v6435_v8  ;;  %v5525_v58 = vld [vmem:[%s8267_s5 + $0x1a8] sm:$0xff]  }
 0x1e6   : > { %v6486_v41 = vpop.f32.mrf.mxu1  ;;  %v6488_v21 = vpop.f32.mrf.mxu0  ;;  %v2029_v18 = vpack.c.bf16 %v1805_v39, %v1789_v42  ;;  %v5528_v42 = vld [vmem:[%s8267_s5 + $0x1e0] sm:$0xff]  }
 0x1e8   : > { %v6505_v34 = vpop.f32.mrf.mxu1  ;;  %v6507_v23 = vpop.f32.mrf.mxu0  ;;  %3205 = vmatmul.mubr.bf16.vlgmr.msra.gmra.mxu1 %v2013_v2  ;;  %3302 = vmatmul.mubr.bf16.vlgmr.msra.gmra.mxu0 %v2015_v63  ;;  %v5524_v63 = vld [vmem:[%s8267_s5 + $0x1e8] sm:$0xff]  }
 0x1e9   : > { %8299 = vst [vmem:[#allocation16_spill] sm:$0xff] %v6505_v34  ;;  %8300 = vst [vmem:[#allocation17_spill] sm:$0xff] %v6507_v23  ;;  %4946 = vmatpush3.bf16.msra.mxu1 %v5515_v35  ;;  %3212 = vmatprep.mubr.bf16.mxu1 %v2030_v14  ;;  %v1840_v35 = vmax.f32 %v1027_v22, 0.0  ;;  %v1822_v14 = vmax.f32 %v910_v60, 0.0  ;;  %v912_v23 = vadd.f32 %v6286_v57, %v6430_v45  ;;  %v5523_v57 = vld [vmem:[%s8267_s5 + $0x128] sm:$0xff]  }
 0x1ea   : > { %3309 = vmatprep.mubr.bf16.mxu0 %v2032_v59  ;;  %v6516_v34 = vpop.f32.mrf.mxu1  ;;  %v6518_v2 = vpop.f32.mrf.mxu0  ;;  %5010 = vmatpush3.bf16.msra.mxu0 %v5517_v13  ;;  %v1824_v59 = vmax.f32 %v1023_v25, 0.0  ;;  %v2031_v22 = vpack.c.bf16 %v1807_v51, %v1791_v6  ;;  %v920_v51 = vadd.f32 %v6316_v4, %v6392_v11  ;;  %v5527_v4 = vld [vmem:[%s8267_s5 + $0x120] sm:$0xff]  }
 0x1eb   : > { %4947 = vmatprep.subr.bf16.mxu1 %v5518_v32  ;;  %5011 = vmatprep.subr.bf16.mxu0 %v5520_v36  ;;  %v908_v32 = vadd.f32 %v6260_v49, %v6430_v45  ;;  %v924_v36 = vadd.f32 %v6336_v12, %v6392_v11  ;;  %v1021_v49 = vadd.f32 %v6262_v52, %v6435_v8 }
 0x1ec   : > { %v6529_v28 = vpop.f32.mrf.mxu1  ;;  %v6531_v13 = vpop.f32.mrf.mxu0  ;;  %v1037_v12 = vadd.f32 %v6338_v15, %v6397_v56  ;;  %v2046_v60 = vpack.c.bf16 %v1838_v46, %v1822_v14  ;;  %v2048_v25 = vpack.c.bf16 %v1840_v35, %v1824_v59  ;;  %v1837_v15 = vmax.f32 %v912_v23, 0.0  ;;  %v5529_v23 = vld [vmem:[%s8267_s5 + $0x1a0] sm:$0xff]   ;;  %v5530_v59 = vld [vmem:[%s8267_s5 + $0x158] sm:$0xff]  }
 0x1ed   : > { %4948 = vmatpush3.bf16.msra.mxu1 %v5519_v33  ;;  %v5526_v33 = vld [vmem:[%s8267_s5 + $0x160] sm:$0xff]   ;;  %v1033_v46 = vadd.f32 %v6318_v5, %v6397_v56  ;;  %v1870_v35 = vmax.f32 %v924_v36, 0.0  ;;  %v1823_v14 = vmax.f32 %v1021_v49, 0.0  ;;  %v922_v36 = vadd.f32 %v6332_v9, %v6430_v45 }
 0x1ee   : > { %v6541_v44 = vpop.f32.mrf.mxu1  ;;  %v6543_v39 = vpop.f32.mrf.mxu0  ;;  %5012 = vmatpush3.bf16.msra.mxu0 %v5521_v53  ;;  %4949 = vmatprep.subr.bf16.mxu1 %v5522_v54  ;;  %v1839_v54 = vmax.f32 %v1025_v43, 0.0  ;;  %v1872_v5 = vmax.f32 %v1037_v12, 0.0  ;;  %v5532_v43 = vld [vmem:[%s8267_s5 + $0x1d8] sm:$0xff]  }
 0x1ef   : > { %5013 = vmatprep.subr.bf16.mxu0 %v5524_v63 }
 0x1f0   : > { %v6563_v53 = vpop.f32.mrf.mxu1  ;;  %v6565_v52 = vpop.f32.mrf.mxu0  ;;  %3213 = vmatmul.mubr.bf16.gmra.mxu1 %v2029_v18  ;;  %3310 = vmatmul.mubr.bf16.gmra.mxu0 %v2031_v22  ;;  %v1821_v18 = vmax.f32 %v908_v32, 0.0  ;;  %v1854_v22 = vmax.f32 %v920_v51, 0.0  ;;  %v2047_v12 = vpack.c.bf16 %v1839_v54, %v1823_v14 }
 0x1f1   : > { %3220 = vmatprep.mubr.bf16.mxu1 %v2046_v60  ;;  %3317 = vmatprep.mubr.bf16.mxu0 %v2048_v25  ;;  %v1856_v60 = vmax.f32 %v1033_v46, 0.0  ;;  %v918_v25 = vadd.f32 %v6306_v1, %v6430_v45  ;;  %v934_v1 = vadd.f32 %v6358_v37, %v6392_v11  ;;  %v5534_v46 = vld [vmem:[%s8267_s5 + $0x150] sm:$0xff]   ;;  %v930_v37 = vadd.f32 %v6350_v20, %v6392_v11 }
 0x1f2   : > { %v6569_v63 = vpop.f32.mrf.mxu1  ;;  %v6571_v6 = vpop.f32.mrf.mxu0  ;;  %4950 = vmatpush3.bf16.msra.mxu1 %v5523_v57  ;;  %5014 = vmatpush3.bf16.msra.mxu0 %v5525_v58  ;;  %v1035_v57 = vadd.f32 %v6334_v10, %v6435_v8  ;;  %v2045_v49 = vpack.c.bf16 %v1837_v15, %v1821_v18  ;;  %v2062_v9 = vpack.c.bf16 %v1870_v35, %v1854_v22  ;;  %v5531_v10 = vld [vmem:[%s8267_s5 + $0x118] sm:$0xff]   ;;  %v5536_v35 = vld [vmem:[%s8267_s5 + $0x1d0] sm:$0xff]  }
 0x1f3   : > { %4951 = vmatprep.subr.bf16.mxu1 %v5526_v33  ;;  %5015 = vmatprep.subr.bf16.mxu0 %v5528_v42  ;;  %v1031_v33 = vadd.f32 %v6308_v3, %v6435_v8  ;;  %v5533_v15 = vld [vmem:[%s8267_s5 + $0x198] sm:$0xff]   ;;  %v1047_v3 = vadd.f32 %v6360_v38, %v6397_v56  ;;  %v2064_v54 = vpack.c.bf16 %v1872_v5, %v1856_v60  ;;  %v1853_v5 = vmax.f32 %v918_v25, 0.0  ;;  %v5537_v20 = vld [vmem:[%s8267_s5 + $0x190] sm:$0xff]  }
 0x1f4   : > { %v6589_v32 = vpop.f32.mrf.mxu1  ;;  %v6591_v58 = vpop.f32.mrf.mxu0  ;;  %v1043_v38 = vadd.f32 %v6352_v27, %v6397_v56 }
 0x1f5   : > { %v1904_v27 = vmax.f32 %v1047_v3, 0.0  ;;  %v1045_v3 = vadd.f32 %v6356_v30, %v6435_v8 }
 0x1f6   : > { %v6597_v42 = vpop.f32.mrf.mxu1  ;;  %v6599_v51 = vpop.f32.mrf.mxu0  ;;  %4952 = vmatpush3.bf16.msra.mxu1 %v5527_v4  ;;  %5016 = vmatpush3.bf16.msra.mxu0 %v5529_v23  ;;  %v1869_v4 = vmax.f32 %v922_v36, 0.0  ;;  %v1871_v23 = vmax.f32 %v1035_v57, 0.0  ;;  %v5535_v36 = vld [vmem:[%s8267_s5 + $0x110] sm:$0xff]   ;;  %v1902_v57 = vmax.f32 %v934_v1, 0.0  ;;  %v932_v1 = vadd.f32 %v6354_v29, %v6430_v45  ;;  %v5539_v29 = vld [vmem:[%s8267_s5 + $0x108] sm:$0xff]  }
 0x1f7   : > { %4953 = vmatprep.subr.bf16.mxu1 %v5530_v59  ;;  %5017 = vmatprep.subr.bf16.mxu0 %v5532_v43  ;;  %v1855_v59 = vmax.f32 %v1031_v33, 0.0 }
 0x1f8   : > { %v6617_v18 = vpop.f32.mrf.mxu1  ;;  %v6619_v14 = vpop.f32.mrf.mxu0  ;;  %3221 = vmatmul.mubr.bf16.gmra.mxu1 %v2045_v49  ;;  %3318 = vmatmul.mubr.bf16.gmra.mxu0 %v2047_v12  ;;  %v5538_v49 = vld [vmem:[%s8267_s5 + $0x148] sm:$0xff]   ;;  %v2061_v60 = vpack.c.bf16 %v1869_v4, %v1853_v5  ;;  %v940_v5 = vadd.f32 %v6376_v47, %v6392_v11  ;;  %v5543_v47 = vld [vmem:[%s8267_s5 + $0x100] sm:$0xff]  }
 0x1f9   : > { %3228 = vmatprep.mubr.bf16.mxu1 %v2062_v9  ;;  %3325 = vmatprep.mubr.bf16.mxu0 %v2064_v54  ;;  %v5540_v12 = vld [vmem:[%s8267_s5 + $0x1c8] sm:$0xff]   ;;  %v2063_v25 = vpack.c.bf16 %v1871_v23, %v1855_v59  ;;  %v928_v54 = vadd.f32 %v6340_v17, %v6430_v45 }
 0x1fa   : > { %v6625_v43 = vpop.f32.mrf.mxu1  ;;  %v6627_v22 = vpop.f32.mrf.mxu0  ;;  %4954 = vmatpush3.bf16.msra.mxu1 %v5531_v10  ;;  %5018 = vmatpush3.bf16.msra.mxu0 %v5533_v15  ;;  %v1886_v10 = vmax.f32 %v930_v37, 0.0  ;;  %v1888_v15 = vmax.f32 %v1043_v38, 0.0  ;;  %v5541_v17 = vld [vmem:[%s8267_s5 + $0x188] sm:$0xff]   ;;  %v5544_v38 = vld [vmem:[%s8267_s5 + $0x1c0] sm:$0xff]  }
 0x1fb   : > { %4955 = vmatprep.subr.bf16.mxu1 %v5534_v46  ;;  %5019 = vmatprep.subr.bf16.mxu0 %v5536_v35  ;;  %v1041_v46 = vadd.f32 %v6342_v50, %v6435_v8  ;;  %v944_v35 = vadd.f32 %v6399_v61, %v6392_v11  ;;  %v1057_v50 = vadd.f32 %v6401_v62, %v6397_v56  ;;  %v5542_v61 = vld [vmem:[%s8267_s5 + $0x140] sm:$0xff]   ;;  %v1901_v62 = vmax.f32 %v932_v1, 0.0  ;;  %v5548_v1 = vld [vmem:[%s8267_s5 + $0x2f8] sm:$0xff]  }
 0x1fc   : > { %v6641_v33 = vpop.f32.mrf.mxu1  ;;  %v6643_v9 = vpop.f32.mrf.mxu0  ;;  %v2078_v30 = vpack.c.bf16 %v1902_v57, %v1886_v10  ;;  %v2080_v37 = vpack.c.bf16 %v1904_v27, %v1888_v15  ;;  %v1053_v57 = vadd.f32 %v6378_v48, %v6397_v56  ;;  %v5546_v15 = vld [vmem:[%s8267_s5 + $0x278] sm:$0xff]  }
 0x1fd   : > { %v1934_v27 = vmax.f32 %v944_v35, 0.0  ;;  %v1887_v10 = vmax.f32 %v1041_v46, 0.0  ;;  %v1936_v48 = vmax.f32 %v1057_v50, 0.0  ;;  %v942_v46 = vadd.f32 %v6385_v55, %v6430_v45 }
 0x1fe   : > { %v6655_v4 = vpop.f32.mrf.mxu1  ;;  %v6657_v23 = vpop.f32.mrf.mxu0  ;;  %4956 = vmatpush3.bf16.msra.mxu1 %v5535_v36  ;;  %5020 = vmatpush3.bf16.msra.mxu0 %v5537_v20  ;;  %v1903_v20 = vmax.f32 %v1045_v3, 0.0  ;;  %v1918_v3 = vmax.f32 %v940_v5, 0.0  ;;  %v1055_v50 = vadd.f32 %v6387_v31, %v6435_v8  ;;  %v954_v5 = vadd.f32 %v6445_v40, %v6392_v11  ;;  %v8301_v31 = vld [vmem:[#allocation6_spill] sm:$0xff] }
 0x1ff   : > { %4957 = vmatprep.subr.bf16.mxu1 %v5538_v49  ;;  %5021 = vmatprep.subr.bf16.mxu0 %v5540_v12  ;;  %v938_v55 = vadd.f32 %v6364_v26, %v6430_v45  ;;  %v8304_v40 = vld [vmem:[#allocation10_spill] sm:$0xff] }
 0x200   : > { %v6675_v59 = vpop.f32.mrf.mxu1  ;;  %v6677_v36 = vpop.f32.mrf.mxu0  ;;  %3229 = vmatmul.mubr.bf16.gmra.mxu1 %v2061_v60  ;;  %3326 = vmatmul.mubr.bf16.gmra.mxu0 %v2063_v25  ;;  %v5545_v60 = vld [vmem:[%s8267_s5 + $0x180] sm:$0xff]   ;;  %v1885_v25 = vmax.f32 %v928_v54, 0.0  ;;  %v1920_v54 = vmax.f32 %v1053_v57, 0.0  ;;  %v1051_v57 = vadd.f32 %v8301_v31, %v6435_v8 }
 0x201   : > { %3236 = vmatprep.mubr.bf16.mxu1 %v2078_v30  ;;  %3333 = vmatprep.mubr.bf16.mxu0 %v2080_v37  ;;  %v2079_v30 = vpack.c.bf16 %v1903_v20, %v1887_v10  ;;  %v1933_v10 = vmax.f32 %v942_v46, 0.0  ;;  %v952_v46 = vadd.f32 %v6437_v19, %v6430_v45  ;;  %v8307_v19 = vld [vmem:[#allocation9_spill] sm:$0xff] }
 0x202   : > { %v6681_v49 = vpop.f32.mrf.mxu1  ;;  %v6683_v12 = vpop.f32.mrf.mxu0  ;;  %4958 = vmatpush3.bf16.msra.mxu1 %v5539_v29  ;;  %5022 = vmatpush3.bf16.msra.mxu0 %v5541_v17  ;;  %v2077_v17 = vpack.c.bf16 %v1901_v62, %v1885_v25  ;;  %v1067_v62 = vadd.f32 %v6447_v0, %v6397_v56  ;;  %v2096_v20 = vpack.c.bf16 %v1936_v48, %v1920_v54  ;;  %v8305_v0 = vld [vmem:[#allocation11_spill] sm:$0xff]  ;;  %v1935_v48 = vmax.f32 %v1055_v50, 0.0 }
 0x203   : > { %4959 = vmatprep.subr.bf16.mxu1 %v5542_v61  ;;  %5023 = vmatprep.subr.bf16.mxu0 %v5544_v38  ;;  %v2094_v38 = vpack.c.bf16 %v1934_v27, %v1918_v3  ;;  %v1917_v54 = vmax.f32 %v938_v55, 0.0  ;;  %v1919_v31 = vmax.f32 %v1051_v57, 0.0  ;;  %v1065_v50 = vadd.f32 %v6439_v16, %v6435_v8 }
 0x204   : > { %v6697_v35 = vpop.f32.mrf.mxu1  ;;  %v6699_v29 = vpop.f32.mrf.mxu0  ;;  %v1968_v3 = vmax.f32 %v1067_v62, 0.0  ;;  %v964_v62 = vadd.f32 %v6486_v41, %v6392_v11  ;;  %v960_v41 = vadd.f32 %v6469_v7, %v6392_v11 }
 0x206   : > { %v6705_v37 = vpop.f32.mrf.mxu1  ;;  %v6707_v61 = vpop.f32.mrf.mxu0  ;;  %4960 = vmatpush3.bf16.msra.mxu1 %v5543_v47  ;;  %5024 = vmatpush3.bf16.msra.mxu0 %v5545_v60  ;;  %v950_v47 = vadd.f32 %v8304_v40, %v6392_v11  ;;  %v1063_v60 = vadd.f32 %v8305_v0, %v6397_v56  ;;  %v2095_v0 = vpack.c.bf16 %v1935_v48, %v1919_v31  ;;  %v1967_v31 = vmax.f32 %v1065_v50, 0.0  ;;  %v8317_v11 = vld [vmem:[#allocation15_spill] sm:$0xff] }
 0x207   : > { %5073 = vmatprep.subr.bf16.mxu1 %v5546_v15  ;;  %5137 = vmatprep.subr.bf16.mxu0 %v5548_v1  ;;  %v1966_v1 = vmax.f32 %v954_v5, 0.0 }
 0x208   : > { %v6717_v25 = vpop.f32.mrf.mxu1  ;;  %v6719_v27 = vpop.f32.mrf.mxu0  ;;  %3237 = vmatmul.mubr.bf16.gmra.mxu1 %v2077_v17  ;;  %3334 = vmatmul.mubr.bf16.gmra.mxu0 %v2079_v30  ;;  %v1950_v40 = vmax.f32 %v950_v47, 0.0  ;;  %v8306_v47 = vld [vmem:[#allocation8_spill] sm:$0xff] }
 0x209   : > { %8302 = vst [vmem:[#allocation6_spill] sm:$0xff] %v6717_v25  ;;  %8303 = vst [vmem:[#allocation18_spill] sm:$0xff] %v6719_v27  ;;  %3244 = vmatprep.mubr.bf16.mxu1 %v2094_v38  ;;  %3341 = vmatprep.mubr.bf16.mxu0 %v2096_v20  ;;  %v1952_v27 = vmax.f32 %v1063_v60, 0.0  ;;  %v2093_v25 = vpack.c.bf16 %v1933_v10, %v1917_v54  ;;  %v1077_v20 = vadd.f32 %v6488_v21, %v6397_v56 }
 0x20a   : > { %v6725_v26 = vpop.f32.mrf.mxu1  ;;  %v6727_v15 = vpop.f32.mrf.mxu0  ;;  %v2110_v55 = vpack.c.bf16 %v1966_v1, %v1950_v40  ;;  %v948_v60 = vadd.f32 %v8306_v47, %v6430_v45  ;;  %v1061_v10 = vadd.f32 %v8307_v19, %v6435_v8  ;;  %v1073_v21 = vadd.f32 %v6471_v24, %v6397_v56  ;;  %v8310_v1 = vld [vmem:[#allocation5_spill] sm:$0xff] }
 0x20b   : > { %v2112_v57 = vpack.c.bf16 %v1968_v3, %v1952_v27  ;;  %v8279_v27 = vsub.s32 5, %v8310_v1  ;;  %v1965_v54 = vmax.f32 %v952_v46, 0.0  ;;  %v1982_v24 = vmax.f32 %v960_v41, 0.0  ;;  %v8314_v46 = vld [vmem:[#allocation7_spill] sm:$0xff] }
 0x20c   : > { %v6729_v17 = vpop.f32.mrf.mxu1  ;;  %v6731_v30 = vpop.f32.mrf.mxu0  ;;  %v1949_v19 = vmax.f32 %v948_v60, 0.0  ;;  %v1984_v3 = vmax.f32 %v1073_v21, 0.0  ;;  %v8316_v60 = vld [vmem:[#allocation14_spill] sm:$0xff] }
 0x20d   : > { %v6771_v50 = vrot.slane %v8314_v46, %v8279_v27 }
 0x20e   : > { %v6737_v38 = vpop.f32.mrf.mxu1  ;;  %v6739_v5 = vpop.f32.mrf.mxu0 }
 0x20f   : > { %v1120_v27 = vadd.f32 %v6541_v44, %v6771_v50  ;;  %v1116_v44 = vadd.f32 %v6516_v34, %v6771_v50 }
 0x210   : > { %v6749_v48 = vpop.f32.mrf.mxu1  ;;  %v6751_v16 = vpop.f32.mrf.mxu0  ;;  %3245 = vmatmul.mubr.bf16.gmra.mxu1 %v2093_v25  ;;  %3342 = vmatmul.mubr.bf16.gmra.mxu0 %v2095_v0  ;;  %v1998_v25 = vmax.f32 %v964_v62, 0.0  ;;  %v2000_v0 = vmax.f32 %v1077_v20, 0.0  ;;  %v2109_v20 = vpack.c.bf16 %v1965_v54, %v1949_v19 }
 0x211   : > { %8308 = vst [vmem:[#allocation10_spill] sm:$0xff] %v6749_v48  ;;  %8309 = vst [vmem:[#allocation11_spill] sm:$0xff] %v6751_v16  ;;  %3252 = vmatprep.mubr.bf16.mxu1 %v2110_v55  ;;  %3349 = vmatprep.mubr.bf16.mxu0 %v2112_v57  ;;  %v1951_v16 = vmax.f32 %v1061_v10, 0.0  ;;  %v8315_v55 = vsub.s32 7, %v8310_v1  ;;  %v962_v10 = vadd.f32 %v8316_v60, %v6430_v45 }
 0x212   : > { %v6759_v40 = vpop.f32.mrf.mxu1  ;;  %v6761_v47 = vpop.f32.mrf.mxu0  ;;  %v1075_v48 = vadd.f32 %v8317_v11, %v6435_v8  ;;  %v8280_v11 = vsub.s32 6, %v8310_v1 }
 0x213   : > { %8311 = vst [vmem:[#allocation8_spill] sm:$0xff] %v6761_v47  ;;  %v6776_v62 = vrot.slane %v8314_v46, %v8315_v55  ;;  %v2111_v57 = vpack.c.bf16 %v1967_v31, %v1951_v16  ;;  %v2126_v55 = vpack.c.bf16 %v1998_v25, %v1982_v24  ;;  %v8318_v16 = vld [vmem:[#allocation12_spill] sm:$0xff]  ;;  %v8319_v31 = vld [vmem:[#allocation13_spill] sm:$0xff] }
 0x214   : > { %v6764_v7 = vpop.f32.mrf.mxu1  ;;  %v6766_v56 = vpop.f32.mrf.mxu0  ;;  %v958_v54 = vadd.f32 %v8318_v16, %v6430_v45  ;;  %v1071_v19 = vadd.f32 %v8319_v31, %v6435_v8  ;;  %v1997_v45 = vmax.f32 %v962_v10, 0.0  ;;  %v1762_v10 = vmax.f32 %v1116_v44, 0.0 }
 0x215   : > { %8312 = vst [vmem:[#allocation9_spill] sm:$0xff] %v6764_v7  ;;  %8313 = vst [vmem:[#allocation19_spill] sm:$0xff] %v6766_v56  ;;  %v1233_v56 = vadd.f32 %v6543_v39, %v6776_v62  ;;  %v2128_v7 = vpack.c.bf16 %v2000_v0, %v1984_v3  ;;  %v1229_v39 = vadd.f32 %v6518_v2, %v6776_v62  ;;  %v1999_v3 = vmax.f32 %v1075_v48, 0.0 }
 0x216   : > { %v6782_v41 = vpop.f32.mrf.mxu1  ;;  %v6784_v21 = vpop.f32.mrf.mxu0  ;;  %v8321_v0 = vsub.s32 4, %v8310_v1  ;;  %v1981_v16 = vmax.f32 %v958_v54, 0.0  ;;  %v1983_v34 = vmax.f32 %v1071_v19, 0.0  ;;  %v6815_v2 = vrot.slane %v8314_v46, %v8280_v11  ;;  %v8323_v1 = vld [vmem:[#allocation17_spill] sm:$0xff] }
 0x217   : > { %v1130_v11 = vadd.f32 %v6597_v42, %v6771_v50 }
 0x218   : > { %v6795_v60 = vpop.f32.mrf.mxu1  ;;  %v6797_v47 = vpop.f32.mrf.mxu0  ;;  %3253 = vmatmul.mubr.bf16.gmra.mxu1 %v2109_v20  ;;  %3350 = vmatmul.mubr.bf16.gmra.mxu0 %v2111_v57  ;;  %v6810_v24 = vrot.slane %v8314_v46, %v8321_v0  ;;  %v1778_v20 = vmax.f32 %v1120_v27, 0.0  ;;  %v1780_v57 = vmax.f32 %v1233_v56, 0.0  ;;  %v2125_v0 = vpack.c.bf16 %v1997_v45, %v1981_v16  ;;  %v8322_v46 = vld [vmem:[#allocation16_spill] sm:$0xff] }
 0x219   : > { %8320 = vst [vmem:[#allocation7_spill] sm:$0xff] %v6797_v47  ;;  %3260 = vmatprep.mubr.bf16.mxu1 %v2126_v55  ;;  %3357 = vmatprep.mubr.bf16.mxu0 %v2128_v7  ;;  %v1764_v55 = vmax.f32 %v1229_v39, 0.0  ;;  %v2127_v47 = vpack.c.bf16 %v1999_v3, %v1983_v34  ;;  %v1231_v27 = vadd.f32 %v6531_v13, %v6815_v2 }
 0x21a   : > { %v6803_v25 = vpop.f32.mrf.mxu1  ;;  %v6805_v8 = vpop.f32.mrf.mxu0  ;;  %v1118_v31 = vadd.f32 %v6529_v28, %v6810_v24  ;;  %v1114_v19 = vadd.f32 %v8322_v46, %v6810_v24  ;;  %v2018_v44 = vpack.c.bf16 %v1778_v20, %v1762_v10  ;;  %v1227_v28 = vadd.f32 %v8323_v1, %v6815_v2 }
 0x21b   : > { %v2020_v39 = vpack.c.bf16 %v1780_v57, %v1764_v55  ;;  %v1243_v45 = vadd.f32 %v6599_v51, %v6776_v62  ;;  %v1126_v34 = vadd.f32 %v6569_v63, %v6771_v50  ;;  %v1779_v42 = vmax.f32 %v1231_v27, 0.0 }
 0x21c   : > { %v6817_v7 = vpop.f32.mrf.mxu1  ;;  %v6819_v48 = vpop.f32.mrf.mxu0  ;;  %v1777_v16 = vmax.f32 %v1118_v31, 0.0  ;;  %v1239_v20 = vadd.f32 %v6571_v6, %v6776_v62  ;;  %v1761_v51 = vmax.f32 %v1114_v19, 0.0  ;;  %v1810_v10 = vmax.f32 %v1130_v11, 0.0  ;;  %v5547_v6 = vld [vmem:[%s8267_s5 + $0x238] sm:$0xff]  }
 0x21d   : > { %v1763_v55 = vmax.f32 %v1227_v28, 0.0  ;;  %v1812_v31 = vmax.f32 %v1243_v45, 0.0  ;;  %v1794_v27 = vmax.f32 %v1126_v34, 0.0  ;;  %v1124_v19 = vadd.f32 %v6563_v53, %v6810_v24  ;;  %v5549_v45 = vld [vmem:[%s8267_s5 + $0x2b8] sm:$0xff]   ;;  %v5550_v53 = vld [vmem:[%s8267_s5 + $0x270] sm:$0xff]  }
 0x21e   : > { %v6825_v56 = vpop.f32.mrf.mxu1  ;;  %v6827_v54 = vpop.f32.mrf.mxu0  ;;  %v2017_v46 = vpack.c.bf16 %v1777_v16, %v1761_v51  ;;  %v1796_v11 = vmax.f32 %v1239_v20, 0.0  ;;  %v1140_v16 = vadd.f32 %v6655_v4, %v6771_v50  ;;  %v1253_v34 = vadd.f32 %v6657_v23, %v6776_v62 }
 0x21f   : > { %v1237_v20 = vadd.f32 %v6565_v52, %v6815_v2  ;;  %v1136_v23 = vadd.f32 %v6625_v43, %v6771_v50  ;;  %v5551_v52 = vld [vmem:[%s8267_s5 + $0x230] sm:$0xff]  }
 0x220   : > { %v6837_v3 = vpop.f32.mrf.mxu1  ;;  %v6839_v13 = vpop.f32.mrf.mxu0  ;;  %3261 = vmatmul.mubr.bf16.gmra.mxu1 %v2125_v0  ;;  %3358 = vmatmul.mubr.bf16.gmra.mxu0 %v2127_v47  ;;  %v1128_v47 = vadd.f32 %v6589_v32, %v6810_v24  ;;  %v2036_v4 = vpack.c.bf16 %v1812_v31, %v1796_v11  ;;  %v5553_v43 = vld [vmem:[%s8267_s5 + $0x2b0] sm:$0xff]   ;;  %v1842_v31 = vmax.f32 %v1140_v16, 0.0  ;;  %v1251_v16 = vadd.f32 %v6643_v9, %v6815_v2  ;;  %v5557_v9 = vld [vmem:[%s8267_s5 + $0x2a8] sm:$0xff]  }
 0x221   : > { %8324 = vst [vmem:[#allocation14_spill] sm:$0xff] %v6839_v13  ;;  %3398 = vmatprep.mubr.bf16.mxu1 %v2018_v44  ;;  %3495 = vmatprep.mubr.bf16.mxu0 %v2020_v39  ;;  %v2019_v44 = vpack.c.bf16 %v1779_v42, %v1763_v55  ;;  %v1241_v39 = vadd.f32 %v6591_v58, %v6815_v2  ;;  %v5552_v58 = vld [vmem:[%s8267_s5 + $0x2f0] sm:$0xff]  }
 0x222   : > { %v6845_v1 = vpop.f32.mrf.mxu1  ;;  %v6847_v57 = vpop.f32.mrf.mxu0  ;;  %v2034_v42 = vpack.c.bf16 %v1810_v10, %v1794_v27  ;;  %v1809_v51 = vmax.f32 %v1128_v47, 0.0  ;;  %v1249_v10 = vadd.f32 %v6627_v22, %v6776_v62  ;;  %v1793_v47 = vmax.f32 %v1124_v19, 0.0  ;;  %v5554_v22 = vld [vmem:[%s8267_s5 + $0x268] sm:$0xff]  }
 0x223   : > { %v1811_v27 = vmax.f32 %v1241_v39, 0.0  ;;  %v1795_v19 = vmax.f32 %v1237_v20, 0.0 }
 0x224   : > { %v6851_v0 = vpop.f32.mrf.mxu1  ;;  %v6853_v63 = vpop.f32.mrf.mxu0  ;;  %v2033_v11 = vpack.c.bf16 %v1809_v51, %v1793_v47  ;;  %v5560_v47 = vld [vmem:[%s8267_s5 + $0x2e0] sm:$0xff]  }
 0x226   : > { %v6862_v32 = vpop.f32.mrf.mxu1  ;;  %v6864_v28 = vpop.f32.mrf.mxu0 }
 0x228   : > { %v6881_v55 = vpop.f32.mrf.mxu1  ;;  %v6883_v13 = vpop.f32.mrf.mxu0  ;;  %3399 = vmatmul.mubr.bf16.vlgmr.msra.gmra.mxu1 %v2017_v46  ;;  %3496 = vmatmul.mubr.bf16.vlgmr.msra.gmra.mxu0 %v2019_v44  ;;  %v5556_v44 = vld [vmem:[%s8267_s5 + $0x2e8] sm:$0xff]  }
 0x229   : > { %8325 = vst [vmem:[#allocation15_spill] sm:$0xff] %v6881_v55  ;;  %8326 = vst [vmem:[#allocation12_spill] sm:$0xff] %v6883_v13  ;;  %5074 = vmatpush3.bf16.msra.mxu1 %v5547_v6  ;;  %3406 = vmatprep.mubr.bf16.mxu1 %v2034_v42  ;;  %v1844_v6 = vmax.f32 %v1253_v34, 0.0  ;;  %v1826_v42 = vmax.f32 %v1136_v23, 0.0  ;;  %v1138_v13 = vadd.f32 %v6641_v33, %v6810_v24  ;;  %v5555_v33 = vld [vmem:[%s8267_s5 + $0x228] sm:$0xff]  }
 0x22a   : > { %3503 = vmatprep.mubr.bf16.mxu0 %v2036_v4  ;;  %v6892_v55 = vpop.f32.mrf.mxu1  ;;  %v6894_v46 = vpop.f32.mrf.mxu0  ;;  %5138 = vmatpush3.bf16.msra.mxu0 %v5549_v45  ;;  %v1828_v4 = vmax.f32 %v1249_v10, 0.0  ;;  %v2035_v34 = vpack.c.bf16 %v1811_v27, %v1795_v19  ;;  %v1146_v27 = vadd.f32 %v6681_v49, %v6771_v50  ;;  %v5559_v49 = vld [vmem:[%s8267_s5 + $0x220] sm:$0xff]  }
 0x22b   : > { %5075 = vmatprep.subr.bf16.mxu1 %v5550_v53  ;;  %5139 = vmatprep.subr.bf16.mxu0 %v5552_v58  ;;  %v1134_v53 = vadd.f32 %v6617_v18, %v6810_v24  ;;  %v1150_v58 = vadd.f32 %v6705_v37, %v6771_v50  ;;  %v1247_v18 = vadd.f32 %v6619_v14, %v6815_v2 }
 0x22c   : > { %v6905_v39 = vpop.f32.mrf.mxu1  ;;  %v6907_v45 = vpop.f32.mrf.mxu0  ;;  %v1263_v37 = vadd.f32 %v6707_v61, %v6776_v62  ;;  %v2050_v23 = vpack.c.bf16 %v1842_v31, %v1826_v42  ;;  %v2052_v10 = vpack.c.bf16 %v1844_v6, %v1828_v4  ;;  %v1841_v61 = vmax.f32 %v1138_v13, 0.0  ;;  %v5561_v13 = vld [vmem:[%s8267_s5 + $0x2a0] sm:$0xff]   ;;  %v5562_v4 = vld [vmem:[%s8267_s5 + $0x258] sm:$0xff]  }
 0x22d   : > { %5076 = vmatpush3.bf16.msra.mxu1 %v5551_v52  ;;  %v5558_v52 = vld [vmem:[%s8267_s5 + $0x260] sm:$0xff]   ;;  %v1259_v31 = vadd.f32 %v6683_v12, %v6776_v62  ;;  %v1874_v6 = vmax.f32 %v1150_v58, 0.0  ;;  %v1827_v42 = vmax.f32 %v1247_v18, 0.0  ;;  %v1148_v58 = vadd.f32 %v6697_v35, %v6810_v24 }
 0x22e   : > { %v6917_v20 = vpop.f32.mrf.mxu1  ;;  %v6919_v51 = vpop.f32.mrf.mxu0  ;;  %5140 = vmatpush3.bf16.msra.mxu0 %v5553_v43  ;;  %5077 = vmatprep.subr.bf16.mxu1 %v5554_v22  ;;  %v1843_v22 = vmax.f32 %v1251_v16, 0.0  ;;  %v1876_v12 = vmax.f32 %v1263_v37, 0.0  ;;  %v5564_v16 = vld [vmem:[%s8267_s5 + $0x2d8] sm:$0xff]  }
 0x22f   : > { %5141 = vmatprep.subr.bf16.mxu0 %v5556_v44 }
 0x230   : > { %v6939_v43 = vpop.f32.mrf.mxu1  ;;  %v6941_v14 = vpop.f32.mrf.mxu0  ;;  %3407 = vmatmul.mubr.bf16.gmra.mxu1 %v2033_v11  ;;  %3504 = vmatmul.mubr.bf16.gmra.mxu0 %v2035_v34  ;;  %v1825_v11 = vmax.f32 %v1134_v53, 0.0  ;;  %v1858_v34 = vmax.f32 %v1146_v27, 0.0  ;;  %v2051_v37 = vpack.c.bf16 %v1843_v22, %v1827_v42 }
 0x231   : > { %3414 = vmatprep.mubr.bf16.mxu1 %v2050_v23  ;;  %3511 = vmatprep.mubr.bf16.mxu0 %v2052_v10  ;;  %v1860_v23 = vmax.f32 %v1259_v31, 0.0  ;;  %v1144_v10 = vadd.f32 %v6675_v59, %v6810_v24  ;;  %v1160_v59 = vadd.f32 %v6737_v38, %v6771_v50  ;;  %v5566_v31 = vld [vmem:[%s8267_s5 + $0x250] sm:$0xff]   ;;  %v1156_v38 = vadd.f32 %v6725_v26, %v6771_v50 }
 0x232   : > { %v6945_v44 = vpop.f32.mrf.mxu1  ;;  %v6947_v19 = vpop.f32.mrf.mxu0  ;;  %5078 = vmatpush3.bf16.msra.mxu1 %v5555_v33  ;;  %5142 = vmatpush3.bf16.msra.mxu0 %v5557_v9  ;;  %v1261_v33 = vadd.f32 %v6699_v29, %v6815_v2  ;;  %v2049_v18 = vpack.c.bf16 %v1841_v61, %v1825_v11  ;;  %v2066_v35 = vpack.c.bf16 %v1874_v6, %v1858_v34  ;;  %v5563_v29 = vld [vmem:[%s8267_s5 + $0x218] sm:$0xff]   ;;  %v5568_v6 = vld [vmem:[%s8267_s5 + $0x2d0] sm:$0xff]  }
 0x233   : > { %5079 = vmatprep.subr.bf16.mxu1 %v5558_v52  ;;  %5143 = vmatprep.subr.bf16.mxu0 %v5560_v47  ;;  %v1257_v52 = vadd.f32 %v6677_v36, %v6815_v2  ;;  %v5565_v61 = vld [vmem:[%s8267_s5 + $0x298] sm:$0xff]   ;;  %v1273_v36 = vadd.f32 %v6739_v5, %v6776_v62  ;;  %v2068_v22 = vpack.c.bf16 %v1876_v12, %v1860_v23  ;;  %v1857_v12 = vmax.f32 %v1144_v10, 0.0  ;;  %v5569_v26 = vld [vmem:[%s8267_s5 + $0x290] sm:$0xff]  }
 0x234   : > { %v6965_v53 = vpop.f32.mrf.mxu1  ;;  %v6967_v9 = vpop.f32.mrf.mxu0  ;;  %v1269_v5 = vadd.f32 %v6727_v15, %v6776_v62 }
 0x235   : > { %v1908_v15 = vmax.f32 %v1273_v36, 0.0  ;;  %v1271_v36 = vadd.f32 %v6731_v30, %v6815_v2  ;;  %v5573_v30 = vld [vmem:[%s8267_s5 + $0x288] sm:$0xff]  }
 0x236   : > { %v6973_v47 = vpop.f32.mrf.mxu1  ;;  %v6975_v27 = vpop.f32.mrf.mxu0  ;;  %5080 = vmatpush3.bf16.msra.mxu1 %v5559_v49  ;;  %5144 = vmatpush3.bf16.msra.mxu0 %v5561_v13  ;;  %v1873_v49 = vmax.f32 %v1148_v58, 0.0  ;;  %v1875_v13 = vmax.f32 %v1261_v33, 0.0  ;;  %v5567_v58 = vld [vmem:[%s8267_s5 + $0x210] sm:$0xff]   ;;  %v1906_v33 = vmax.f32 %v1160_v59, 0.0  ;;  %v1158_v59 = vadd.f32 %v6729_v17, %v6810_v24  ;;  %v5571_v17 = vld [vmem:[%s8267_s5 + $0x208] sm:$0xff]  }
 0x237   : > { %5081 = vmatprep.subr.bf16.mxu1 %v5562_v4  ;;  %5145 = vmatprep.subr.bf16.mxu0 %v5564_v16  ;;  %v1859_v4 = vmax.f32 %v1257_v52, 0.0 }
 0x238   : > { %v6993_v11 = vpop.f32.mrf.mxu1  ;;  %v6995_v42 = vpop.f32.mrf.mxu0  ;;  %3415 = vmatmul.mubr.bf16.gmra.mxu1 %v2049_v18  ;;  %3512 = vmatmul.mubr.bf16.gmra.mxu0 %v2051_v37  ;;  %v5570_v18 = vld [vmem:[%s8267_s5 + $0x248] sm:$0xff]   ;;  %v2065_v23 = vpack.c.bf16 %v1873_v49, %v1857_v12  ;;  %v1170_v49 = vadd.f32 %v6782_v41, %v6771_v50  ;;  %v5574_v41 = vld [vmem:[%s8267_s5 + $0x240] sm:$0xff]  }
 0x239   : > { %8327 = vst [vmem:[#allocation13_spill] sm:$0xff] %v6995_v42  ;;  %3422 = vmatprep.mubr.bf16.mxu1 %v2066_v35  ;;  %3519 = vmatprep.mubr.bf16.mxu0 %v2068_v22  ;;  %v5572_v37 = vld [vmem:[%s8267_s5 + $0x2c8] sm:$0xff]   ;;  %v2067_v10 = vpack.c.bf16 %v1875_v13, %v1859_v4 }
 0x23a   : > { %v7001_v16 = vpop.f32.mrf.mxu1  ;;  %v7003_v34 = vpop.f32.mrf.mxu0  ;;  %5082 = vmatpush3.bf16.msra.mxu1 %v5563_v29  ;;  %5146 = vmatpush3.bf16.msra.mxu0 %v5565_v61  ;;  %v1890_v29 = vmax.f32 %v1156_v38, 0.0  ;;  %v1892_v61 = vmax.f32 %v1269_v5, 0.0  ;;  %v8328_v22 = vld [vmem:[#allocation6_spill] sm:$0xff]  ;;  %v1283_v38 = vadd.f32 %v6784_v21, %v6776_v62  ;;  %v1905_v21 = vmax.f32 %v1158_v59, 0.0 }
 0x23b   : > { %5083 = vmatprep.subr.bf16.mxu1 %v5566_v31  ;;  %5147 = vmatprep.subr.bf16.mxu0 %v5568_v6  ;;  %v1154_v31 = vadd.f32 %v8328_v22, %v6810_v24  ;;  %v8329_v6 = vld [vmem:[#allocation18_spill] sm:$0xff] }
 0x23c   : > { %v7017_v52 = vpop.f32.mrf.mxu1  ;;  %v7019_v35 = vpop.f32.mrf.mxu0  ;;  %v1267_v42 = vadd.f32 %v8329_v6, %v6815_v2  ;;  %v2082_v5 = vpack.c.bf16 %v1906_v33, %v1890_v29  ;;  %v2084_v4 = vpack.c.bf16 %v1908_v15, %v1892_v61  ;;  %v1907_v33 = vmax.f32 %v1271_v36, 0.0  ;;  %v8332_v15 = vld [vmem:[#allocation8_spill] sm:$0xff] }
 0x23d   : > { %v1940_v36 = vmax.f32 %v1283_v38, 0.0 }
 0x23e   : > { %v7031_v13 = vpop.f32.mrf.mxu1  ;;  %v7033_v12 = vpop.f32.mrf.mxu0  ;;  %5084 = vmatpush3.bf16.msra.mxu1 %v5567_v58  ;;  %5148 = vmatpush3.bf16.msra.mxu0 %v5569_v26  ;;  %v5576_v58 = vld [vmem:[%s8267_s5 + $0x2c0] sm:$0xff]   ;;  %v1166_v26 = vadd.f32 %v6759_v40, %v6771_v50  ;;  %v1891_v59 = vmax.f32 %v1267_v42, 0.0 }
 0x23f   : > { %5085 = vmatprep.subr.bf16.mxu1 %v5570_v18  ;;  %5149 = vmatprep.subr.bf16.mxu0 %v5572_v37  ;;  %v1279_v18 = vadd.f32 %v8332_v15, %v6776_v62  ;;  %v1938_v37 = vmax.f32 %v1170_v49, 0.0  ;;  %v5575_v40 = vld [vmem:[%s8267_s5 + $0x200] sm:$0xff]   ;;  %v5578_v49 = vld [vmem:[%s8267_s5 + $0x378] sm:$0xff]  }
 0x240   : > { %v7051_v22 = vpop.f32.mrf.mxu1  ;;  %v7053_v6 = vpop.f32.mrf.mxu0  ;;  %3423 = vmatmul.mubr.bf16.gmra.mxu1 %v2065_v23  ;;  %3520 = vmatmul.mubr.bf16.gmra.mxu0 %v2067_v10  ;;  %v5577_v23 = vld [vmem:[%s8267_s5 + $0x280] sm:$0xff]   ;;  %v1889_v10 = vmax.f32 %v1154_v31, 0.0 }
 0x241   : > { %8330 = vst [vmem:[#allocation16_spill] sm:$0xff] %v7051_v22  ;;  %8331 = vst [vmem:[#allocation17_spill] sm:$0xff] %v7053_v6  ;;  %3430 = vmatprep.mubr.bf16.mxu1 %v2082_v5  ;;  %3527 = vmatprep.mubr.bf16.mxu0 %v2084_v4  ;;  %v2083_v6 = vpack.c.bf16 %v1907_v33, %v1891_v59  ;;  %v1924_v31 = vmax.f32 %v1279_v18, 0.0  ;;  %v8335_v42 = vld [vmem:[#allocation9_spill] sm:$0xff]  ;;  %v8337_v18 = vld [vmem:[#allocation10_spill] sm:$0xff] }
 0x242   : > { %v7057_v29 = vpop.f32.mrf.mxu1  ;;  %v7059_v61 = vpop.f32.mrf.mxu0  ;;  %5086 = vmatpush3.bf16.msra.mxu1 %v5571_v17  ;;  %5150 = vmatpush3.bf16.msra.mxu0 %v5573_v30  ;;  %v5580_v17 = vld [vmem:[%s8267_s5 + $0x3f8] sm:$0xff]   ;;  %v1922_v30 = vmax.f32 %v1166_v26, 0.0  ;;  %v2081_v15 = vpack.c.bf16 %v1905_v21, %v1889_v10  ;;  %v1168_v38 = vadd.f32 %v8335_v42, %v6810_v24  ;;  %v1180_v26 = vadd.f32 %v6825_v56, %v6771_v50  ;;  %v8338_v59 = vld [vmem:[#allocation11_spill] sm:$0xff] }
 0x243   : > { %8333 = vst [vmem:[#allocation6_spill] sm:$0xff] %v7057_v29  ;;  %8334 = vst [vmem:[#allocation18_spill] sm:$0xff] %v7059_v61  ;;  %5087 = vmatprep.subr.bf16.mxu1 %v5574_v41  ;;  %5151 = vmatprep.subr.bf16.mxu0 %v5576_v58  ;;  %v8336_v41 = vld [vmem:[#allocation19_spill] sm:$0xff]  ;;  %v1293_v21 = vadd.f32 %v6827_v54, %v6776_v62  ;;  %v2100_v33 = vpack.c.bf16 %v1940_v36, %v1924_v31 }
 0x244   : > { %v7073_v5 = vpop.f32.mrf.mxu1  ;;  %v7075_v4 = vpop.f32.mrf.mxu0  ;;  %v1281_v58 = vadd.f32 %v8336_v41, %v6815_v2  ;;  %v2098_v29 = vpack.c.bf16 %v1938_v37, %v1922_v30  ;;  %v1164_v10 = vadd.f32 %v8337_v18, %v6810_v24  ;;  %v1277_v42 = vadd.f32 %v8338_v59, %v6815_v2 }
 0x245   : > { %v1176_v56 = vadd.f32 %v6803_v25, %v6771_v50  ;;  %v1289_v54 = vadd.f32 %v6805_v8, %v6776_v62  ;;  %v1972_v30 = vmax.f32 %v1293_v21, 0.0  ;;  %v1190_v21 = vadd.f32 %v6862_v32, %v6771_v50 }
 0x246   : > { %v7081_v22 = vpop.f32.mrf.mxu1  ;;  %v7083_v61 = vpop.f32.mrf.mxu0  ;;  %5088 = vmatpush3.bf16.msra.mxu1 %v5575_v40  ;;  %5152 = vmatpush3.bf16.msra.mxu0 %v5577_v23  ;;  %v1937_v40 = vmax.f32 %v1168_v38, 0.0  ;;  %v1939_v23 = vmax.f32 %v1281_v58, 0.0  ;;  %v1921_v31 = vmax.f32 %v1164_v10, 0.0  ;;  %v1923_v18 = vmax.f32 %v1277_v42, 0.0 }
 0x247   : > { %5201 = vmatprep.subr.bf16.mxu1 %v5578_v49  ;;  %5265 = vmatprep.subr.bf16.mxu0 %v5580_v17  ;;  %v1970_v17 = vmax.f32 %v1180_v26, 0.0  ;;  %v1954_v25 = vmax.f32 %v1176_v56, 0.0  ;;  %v1956_v59 = vmax.f32 %v1289_v54, 0.0  ;;  %v1291_v38 = vadd.f32 %v6819_v48, %v6815_v2 }
 0x248   : > { %v7093_v41 = vpop.f32.mrf.mxu1  ;;  %v7095_v37 = vpop.f32.mrf.mxu0  ;;  %3431 = vmatmul.mubr.bf16.gmra.mxu1 %v2081_v15  ;;  %3528 = vmatmul.mubr.bf16.gmra.mxu0 %v2083_v6  ;;  %v2099_v8 = vpack.c.bf16 %v1939_v23, %v1923_v18  ;;  %v1174_v56 = vadd.f32 %v6795_v60, %v6810_v24  ;;  %v1186_v32 = vadd.f32 %v6845_v1, %v6771_v50 }
 0x249   : > { %8339 = vst [vmem:[#allocation8_spill] sm:$0xff] %v7095_v37  ;;  %3438 = vmatprep.mubr.bf16.mxu1 %v2098_v29  ;;  %3535 = vmatprep.mubr.bf16.mxu0 %v2100_v33  ;;  %v2097_v37 = vpack.c.bf16 %v1937_v40, %v1921_v31  ;;  %v1178_v29 = vadd.f32 %v6817_v7, %v6810_v24  ;;  %v8340_v7 = vld [vmem:[#allocation7_spill] sm:$0xff]  ;;  %v2002_v31 = vmax.f32 %v1190_v21, 0.0 }
 0x24a   : > { %v7101_v36 = vpop.f32.mrf.mxu1  ;;  %v7103_v49 = vpop.f32.mrf.mxu0  ;;  %v1303_v33 = vadd.f32 %v6864_v28, %v6776_v62  ;;  %v2114_v10 = vpack.c.bf16 %v1970_v17, %v1954_v25  ;;  %v2116_v42 = vpack.c.bf16 %v1972_v30, %v1956_v59  ;;  %v1287_v54 = vadd.f32 %v8340_v7, %v6815_v2 }
 0x24b   : > { %v1299_v28 = vadd.f32 %v6847_v57, %v6776_v62  ;;  %v1969_v23 = vmax.f32 %v1178_v29, 0.0  ;;  %v1971_v17 = vmax.f32 %v1291_v38, 0.0  ;;  %v1953_v25 = vmax.f32 %v1174_v56, 0.0 }
 0x24c   : > { %v7105_v15 = vpop.f32.mrf.mxu1  ;;  %v7107_v6 = vpop.f32.mrf.mxu0  ;;  %v2004_v18 = vmax.f32 %v1303_v33, 0.0  ;;  %v1955_v59 = vmax.f32 %v1287_v54, 0.0  ;;  %v1986_v1 = vmax.f32 %v1186_v32, 0.0  ;;  %v1188_v56 = vadd.f32 %v6851_v0, %v6810_v24  ;;  %v8346_v0 = vld [vmem:[#allocation14_spill] sm:$0xff] }
 0x24d   : > { %v1988_v57 = vmax.f32 %v1299_v28, 0.0  ;;  %v1301_v7 = vadd.f32 %v6853_v63, %v6815_v2 }
 0x24e   : > { %v7113_v58 = vpop.f32.mrf.mxu1  ;;  %v7115_v26 = vpop.f32.mrf.mxu0 }
 0x250   : > { %v7125_v40 = vpop.f32.mrf.mxu1  ;;  %v7127_v48 = vpop.f32.mrf.mxu0  ;;  %3439 = vmatmul.mubr.bf16.gmra.mxu1 %v2097_v37  ;;  %3536 = vmatmul.mubr.bf16.gmra.mxu0 %v2099_v8  ;;  %v7140_v37 = vld [vmem:[%s8266_s4 + $0x8] sm:$0xff]  ;;  %v8343_v8 = vld [vmem:[#allocation5_spill] sm:$0xff] }
 0x251   : > { %8341 = vst [vmem:[#allocation9_spill] sm:$0xff] %v7127_v48  ;;  %3446 = vmatprep.mubr.bf16.mxu1 %v2114_v10  ;;  %3543 = vmatprep.mubr.bf16.mxu0 %v2116_v42  ;;  %8342 = vst [vmem:[#allocation19_spill] sm:$0xff] %v7140_v37  ;;  %v8344_v29 = vsub.s32 1, %v8343_v8  ;;  %v8345_v21 = vsub.s32 3, %v8343_v8  ;;  %v2113_v10 = vpack.c.bf16 %v1969_v23, %v1953_v25 }
 0x252   : > { %v7133_v60 = vpop.f32.mrf.mxu1  ;;  %v7135_v30 = vpop.f32.mrf.mxu0  ;;  %v2115_v42 = vpack.c.bf16 %v1971_v17, %v1955_v59  ;;  %v2132_v48 = vpack.c.bf16 %v2004_v18, %v1988_v57  ;;  %v1184_v23 = vadd.f32 %v6837_v3, %v6810_v24  ;;  %v1297_v17 = vadd.f32 %v8346_v0, %v6815_v2 }
 0x253   : > { %v7149_v38 = vrot.slane %v7140_v37, %v8344_v29  ;;  %v7154_v33 = vrot.slane %v7140_v37, %v8345_v21  ;;  %v2130_v21 = vpack.c.bf16 %v2002_v31, %v1986_v1  ;;  %v2001_v31 = vmax.f32 %v1188_v56, 0.0 }
 0x254   : > { %v7142_v50 = vpop.f32.mrf.mxu1  ;;  %v7144_v62 = vpop.f32.mrf.mxu0  ;;  %v2003_v18 = vmax.f32 %v1301_v7, 0.0  ;;  %v1985_v1 = vmax.f32 %v1184_v23, 0.0  ;;  %v1987_v57 = vmax.f32 %v1297_v17, 0.0 }
 0x255   : > { %v1346_v28 = vadd.f32 %v6917_v20, %v7149_v38  ;;  %v1459_v29 = vadd.f32 %v6919_v51, %v7154_v33  ;;  %v1342_v20 = vadd.f32 %v6892_v55, %v7149_v38  ;;  %v1455_v51 = vadd.f32 %v6894_v46, %v7154_v33 }
 0x256   : > { %v7160_v54 = vpop.f32.mrf.mxu1  ;;  %v7162_v32 = vpop.f32.mrf.mxu0  ;;  %v8348_v55 = vsub.s32 2, %v8343_v8 }
 0x257   : > { %v1782_v2 = vmax.f32 %v1346_v28, 0.0  ;;  %v1784_v59 = vmax.f32 %v1459_v29, 0.0  ;;  %v1766_v7 = vmax.f32 %v1342_v20, 0.0  ;;  %v2129_v28 = vpack.c.bf16 %v2001_v31, %v1985_v1  ;;  %v8349_v20 = vld [vmem:[#allocation15_spill] sm:$0xff]  ;;  %v8350_v31 = vld [vmem:[#allocation12_spill] sm:$0xff] }
 0x258   : > { %v7172_v25 = vpop.f32.mrf.mxu1  ;;  %v7174_v63 = vpop.f32.mrf.mxu0  ;;  %3447 = vmatmul.mubr.bf16.gmra.mxu1 %v2113_v10  ;;  %3544 = vmatmul.mubr.bf16.gmra.mxu0 %v2115_v42  ;;  %v8347_v10 = vsub.s32 0, %v8343_v8  ;;  %v7192_v46 = vrot.slane %v7140_v37, %v8348_v55  ;;  %v2131_v29 = vpack.c.bf16 %v2003_v18, %v1987_v57  ;;  %v1356_v55 = vadd.f32 %v6973_v47, %v7149_v38 }
 0x259   : > { %3454 = vmatprep.mubr.bf16.mxu1 %v2130_v21  ;;  %3551 = vmatprep.mubr.bf16.mxu0 %v2132_v48  ;;  %v1768_v21 = vmax.f32 %v1455_v51, 0.0  ;;  %v1352_v47 = vadd.f32 %v6945_v44, %v7149_v38  ;;  %v1465_v57 = vadd.f32 %v6947_v19, %v7154_v33  ;;  %v5579_v19 = vld [vmem:[%s8267_s5 + $0x338] sm:$0xff]  }
 0x25a   : > { %v7180_v24 = vpop.f32.mrf.mxu1  ;;  %v7182_v3 = vpop.f32.mrf.mxu0  ;;  %v7187_v42 = vrot.slane %v7140_v37, %v8347_v10  ;;  %v1457_v0 = vadd.f32 %v6907_v45, %v7192_v46  ;;  %v2022_v37 = vpack.c.bf16 %v1782_v2, %v1766_v7  ;;  %v1453_v18 = vadd.f32 %v8350_v31, %v7192_v46 }
 0x25b   : > { %v2024_v8 = vpack.c.bf16 %v1784_v59, %v1768_v21  ;;  %v1798_v44 = vmax.f32 %v1352_v47, 0.0  ;;  %v1366_v47 = vadd.f32 %v7031_v13, %v7149_v38 }
 0x25c   : > { %v7194_v48 = vpop.f32.mrf.mxu1  ;;  %v7196_v56 = vpop.f32.mrf.mxu0  ;;  %v1344_v23 = vadd.f32 %v6905_v39, %v7187_v42  ;;  %v1340_v51 = vadd.f32 %v8349_v20, %v7187_v42  ;;  %v1469_v39 = vadd.f32 %v6975_v27, %v7154_v33  ;;  %v1783_v59 = vmax.f32 %v1457_v0, 0.0 }
 0x25d   : > { %v1814_v27 = vmax.f32 %v1356_v55, 0.0  ;;  %v1767_v31 = vmax.f32 %v1453_v18, 0.0  ;;  %v1800_v0 = vmax.f32 %v1465_v57, 0.0  ;;  %v1467_v55 = vadd.f32 %v6967_v9, %v7192_v46  ;;  %v5582_v9 = vld [vmem:[%s8267_s5 + $0x370] sm:$0xff]  }
 0x25e   : > { %v7202_v17 = vpop.f32.mrf.mxu1  ;;  %v7204_v10 = vpop.f32.mrf.mxu0  ;;  %v1781_v2 = vmax.f32 %v1344_v23, 0.0  ;;  %v1765_v20 = vmax.f32 %v1340_v51, 0.0  ;;  %v5584_v57 = vld [vmem:[%s8267_s5 + $0x3f0] sm:$0xff]  }
 0x25f   : > { %v2023_v23 = vpack.c.bf16 %v1783_v59, %v1767_v31  ;;  %v2038_v59 = vpack.c.bf16 %v1814_v27, %v1798_v44  ;;  %v1362_v27 = vadd.f32 %v7001_v16, %v7149_v38  ;;  %v1475_v44 = vadd.f32 %v7003_v34, %v7154_v33  ;;  %v5585_v16 = vld [vmem:[%s8267_s5 + $0x3b0] sm:$0xff]   ;;  %v5586_v34 = vld [vmem:[%s8267_s5 + $0x368] sm:$0xff]  }
 0x260   : > { %v7214_v1 = vpop.f32.mrf.mxu1  ;;  %v7216_v45 = vpop.f32.mrf.mxu0  ;;  %3455 = vmatmul.mubr.bf16.gmra.mxu1 %v2129_v28  ;;  %3552 = vmatmul.mubr.bf16.gmra.mxu0 %v2131_v29 }
 0x261   : > { %8351 = vst [vmem:[#allocation10_spill] sm:$0xff] %v7214_v1  ;;  %8352 = vst [vmem:[#allocation11_spill] sm:$0xff] %v7216_v45  ;;  %3592 = vmatprep.mubr.bf16.mxu1 %v2022_v37  ;;  %3689 = vmatprep.mubr.bf16.mxu0 %v2024_v8  ;;  %v1816_v45 = vmax.f32 %v1469_v39, 0.0  ;;  %v1354_v37 = vadd.f32 %v6965_v53, %v7187_v42  ;;  %v2021_v8 = vpack.c.bf16 %v1781_v2, %v1765_v20  ;;  %v5581_v39 = vld [vmem:[%s8267_s5 + $0x3b8] sm:$0xff]  }
 0x262   : > { %v7222_v7 = vpop.f32.mrf.mxu1  ;;  %v7224_v21 = vpop.f32.mrf.mxu0  ;;  %v1350_v53 = vadd.f32 %v6939_v43, %v7187_v42  ;;  %v1479_v2 = vadd.f32 %v7033_v12, %v7154_v33  ;;  %v1463_v20 = vadd.f32 %v6941_v14, %v7192_v46  ;;  %v5583_v14 = vld [vmem:[%s8267_s5 + $0x330] sm:$0xff]   ;;  %v1815_v1 = vmax.f32 %v1467_v55, 0.0 }
 0x263   : > { %v2040_v13 = vpack.c.bf16 %v1816_v45, %v1800_v0  ;;  %v1813_v12 = vmax.f32 %v1354_v37, 0.0  ;;  %v1846_v37 = vmax.f32 %v1366_v47, 0.0  ;;  %v1364_v55 = vadd.f32 %v7017_v52, %v7187_v42 }
 0x264   : > { %v7226_v28 = vpop.f32.mrf.mxu1  ;;  %v7228_v29 = vpop.f32.mrf.mxu0  ;;  %v1797_v45 = vmax.f32 %v1350_v53, 0.0  ;;  %v1799_v0 = vmax.f32 %v1463_v20, 0.0  ;;  %v1830_v47 = vmax.f32 %v1362_v27, 0.0  ;;  %v8356_v20 = vld [vmem:[#allocation13_spill] sm:$0xff] }
 0x266   : > { %v7237_v51 = vpop.f32.mrf.mxu1  ;;  %v7239_v18 = vpop.f32.mrf.mxu0  ;;  %v2037_v53 = vpack.c.bf16 %v1813_v12, %v1797_v45  ;;  %v1489_v12 = vadd.f32 %v7083_v61, %v7154_v33  ;;  %v2054_v27 = vpack.c.bf16 %v1846_v37, %v1830_v47  ;;  %v8360_v37 = vld [vmem:[#allocation18_spill] sm:$0xff] }
 0x268   : > { %v7258_v31 = vpop.f32.mrf.mxu1  ;;  %v7260_v43 = vpop.f32.mrf.mxu0  ;;  %3593 = vmatmul.mubr.bf16.vlgmr.msra.gmra.mxu1 %v2021_v8  ;;  %3690 = vmatmul.mubr.bf16.vlgmr.msra.gmra.mxu0 %v2023_v23  ;;  %v5588_v23 = vld [vmem:[%s8267_s5 + $0x3e8] sm:$0xff]  }
 0x269   : > { %8353 = vst [vmem:[#allocation7_spill] sm:$0xff] %v7258_v31  ;;  %8354 = vst [vmem:[#allocation14_spill] sm:$0xff] %v7260_v43  ;;  %5202 = vmatpush3.bf16.msra.mxu1 %v5579_v19  ;;  %3600 = vmatprep.mubr.bf16.mxu1 %v2038_v59  ;;  %v1848_v19 = vmax.f32 %v1479_v2, 0.0  ;;  %v1832_v2 = vmax.f32 %v1475_v44, 0.0  ;;  %v1473_v43 = vadd.f32 %v8356_v20, %v7192_v46 }
 0x26a   : > { %3697 = vmatprep.mubr.bf16.mxu0 %v2040_v13  ;;  %v7269_v31 = vpop.f32.mrf.mxu1  ;;  %v7271_v8 = vpop.f32.mrf.mxu0  ;;  %5266 = vmatpush3.bf16.msra.mxu0 %v5581_v39  ;;  %v1477_v39 = vadd.f32 %v7019_v35, %v7192_v46  ;;  %v5587_v35 = vld [vmem:[%s8267_s5 + $0x328] sm:$0xff]  }
 0x26b   : > { %8355 = vst [vmem:[#allocation15_spill] sm:$0xff] %v7271_v8  ;;  %5203 = vmatprep.subr.bf16.mxu1 %v5582_v9  ;;  %5267 = vmatprep.subr.bf16.mxu0 %v5584_v57  ;;  %v2039_v9 = vpack.c.bf16 %v1815_v1, %v1799_v0  ;;  %v1360_v57 = vadd.f32 %v6993_v11, %v7187_v42  ;;  %v5589_v1 = vld [vmem:[%s8267_s5 + $0x3a8] sm:$0xff]   ;;  %v1831_v47 = vmax.f32 %v1473_v43, 0.0  ;;  %v5594_v43 = vld [vmem:[%s8267_s5 + $0x358] sm:$0xff]  }
 0x26c   : > { %v7286_v59 = vpop.f32.mrf.mxu1  ;;  %v7288_v13 = vpop.f32.mrf.mxu0  ;;  %v1376_v11 = vadd.f32 %v7081_v22, %v7149_v38  ;;  %v2056_v44 = vpack.c.bf16 %v1848_v19, %v1832_v2  ;;  %v1847_v45 = vmax.f32 %v1477_v39, 0.0  ;;  %v8359_v22 = vld [vmem:[#allocation6_spill] sm:$0xff]  ;;  %v1485_v19 = vadd.f32 %v8360_v37, %v7154_v33  ;;  %v5591_v39 = vld [vmem:[%s8267_s5 + $0x320] sm:$0xff]  }
 0x26d   : > { %5204 = vmatpush3.bf16.msra.mxu1 %v5583_v14  ;;  %v5590_v14 = vld [vmem:[%s8267_s5 + $0x360] sm:$0xff]   ;;  %v1372_v61 = vadd.f32 %v8359_v22, %v7149_v38  ;;  %v1880_v22 = vmax.f32 %v1489_v12, 0.0  ;;  %v1487_v12 = vadd.f32 %v7075_v4, %v7192_v46  ;;  %v5597_v4 = vld [vmem:[%s8267_s5 + $0x398] sm:$0xff]  }
 0x26e   : > { %v7294_v8 = vpop.f32.mrf.mxu1  ;;  %v7296_v52 = vpop.f32.mrf.mxu0  ;;  %5268 = vmatpush3.bf16.msra.mxu0 %v5585_v16  ;;  %5205 = vmatprep.subr.bf16.mxu1 %v5586_v34  ;;  %v5592_v16 = vld [vmem:[%s8267_s5 + $0x3e0] sm:$0xff]   ;;  %v1845_v34 = vmax.f32 %v1364_v55, 0.0 }
 0x26f   : > { %5269 = vmatprep.subr.bf16.mxu0 %v5588_v23  ;;  %v1829_v23 = vmax.f32 %v1360_v57, 0.0  ;;  %v5596_v57 = vld [vmem:[%s8267_s5 + $0x3d8] sm:$0xff]   ;;  %v1862_v37 = vmax.f32 %v1372_v61, 0.0 }
 0x270   : > { %v7314_v0 = vpop.f32.mrf.mxu1  ;;  %v7316_v20 = vpop.f32.mrf.mxu0  ;;  %3601 = vmatmul.mubr.bf16.gmra.mxu1 %v2037_v53  ;;  %3698 = vmatmul.mubr.bf16.gmra.mxu0 %v2039_v9  ;;  %v5593_v53 = vld [vmem:[%s8267_s5 + $0x3a0] sm:$0xff]   ;;  %v1878_v9 = vmax.f32 %v1376_v11, 0.0  ;;  %v1374_v11 = vadd.f32 %v7073_v5, %v7187_v42  ;;  %v5595_v5 = vld [vmem:[%s8267_s5 + $0x318] sm:$0xff]  }
 0x271   : > { %8357 = vst [vmem:[#allocation12_spill] sm:$0xff] %v7314_v0  ;;  %8358 = vst [vmem:[#allocation13_spill] sm:$0xff] %v7316_v20  ;;  %3608 = vmatprep.mubr.bf16.mxu1 %v2054_v27  ;;  %3705 = vmatprep.mubr.bf16.mxu0 %v2056_v44  ;;  %v1864_v20 = vmax.f32 %v1485_v19, 0.0  ;;  %v8363_v0 = vld [vmem:[#allocation17_spill] sm:$0xff] }
 0x272   : > { %v7322_v2 = vpop.f32.mrf.mxu1  ;;  %v7324_v55 = vpop.f32.mrf.mxu0  ;;  %5206 = vmatpush3.bf16.msra.mxu1 %v5587_v35  ;;  %5270 = vmatpush3.bf16.msra.mxu0 %v5589_v1  ;;  %v2053_v35 = vpack.c.bf16 %v1845_v34, %v1829_v23  ;;  %v2055_v1 = vpack.c.bf16 %v1847_v45, %v1831_v47  ;;  %v1386_v34 = vadd.f32 %v7113_v58, %v7149_v38  ;;  %v5598_v58 = vld [vmem:[%s8267_s5 + $0x350] sm:$0xff]  }
 0x273   : > { %8361 = vst [vmem:[#allocation6_spill] sm:$0xff] %v7324_v55  ;;  %5207 = vmatprep.subr.bf16.mxu1 %v5590_v14  ;;  %5271 = vmatprep.subr.bf16.mxu0 %v5592_v16  ;;  %v8362_v14 = vld [vmem:[#allocation16_spill] sm:$0xff]  ;;  %v1483_v55 = vadd.f32 %v8363_v0, %v7192_v46  ;;  %v1499_v0 = vadd.f32 %v7115_v26, %v7154_v33  ;;  %v5600_v47 = vld [vmem:[%s8267_s5 + $0x3d0] sm:$0xff]   ;;  %v1877_v26 = vmax.f32 %v1374_v11, 0.0  ;;  %v5602_v11 = vld [vmem:[%s8267_s5 + $0x348] sm:$0xff]  }
 0x274   : > { %v7338_v27 = vpop.f32.mrf.mxu1  ;;  %v7340_v44 = vpop.f32.mrf.mxu0  ;;  %v1370_v16 = vadd.f32 %v8362_v14, %v7187_v42  ;;  %v2070_v61 = vpack.c.bf16 %v1878_v9, %v1862_v37  ;;  %v2072_v19 = vpack.c.bf16 %v1880_v22, %v1864_v20  ;;  %v1879_v20 = vmax.f32 %v1487_v12, 0.0  ;;  %v5604_v12 = vld [vmem:[%s8267_s5 + $0x3c8] sm:$0xff]  }
 0x275   : > { %v1495_v9 = vadd.f32 %v7103_v49, %v7154_v33  ;;  %v1910_v22 = vmax.f32 %v1386_v34, 0.0  ;;  %v1863_v37 = vmax.f32 %v1483_v55, 0.0  ;;  %v1912_v49 = vmax.f32 %v1499_v0, 0.0 }
 0x276   : > { %v7352_v45 = vpop.f32.mrf.mxu1  ;;  %v7354_v23 = vpop.f32.mrf.mxu0  ;;  %5208 = vmatpush3.bf16.msra.mxu1 %v5591_v39  ;;  %5272 = vmatpush3.bf16.msra.mxu0 %v5593_v53  ;;  %v1382_v39 = vadd.f32 %v7101_v36, %v7149_v38  ;;  %v5599_v36 = vld [vmem:[%s8267_s5 + $0x310] sm:$0xff]   ;;  %v1384_v55 = vadd.f32 %v7105_v15, %v7187_v42  ;;  %v1380_v0 = vadd.f32 %v7093_v41, %v7187_v42  ;;  %v5605_v15 = vld [vmem:[%s8267_s5 + $0x388] sm:$0xff]  }
 0x277   : > { %5209 = vmatprep.subr.bf16.mxu1 %v5594_v43  ;;  %5273 = vmatprep.subr.bf16.mxu0 %v5596_v57  ;;  %v1396_v41 = vadd.f32 %v7160_v54, %v7149_v38 }
 0x278   : > { %v7372_v53 = vpop.f32.mrf.mxu1  ;;  %v7374_v14 = vpop.f32.mrf.mxu0  ;;  %3609 = vmatmul.mubr.bf16.gmra.mxu1 %v2053_v35  ;;  %3706 = vmatmul.mubr.bf16.gmra.mxu0 %v2055_v1  ;;  %v5601_v35 = vld [vmem:[%s8267_s5 + $0x390] sm:$0xff]   ;;  %v1861_v1 = vmax.f32 %v1370_v16, 0.0  ;;  %v1894_v34 = vmax.f32 %v1382_v39, 0.0  ;;  %v1896_v16 = vmax.f32 %v1495_v9, 0.0  ;;  %v5606_v9 = vld [vmem:[%s8267_s5 + $0x340] sm:$0xff]  }
 0x279   : > { %8364 = vst [vmem:[#allocation18_spill] sm:$0xff] %v7374_v14  ;;  %3616 = vmatprep.mubr.bf16.mxu1 %v2070_v61  ;;  %3713 = vmatprep.mubr.bf16.mxu0 %v2072_v19  ;;  %v2071_v19 = vpack.c.bf16 %v1879_v20, %v1863_v37  ;;  %v1392_v37 = vadd.f32 %v7133_v60, %v7149_v38  ;;  %v5609_v60 = vld [vmem:[%s8267_s5 + $0x380] sm:$0xff]  }
 0x27a   : > { %v7378_v43 = vpop.f32.mrf.mxu1  ;;  %v7380_v57 = vpop.f32.mrf.mxu0  ;;  %5210 = vmatpush3.bf16.msra.mxu1 %v5595_v5  ;;  %5274 = vmatpush3.bf16.msra.mxu0 %v5597_v4  ;;  %v2069_v61 = vpack.c.bf16 %v1877_v26, %v1861_v1  ;;  %v2086_v39 = vpack.c.bf16 %v1910_v22, %v1894_v34  ;;  %v5603_v26 = vld [vmem:[%s8267_s5 + $0x308] sm:$0xff]   ;;  %v2088_v20 = vpack.c.bf16 %v1912_v49, %v1896_v16  ;;  %v5608_v22 = vld [vmem:[%s8267_s5 + $0x3c0] sm:$0xff]   ;;  %v1942_v16 = vmax.f32 %v1396_v41, 0.0 }
 0x27b   : > { %5211 = vmatprep.subr.bf16.mxu1 %v5598_v58  ;;  %5275 = vmatprep.subr.bf16.mxu0 %v5600_v47  ;;  %v1497_v58 = vadd.f32 %v7107_v6, %v7192_v46  ;;  %v1509_v6 = vadd.f32 %v7162_v32, %v7154_v33  ;;  %v1909_v32 = vmax.f32 %v1384_v55, 0.0  ;;  %v1505_v49 = vadd.f32 %v7135_v30, %v7154_v33 }
 0x27c   : > { %v7394_v5 = vpop.f32.mrf.mxu1  ;;  %v7396_v4 = vpop.f32.mrf.mxu0 }
 0x27d   : > { %v1944_v30 = vmax.f32 %v1509_v6, 0.0  ;;  %v1406_v6 = vadd.f32 %v7202_v17, %v7149_v38  ;;  %v1402_v17 = vadd.f32 %v7180_v24, %v7149_v38 }
 0x27e   : > { %v7404_v47 = vpop.f32.mrf.mxu1  ;;  %v7406_v14 = vpop.f32.mrf.mxu0  ;;  %5212 = vmatpush3.bf16.msra.mxu1 %v5599_v36  ;;  %5276 = vmatpush3.bf16.msra.mxu0 %v5601_v35  ;;  %v8365_v36 = vld [vmem:[#allocation8_spill] sm:$0xff] }
 0x27f   : > { %5213 = vmatprep.subr.bf16.mxu1 %v5602_v11  ;;  %5277 = vmatprep.subr.bf16.mxu0 %v5604_v12  ;;  %v1493_v35 = vadd.f32 %v8365_v36, %v7192_v46  ;;  %v1911_v11 = vmax.f32 %v1497_v58, 0.0  ;;  %v1958_v24 = vmax.f32 %v1402_v17, 0.0 }
 0x280   : > { %v7426_v1 = vpop.f32.mrf.mxu1  ;;  %v7428_v54 = vpop.f32.mrf.mxu0  ;;  %3617 = vmatmul.mubr.bf16.gmra.mxu1 %v2069_v61  ;;  %3714 = vmatmul.mubr.bf16.gmra.mxu0 %v2071_v19  ;;  %v5607_v61 = vld [vmem:[%s8267_s5 + $0x300] sm:$0xff]   ;;  %v1893_v19 = vmax.f32 %v1380_v0, 0.0 }
 0x281   : > { %8366 = vst [vmem:[#allocation16_spill] sm:$0xff] %v7426_v1  ;;  %8367 = vst [vmem:[#allocation17_spill] sm:$0xff] %v7428_v54  ;;  %3624 = vmatprep.mubr.bf16.mxu1 %v2086_v39  ;;  %3721 = vmatprep.mubr.bf16.mxu0 %v2088_v20  ;;  %v1895_v55 = vmax.f32 %v1493_v35, 0.0  ;;  %v1928_v20 = vmax.f32 %v1505_v49, 0.0  ;;  %v1394_v54 = vadd.f32 %v7142_v50, %v7187_v42 }
 0x282   : > { %v7434_v12 = vpop.f32.mrf.mxu1  ;;  %v7436_v34 = vpop.f32.mrf.mxu0  ;;  %5214 = vmatpush3.bf16.msra.mxu1 %v5603_v26  ;;  %5278 = vmatpush3.bf16.msra.mxu0 %v5605_v15  ;;  %v2085_v26 = vpack.c.bf16 %v1909_v32, %v1893_v19  ;;  %v1926_v15 = vmax.f32 %v1392_v37, 0.0  ;;  %v1507_v1 = vadd.f32 %v7144_v62, %v7192_v46  ;;  %v1390_v50 = vadd.f32 %v7125_v40, %v7187_v42  ;;  %v8368_v32 = vld [vmem:[#allocation9_spill] sm:$0xff] }
 0x283   : > { %5215 = vmatprep.subr.bf16.mxu1 %v5606_v9  ;;  %5279 = vmatprep.subr.bf16.mxu0 %v5608_v22  ;;  %v2087_v36 = vpack.c.bf16 %v1911_v11, %v1895_v55  ;;  %v1519_v9 = vadd.f32 %v7204_v10, %v7154_v33  ;;  %v2104_v35 = vpack.c.bf16 %v1944_v30, %v1928_v20  ;;  %v1941_v11 = vmax.f32 %v1394_v54, 0.0 }
 0x284   : > { %v7444_v58 = vpop.f32.mrf.mxu1  ;;  %v7446_v39 = vpop.f32.mrf.mxu0  ;;  %v2102_v22 = vpack.c.bf16 %v1942_v16, %v1926_v15  ;;  %v1503_v62 = vadd.f32 %v8368_v32, %v7192_v46  ;;  %v1515_v10 = vadd.f32 %v7182_v3, %v7154_v33  ;;  %v1974_v19 = vmax.f32 %v1406_v6, 0.0 }
 0x285   : > { %v1976_v16 = vmax.f32 %v1519_v9, 0.0  ;;  %v1925_v30 = vmax.f32 %v1390_v50, 0.0  ;;  %v1404_v54 = vadd.f32 %v7194_v48, %v7187_v42  ;;  %v1416_v9 = vadd.f32 %v7237_v51, %v7149_v38 }
 0x286   : > { %v7452_v0 = vpop.f32.mrf.mxu1  ;;  %v7454_v41 = vpop.f32.mrf.mxu0  ;;  %5216 = vmatpush3.bf16.msra.mxu1 %v5607_v61  ;;  %5280 = vmatpush3.bf16.msra.mxu0 %v5609_v60  ;;  %v1943_v61 = vmax.f32 %v1507_v1, 0.0  ;;  %v1927_v55 = vmax.f32 %v1503_v62, 0.0  ;;  %v1960_v20 = vmax.f32 %v1515_v10, 0.0  ;;  %v1517_v1 = vadd.f32 %v7196_v56, %v7192_v46 }
 0x287   : > { %v2118_v50 = vpack.c.bf16 %v1974_v19, %v1958_v24  ;;  %v1400_v62 = vadd.f32 %v7172_v25, %v7187_v42  ;;  %v1513_v48 = vadd.f32 %v7174_v63, %v7192_v46  ;;  %v1412_v51 = vadd.f32 %v7222_v7, %v7149_v38 }
 0x288   : > { %v7464_v37 = vpop.f32.mrf.mxu1  ;;  %v7466_v49 = vpop.f32.mrf.mxu0  ;;  %3625 = vmatmul.mubr.bf16.gmra.mxu1 %v2085_v26  ;;  %3722 = vmatmul.mubr.bf16.gmra.mxu0 %v2087_v36  ;;  %v2101_v36 = vpack.c.bf16 %v1941_v11, %v1925_v30  ;;  %v2103_v3 = vpack.c.bf16 %v1943_v61, %v1927_v55  ;;  %v2120_v32 = vpack.c.bf16 %v1976_v16, %v1960_v20  ;;  %v1973_v10 = vmax.f32 %v1404_v54, 0.0  ;;  %v8369_v20 = vld [vmem:[#allocation5_spill] sm:$0xff] }
 0x289   : > { %3632 = vmatprep.mubr.bf16.mxu1 %v2102_v22  ;;  %3729 = vmatprep.mubr.bf16.mxu0 %v2104_v35  ;;  %v1529_v35 = vadd.f32 %v7239_v18, %v7154_v33  ;;  %v1525_v18 = vadd.f32 %v7224_v21, %v7154_v33  ;;  %v1975_v11 = vmax.f32 %v1517_v1, 0.0  ;;  %v2006_v63 = vmax.f32 %v1416_v9, 0.0  ;;  %v8371_v21 = vld [vmem:[#allocation19_spill] sm:$0xff] }
 0x28a   : > { %v7472_v40 = vpop.f32.mrf.mxu1  ;;  %v7474_v60 = vpop.f32.mrf.mxu0  ;;  %v1957_v16 = vmax.f32 %v1400_v62, 0.0  ;;  %v1959_v30 = vmax.f32 %v1513_v48, 0.0  ;;  %v1990_v38 = vmax.f32 %v1412_v51, 0.0  ;;  %v8370_v33 = vsub.s32 5, %v8369_v20 }
 0x28b   : > { %v2008_v19 = vmax.f32 %v1529_v35, 0.0  ;;  %v1992_v7 = vmax.f32 %v1525_v18, 0.0  ;;  %v1414_v35 = vadd.f32 %v7226_v28, %v7187_v42  ;;  %v8374_v28 = vld [vmem:[#allocation11_spill] sm:$0xff] }
 0x28c   : > { %v7476_v26 = vpop.f32.mrf.mxu1  ;;  %v7478_v15 = vpop.f32.mrf.mxu0  ;;  %v2117_v1 = vpack.c.bf16 %v1973_v10, %v1957_v16  ;;  %v2119_v9 = vpack.c.bf16 %v1975_v11, %v1959_v30  ;;  %v2134_v18 = vpack.c.bf16 %v2006_v63, %v1990_v38  ;;  %v8373_v10 = vld [vmem:[#allocation10_spill] sm:$0xff]  ;;  %v1523_v16 = vadd.f32 %v8374_v28, %v7192_v46 }
 0x28d   : > { %v1410_v11 = vadd.f32 %v8373_v10, %v7187_v42  ;;  %v2005_v63 = vmax.f32 %v1414_v35, 0.0 }
 0x28e   : > { %v7484_v22 = vpop.f32.mrf.mxu1  ;;  %v7486_v6 = vpop.f32.mrf.mxu0  ;;  %v1991_v28 = vmax.f32 %v1523_v16, 0.0 }
 0x28f   : > { %v1989_v10 = vmax.f32 %v1410_v11, 0.0 }
 0x290   : > { %v7496_v17 = vpop.f32.mrf.mxu1  ;;  %v7498_v56 = vpop.f32.mrf.mxu0  ;;  %3633 = vmatmul.mubr.bf16.gmra.mxu1 %v2101_v36  ;;  %3730 = vmatmul.mubr.bf16.gmra.mxu0 %v2103_v3  ;;  %v7515_v36 = vrot.slane %v8371_v21, %v8370_v33  ;;  %v8372_v3 = vsub.s32 7, %v8369_v20  ;;  %v2136_v33 = vpack.c.bf16 %v2008_v19, %v1992_v7 }
 0x291   : > { %3640 = vmatprep.mubr.bf16.mxu1 %v2118_v50  ;;  %3737 = vmatprep.mubr.bf16.mxu0 %v2120_v32  ;;  %v1527_v50 = vadd.f32 %v7228_v29, %v7192_v46 }
 0x292   : > { %v7504_v25 = vpop.f32.mrf.mxu1  ;;  %v7506_v61 = vpop.f32.mrf.mxu0  ;;  %v7520_v54 = vrot.slane %v8371_v21, %v8372_v3  ;;  %v1572_v48 = vadd.f32 %v7294_v8, %v7515_v36  ;;  %v1568_v8 = vadd.f32 %v7269_v31, %v7515_v36  ;;  %v8377_v3 = vld [vmem:[#allocation15_spill] sm:$0xff]  ;;  %v8379_v31 = vsub.s32 6, %v8369_v20 }
 0x293   : > { %v2007_v19 = vmax.f32 %v1527_v50, 0.0 }
 0x294   : > { %v7508_v55 = vpop.f32.mrf.mxu1  ;;  %v7510_v24 = vpop.f32.mrf.mxu0  ;;  %v1685_v51 = vadd.f32 %v7296_v52, %v7520_v54  ;;  %v1681_v52 = vadd.f32 %v8377_v3, %v7520_v54  ;;  %v1786_v46 = vmax.f32 %v1572_v48, 0.0  ;;  %v2133_v48 = vpack.c.bf16 %v2005_v63, %v1989_v10  ;;  %v8380_v63 = vld [vmem:[#allocation7_spill] sm:$0xff] }
 0x296   : > { %v7526_v32 = vpop.f32.mrf.mxu1  ;;  %v7528_v62 = vpop.f32.mrf.mxu0  ;;  %v1788_v7 = vmax.f32 %v1685_v51, 0.0  ;;  %v1772_v3 = vmax.f32 %v1681_v52, 0.0  ;;  %v2135_v51 = vpack.c.bf16 %v2007_v19, %v1991_v28 }
 0x298   : > { %v7538_v30 = vpop.f32.mrf.mxu1  ;;  %v7540_v29 = vpop.f32.mrf.mxu0  ;;  %3641 = vmatmul.mubr.bf16.gmra.mxu1 %v2117_v1  ;;  %3738 = vmatmul.mubr.bf16.gmra.mxu0 %v2119_v9  ;;  %v8378_v1 = vsub.s32 4, %v8369_v20  ;;  %v2028_v52 = vpack.c.bf16 %v1788_v7, %v1772_v3 }
 0x299   : > { %8375 = vst [vmem:[#allocation8_spill] sm:$0xff] %v7538_v30  ;;  %8376 = vst [vmem:[#allocation9_spill] sm:$0xff] %v7540_v29  ;;  %3648 = vmatprep.mubr.bf16.mxu1 %v2134_v18  ;;  %3745 = vmatprep.mubr.bf16.mxu0 %v2136_v33  ;;  %v7558_v18 = vrot.slane %v8371_v21, %v8379_v31  ;;  %v1770_v33 = vmax.f32 %v1568_v8, 0.0  ;;  %v1695_v31 = vadd.f32 %v7354_v23, %v7520_v54  ;;  %v8384_v29 = vld [vmem:[#allocation6_spill] sm:$0xff] }
 0x29a   : > { %v7546_v42 = vpop.f32.mrf.mxu1  ;;  %v7548_v38 = vpop.f32.mrf.mxu0  ;;  %v7553_v9 = vrot.slane %v8371_v21, %v8378_v1  ;;  %v1582_v21 = vadd.f32 %v7352_v45, %v7515_v36  ;;  %v1578_v45 = vadd.f32 %v7322_v2, %v7515_v36  ;;  %v1691_v23 = vadd.f32 %v8384_v29, %v7520_v54 }
 0x29b   : > { %v1683_v16 = vadd.f32 %v7288_v13, %v7558_v18  ;;  %v2026_v8 = vpack.c.bf16 %v1786_v46, %v1770_v33 }
 0x29c   : > { %v7560_v35 = vpop.f32.mrf.mxu1  ;;  %v7562_v50 = vpop.f32.mrf.mxu0  ;;  %v1570_v11 = vadd.f32 %v7286_v59, %v7553_v9  ;;  %v1566_v19 = vadd.f32 %v8380_v63, %v7553_v9  ;;  %v8381_v59 = vld [vmem:[#allocation14_spill] sm:$0xff]  ;;  %v1818_v63 = vmax.f32 %v1582_v21, 0.0  ;;  %v1802_v2 = vmax.f32 %v1578_v45, 0.0 }
 0x29d   : > { %v1679_v10 = vadd.f32 %v8381_v59, %v7558_v18  ;;  %v1787_v7 = vmax.f32 %v1683_v16, 0.0  ;;  %v1820_v59 = vmax.f32 %v1695_v31, 0.0  ;;  %v1804_v30 = vmax.f32 %v1691_v23, 0.0 }
 0x29e   : > { %v7568_v1 = vpop.f32.mrf.mxu1  ;;  %v7570_v20 = vpop.f32.mrf.mxu0  ;;  %v1785_v46 = vmax.f32 %v1570_v11, 0.0  ;;  %v1580_v29 = vadd.f32 %v7338_v27, %v7553_v9  ;;  %v1693_v11 = vadd.f32 %v7340_v44, %v7558_v18  ;;  %v1592_v21 = vadd.f32 %v7404_v47, %v7515_v36  ;;  %v8389_v27 = vld [vmem:[#allocation13_spill] sm:$0xff] }
 0x29f   : > { %v1705_v31 = vadd.f32 %v7406_v14, %v7520_v54  ;;  %v1689_v23 = vadd.f32 %v8389_v27, %v7558_v18  ;;  %v2044_v44 = vpack.c.bf16 %v1820_v59, %v1804_v30  ;;  %v1701_v47 = vadd.f32 %v7380_v57, %v7520_v54  ;;  %v7619_v30 = vld [vmem:[%s8268_s6] ss:$0 sm:$0xff] }
 0x2a0   : > { %v7580_v28 = vpop.f32.mrf.mxu1  ;;  %v7582_v13 = vpop.f32.mrf.mxu0  ;;  %3649 = vmatmul.mubr.bf16.gmra.mxu1 %v2133_v48  ;;  %3746 = vmatmul.mubr.bf16.gmra.mxu0 %v2135_v51 }
 0x2a1   : > { %8382 = vst [vmem:[#allocation5_spill] sm:$0xff] %v7580_v28  ;;  %8383 = vst [vmem:[#allocation19_spill] sm:$0xff] %v7582_v13  ;;  %3786 = vmatprep.mubr.bf16.mxu1 %v2026_v8  ;;  %3883 = vmatprep.mubr.bf16.mxu0 %v2028_v52  ;;  %v1769_v28 = vmax.f32 %v1566_v19, 0.0  ;;  %v1771_v13 = vmax.f32 %v1679_v10, 0.0  ;;  %v8388_v10 = vld [vmem:[#allocation12_spill] sm:$0xff] }
 0x2a2   : > { %v7588_v33 = vpop.f32.mrf.mxu1  ;;  %v7590_v3 = vpop.f32.mrf.mxu0  ;;  %v1576_v45 = vadd.f32 %v8388_v10, %v7553_v9  ;;  %v1850_v10 = vmax.f32 %v1592_v21, 0.0 }
 0x2a3   : > { %8385 = vst [vmem:[#allocation10_spill] sm:$0xff] %v7590_v3  ;;  %v2025_v16 = vpack.c.bf16 %v1785_v46, %v1769_v28  ;;  %v2027_v8 = vpack.c.bf16 %v1787_v7, %v1771_v13  ;;  %v1588_v28 = vadd.f32 %v7378_v43, %v7515_v36  ;;  %v1817_v46 = vmax.f32 %v1580_v29, 0.0 }
 0x2a4   : > { %v7592_v48 = vpop.f32.mrf.mxu1  ;;  %v7594_v51 = vpop.f32.mrf.mxu0  ;;  %v1819_v7 = vmax.f32 %v1693_v11, 0.0  ;;  %v1801_v59 = vmax.f32 %v1576_v45, 0.0  ;;  %v1590_v29 = vadd.f32 %v7394_v5, %v7553_v9 }
 0x2a5   : > { %8386 = vst [vmem:[#allocation11_spill] sm:$0xff] %v7592_v48  ;;  %8387 = vst [vmem:[#allocation15_spill] sm:$0xff] %v7594_v51  ;;  %v2042_v51 = vpack.c.bf16 %v1818_v63, %v1802_v2  ;;  %v1852_v48 = vmax.f32 %v1705_v31, 0.0  ;;  %v1803_v2 = vmax.f32 %v1689_v23, 0.0  ;;  %v1834_v3 = vmax.f32 %v1588_v28, 0.0  ;;  %v8390_v23 = vld [vmem:[#allocation18_spill] sm:$0xff] }
 0x2a6   : > { %v7604_v52 = vpop.f32.mrf.mxu1  ;;  %v7606_v19 = vpop.f32.mrf.mxu0  ;;  %v2041_v21 = vpack.c.bf16 %v1817_v46, %v1801_v59  ;;  %v1602_v28 = vadd.f32 %v7452_v0, %v7515_v36  ;;  %v1711_v0 = vadd.f32 %v7436_v34, %v7520_v54 }
 0x2a7   : > { %v2043_v31 = vpack.c.bf16 %v1819_v7, %v1803_v2  ;;  %v1598_v2 = vadd.f32 %v7434_v12, %v7515_v36 }
 0x2a8   : > { %v4833_v13 = vpop.f32.mrf.mxu1  ;;  %v4897_v14 = vpop.f32.mrf.mxu0  ;;  %3787 = vmatmul.mubr.bf16.vlgmr.msra.gmra.mxu1 %v2025_v16  ;;  %3884 = vmatmul.mubr.bf16.vlgmr.msra.gmra.mxu0 %v2027_v8  ;;  %v1836_v16 = vmax.f32 %v1701_v47, 0.0 }
 0x2a9   : > { %3794 = vmatprep.mubr.bf16.mxu1 %v2042_v51  ;;  %3891 = vmatprep.mubr.bf16.mxu0 %v2044_v44  ;;  %v1703_v51 = vadd.f32 %v7396_v4, %v7558_v18  ;;  %v1586_v44 = vadd.f32 %v7372_v53, %v7553_v9  ;;  %v1715_v4 = vadd.f32 %v7454_v41, %v7520_v54  ;;  %v1849_v53 = vmax.f32 %v1590_v29, 0.0 }
 0x2aa   : > { %v4834_v63 = vpop.f32.mrf.mxu1  ;;  %v4898_v43 = vpop.f32.mrf.mxu0  ;;  %v1866_v34 = vmax.f32 %v1598_v2, 0.0 }
 0x2ab   : > { %v4835_v57 = vadd.f32 %v4834_v63, %v4833_v13  ;;  %v4899_v27 = vadd.f32 %v4898_v43, %v4897_v14  ;;  %v1699_v13 = vadd.f32 %v8390_v23, %v7558_v18  ;;  %v2058_v14 = vpack.c.bf16 %v1850_v10, %v1834_v3 }
 0x2ac   : > { %v4836_v11 = vpop.f32.mrf.mxu1  ;;  %v4900_v8 = vpop.f32.mrf.mxu0  ;;  %v2060_v63 = vpack.c.bf16 %v1852_v48, %v1836_v16  ;;  %v1851_v59 = vmax.f32 %v1703_v51, 0.0  ;;  %v1833_v41 = vmax.f32 %v1586_v44, 0.0  ;;  %v1882_v10 = vmax.f32 %v1602_v28, 0.0 }
 0x2ad   : > { %v3207_v45 = vadd.f32 %v4835_v57, %v7619_v30  ;;  %v1835_v48 = vmax.f32 %v1699_v13, 0.0  ;;  %v1884_v29 = vmax.f32 %v1715_v4, 0.0  ;;  %v1600_v44 = vadd.f32 %v7444_v58, %v7553_v9 }
 0x2ae   : > { %v4837_v47 = vpop.f32.mrf.mxu1  ;;  %v4901_v5 = vpop.f32.mrf.mxu0  ;;  %v1713_v13 = vadd.f32 %v7446_v39, %v7558_v18  ;;  %v2074_v2 = vpack.c.bf16 %v1882_v10, %v1866_v34  ;;  %v1608_v39 = vadd.f32 %v7472_v40, %v7515_v36 }
 0x2af   : > { %v7634_v46 = vadd.f32 %v4899_v27, %v3207_v45  ;;  %v4838_v7 = vadd.f32 %v4837_v47, %v4836_v11  ;;  %v4902_v43 = vadd.f32 %v4901_v5, %v4900_v8  ;;  %v2057_v8 = vpack.c.bf16 %v1849_v53, %v1833_v41 }
 0x2b0   : > { %v4839_v57 = vpop.f32.mrf.mxu1  ;;  %v4903_v23 = vpop.f32.mrf.mxu0  ;;  %3795 = vmatmul.mubr.bf16.gmra.mxu1 %v2041_v21  ;;  %3892 = vmatmul.mubr.bf16.gmra.mxu0 %v2043_v31  ;;  %v2059_v21 = vpack.c.bf16 %v1851_v59, %v1835_v48  ;;  %v8391_v31 = vld [vmem:[#allocation16_spill] sm:$0xff] }
 0x2b1   : > { %v3210_v3 = vadd.f32 %v4838_v7, %v7619_v30  ;;  %3802 = vmatprep.mubr.bf16.mxu1 %v2058_v14  ;;  %3899 = vmatprep.mubr.bf16.mxu0 %v2060_v63  ;;  %v1596_v45 = vadd.f32 %v8391_v31, %v7553_v9  ;;  %v1868_v14 = vmax.f32 %v1711_v0, 0.0  ;;  %v8392_v63 = vld [vmem:[#allocation17_spill] sm:$0xff]  ;;  %v1612_v7 = vadd.f32 %v7484_v22, %v7515_v36 }
 0x2b2   : > { %v4840_v27 = vpop.f32.mrf.mxu1  ;;  %v4904_v16 = vpop.f32.mrf.mxu0  ;;  %v1709_v4 = vadd.f32 %v8392_v63, %v7558_v18  ;;  %v1881_v22 = vmax.f32 %v1600_v44, 0.0 }
 0x2b3   : > { %v7641_v51 = vadd.f32 %v4902_v43, %v3210_v3  ;;  %v4841_v12 = vadd.f32 %v4840_v27, %v4839_v57  ;;  %v4905_v11 = vadd.f32 %v4904_v16, %v4903_v23  ;;  %v1725_v43 = vadd.f32 %v7486_v6, %v7520_v54 }
 0x2b4   : > { %v4842_v47 = vpop.f32.mrf.mxu1  ;;  %v4906_v5 = vpop.f32.mrf.mxu0  ;;  %v2076_v0 = vpack.c.bf16 %v1884_v29, %v1868_v14  ;;  %v1721_v3 = vadd.f32 %v7474_v60, %v7520_v54  ;;  %v1883_v6 = vmax.f32 %v1713_v13, 0.0  ;;  %v1865_v10 = vmax.f32 %v1596_v45, 0.0 }
 0x2b5   : > { %v3215_v28 = vadd.f32 %v4841_v12, %v7619_v30  ;;  %v1914_v16 = vmax.f32 %v1612_v7, 0.0  ;;  %v1916_v12 = vmax.f32 %v1725_v43, 0.0  ;;  %v1867_v31 = vmax.f32 %v1709_v4, 0.0 }
 0x2b6   : > { %v4843_v53 = vpop.f32.mrf.mxu1  ;;  %v4907_v59 = vpop.f32.mrf.mxu0  ;;  %v2073_v45 = vpack.c.bf16 %v1881_v22, %v1865_v10  ;;  %v1719_v4 = vadd.f32 %v7466_v49, %v7558_v18  ;;  %v1622_v7 = vadd.f32 %v7526_v32, %v7515_v36  ;;  %v1731_v32 = vadd.f32 %v7506_v61, %v7520_v54 }
 0x2b7   : > { %v7656_v57 = vadd.f32 %v4905_v11, %v3215_v28  ;;  %v4844_v58 = vadd.f32 %v4843_v53, %v4842_v47  ;;  %v4908_v23 = vadd.f32 %v4907_v59, %v4906_v5  ;;  %v1898_v47 = vmax.f32 %v1608_v39, 0.0 }
 0x2b8   : > { %v4845_v41 = vpop.f32.mrf.mxu1  ;;  %v4909_v48 = vpop.f32.mrf.mxu0  ;;  %3803 = vmatmul.mubr.bf16.gmra.mxu1 %v2057_v8  ;;  %3900 = vmatmul.mubr.bf16.gmra.mxu0 %v2059_v21  ;;  %v1900_v5 = vmax.f32 %v1721_v3, 0.0  ;;  %v1610_v8 = vadd.f32 %v7476_v26, %v7553_v9  ;;  %v1723_v21 = vadd.f32 %v7478_v15, %v7558_v18  ;;  %v2075_v13 = vpack.c.bf16 %v1883_v6, %v1867_v31 }
 0x2b9   : > { %v3218_v27 = vadd.f32 %v4844_v58, %v7619_v30  ;;  %3810 = vmatprep.mubr.bf16.mxu1 %v2074_v2  ;;  %3907 = vmatprep.mubr.bf16.mxu0 %v2076_v0  ;;  %v1606_v28 = vadd.f32 %v7464_v37, %v7553_v9  ;;  %v2090_v53 = vpack.c.bf16 %v1914_v16, %v1898_v47  ;;  %v1946_v22 = vmax.f32 %v1622_v7, 0.0 }
 0x2ba   : > { %v4846_v29 = vpop.f32.mrf.mxu1  ;;  %v4910_v11 = vpop.f32.mrf.mxu0  ;;  %v2092_v59 = vpack.c.bf16 %v1916_v12, %v1900_v5  ;;  %v1735_v15 = vadd.f32 %v7528_v62, %v7520_v54  ;;  %v1913_v37 = vmax.f32 %v1610_v8, 0.0  ;;  %v1915_v0 = vmax.f32 %v1723_v21, 0.0 }
 0x2bb   : > { %v7663_v40 = vadd.f32 %v4908_v23, %v3218_v27  ;;  %v4847_v34 = vadd.f32 %v4846_v29, %v4845_v41  ;;  %v4911_v60 = vadd.f32 %v4910_v11, %v4909_v48  ;;  %v1618_v39 = vadd.f32 %v7504_v25, %v7515_v36 }
 0x2bc   : > { %v4848_v14 = vpop.f32.mrf.mxu1  ;;  %v4912_v44 = vpop.f32.mrf.mxu0  ;;  %v1897_v62 = vmax.f32 %v1606_v28, 0.0  ;;  %v1899_v48 = vmax.f32 %v1719_v4, 0.0  ;;  %v1948_v10 = vmax.f32 %v1735_v15, 0.0  ;;  %v1616_v31 = vadd.f32 %v7496_v17, %v7553_v9 }
 0x2bd   : > { %v3223_v63 = vadd.f32 %v4847_v34, %v7619_v30  ;;  %v1930_v61 = vmax.f32 %v1618_v39, 0.0  ;;  %v1932_v47 = vmax.f32 %v1731_v32, 0.0  ;;  %v1620_v5 = vadd.f32 %v7508_v55, %v7553_v9 }
 0x2be   : > { %v4849_v43 = vpop.f32.mrf.mxu1  ;;  %v4913_v26 = vpop.f32.mrf.mxu0  ;;  %v2089_v29 = vpack.c.bf16 %v1913_v37, %v1897_v62  ;;  %v2091_v11 = vpack.c.bf16 %v1915_v0, %v1899_v48  ;;  %v1733_v8 = vadd.f32 %v7510_v24, %v7558_v18  ;;  %v1745_v17 = vadd.f32 %v7570_v20, %v7520_v54 }
 0x2bf   : > { %v7678_v2 = vadd.f32 %v4911_v60, %v3223_v63  ;;  %v4850_v58 = vadd.f32 %v4849_v43, %v4848_v14  ;;  %v4914_v23 = vadd.f32 %v4913_v26, %v4912_v44  ;;  %v1729_v14 = vadd.f32 %v7498_v56, %v7558_v18 }
 0x2c0   : > { %v4851_v49 = vpop.f32.mrf.mxu1  ;;  %v4915_v3 = vpop.f32.mrf.mxu0  ;;  %3811 = vmatmul.mubr.bf16.gmra.mxu1 %v2073_v45  ;;  %3908 = vmatmul.mubr.bf16.gmra.mxu0 %v2075_v13  ;;  %v1632_v44 = vadd.f32 %v7568_v1, %v7515_v36  ;;  %v2106_v28 = vpack.c.bf16 %v1946_v22, %v1930_v61  ;;  %v2108_v7 = vpack.c.bf16 %v1948_v10, %v1932_v47  ;;  %v1945_v1 = vmax.f32 %v1620_v5, 0.0 }
 0x2c1   : > { %v3226_v41 = vadd.f32 %v4850_v58, %v7619_v30  ;;  %3818 = vmatprep.mubr.bf16.mxu1 %v2090_v53  ;;  %3915 = vmatprep.mubr.bf16.mxu0 %v2092_v59  ;;  %v1628_v24 = vadd.f32 %v7546_v42, %v7515_v36  ;;  %v1741_v56 = vadd.f32 %v7548_v38, %v7520_v54  ;;  %v1947_v20 = vmax.f32 %v1733_v8, 0.0 }
 0x2c2   : > { %v4852_v6 = vpop.f32.mrf.mxu1  ;;  %v4916_v27 = vpop.f32.mrf.mxu0  ;;  %v1978_v59 = vmax.f32 %v1632_v44, 0.0  ;;  %v1980_v15 = vmax.f32 %v1745_v17, 0.0  ;;  %v1929_v37 = vmax.f32 %v1616_v31, 0.0  ;;  %v1931_v0 = vmax.f32 %v1729_v14, 0.0 }
 0x2c3   : > { %v7685_v16 = vadd.f32 %v4914_v23, %v3226_v41  ;;  %v4853_v25 = vadd.f32 %v4852_v6, %v4851_v49  ;;  %v4917_v12 = vadd.f32 %v4916_v27, %v4915_v3  ;;  %v1962_v38 = vmax.f32 %v1628_v24, 0.0 }
 0x2c4   : > { %v4854_v34 = vpop.f32.mrf.mxu1  ;;  %v4918_v60 = vpop.f32.mrf.mxu0  ;;  %v1964_v49 = vmax.f32 %v1741_v56, 0.0  ;;  %v2105_v41 = vpack.c.bf16 %v1945_v1, %v1929_v37  ;;  %v2107_v62 = vpack.c.bf16 %v1947_v20, %v1931_v0  ;;  %v1630_v6 = vadd.f32 %v7560_v35, %v7553_v9  ;;  %v8394_v35 = vld [vmem:[#allocation9_spill] sm:$0xff] }
 0x2c5   : > { %v3231_v21 = vadd.f32 %v4853_v25, %v7619_v30  ;;  %v1743_v27 = vadd.f32 %v7562_v50, %v7558_v18  ;;  %v1755_v31 = vadd.f32 %v7606_v19, %v7520_v54  ;;  %v1739_v5 = vadd.f32 %v8394_v35, %v7558_v18 }
 0x2c6   : > { %v4855_v45 = vpop.f32.mrf.mxu1  ;;  %v4919_v13 = vpop.f32.mrf.mxu0  ;;  %v1638_v50 = vadd.f32 %v7588_v33, %v7515_v36  ;;  %v1977_v17 = vmax.f32 %v1630_v6, 0.0 }
 0x2c7   : > { %v7700_v63 = vadd.f32 %v4917_v12, %v3231_v21  ;;  %v4856_v55 = vadd.f32 %v4855_v45, %v4854_v34  ;;  %v4920_v4 = vadd.f32 %v4919_v13, %v4918_v60  ;;  %v2122_v12 = vpack.c.bf16 %v1978_v59, %v1962_v38  ;;  %v8393_v60 = vld [vmem:[#allocation8_spill] sm:$0xff] }
 0x2c8   : > { %v4857_v43 = vpop.f32.mrf.mxu1  ;;  %v4921_v26 = vpop.f32.mrf.mxu0  ;;  %3819 = vmatmul.mubr.bf16.gmra.mxu1 %v2089_v29  ;;  %3916 = vmatmul.mubr.bf16.gmra.mxu0 %v2091_v11  ;;  %v2124_v29 = vpack.c.bf16 %v1980_v15, %v1964_v49  ;;  %v1642_v11 = vadd.f32 %v7604_v52, %v7515_v36  ;;  %v1626_v47 = vadd.f32 %v8393_v60, %v7553_v9  ;;  %v8395_v52 = vld [vmem:[#allocation10_spill] sm:$0xff]  ;;  %v1979_v45 = vmax.f32 %v1743_v27, 0.0  ;;  %v8396_v15 = vld [vmem:[#allocation11_spill] sm:$0xff] }
 0x2c9   : > { %v3234_v53 = vadd.f32 %v4856_v55, %v7619_v30  ;;  %3826 = vmatprep.mubr.bf16.mxu1 %v2106_v28  ;;  %3923 = vmatprep.mubr.bf16.mxu0 %v2108_v7  ;;  %v1751_v14 = vadd.f32 %v8395_v52, %v7520_v54  ;;  %v1963_v24 = vmax.f32 %v1739_v5, 0.0 }
 0x2ca   : > { %v4858_v58 = vpop.f32.mrf.mxu1  ;;  %v4922_v23 = vpop.f32.mrf.mxu0  ;;  %v2010_v55 = vmax.f32 %v1642_v11, 0.0  ;;  %v1961_v33 = vmax.f32 %v1626_v47, 0.0 }
 0x2cb   : > { %v7707_v42 = vadd.f32 %v4920_v4, %v3234_v53  ;;  %v4859_v39 = vadd.f32 %v4858_v58, %v4857_v43  ;;  %v4923_v22 = vadd.f32 %v4922_v23, %v4921_v26  ;;  %v2012_v4 = vmax.f32 %v1755_v31, 0.0  ;;  %v8397_v23 = vld [vmem:[#allocation15_spill] sm:$0xff] }
 0x2cc   : > { %v4860_v3 = vpop.f32.mrf.mxu1  ;;  %v4924_v32 = vpop.f32.mrf.mxu0  ;;  %v1994_v26 = vmax.f32 %v1638_v50, 0.0  ;;  %v1996_v54 = vmax.f32 %v1751_v14, 0.0  ;;  %v2121_v53 = vpack.c.bf16 %v1977_v17, %v1961_v33  ;;  %v2123_v59 = vpack.c.bf16 %v1979_v45, %v1963_v24 }
 0x2cd   : > { %v3239_v48 = vadd.f32 %v4859_v39, %v7619_v30  ;;  %v1640_v58 = vadd.f32 %v8396_v15, %v7553_v9  ;;  %v1753_v37 = vadd.f32 %v8397_v23, %v7558_v18 }
 0x2ce   : > { %v4861_v10 = vpop.f32.mrf.mxu1  ;;  %v4925_v25 = vpop.f32.mrf.mxu0 }
 0x2cf   : > { %v7718_v61 = vadd.f32 %v4923_v22, %v3239_v48  ;;  %v4862_v34 = vadd.f32 %v4861_v10, %v4860_v3  ;;  %v4926_v44 = vadd.f32 %v4925_v25, %v4924_v32  ;;  %v2138_v3 = vpack.c.bf16 %v2010_v55, %v1994_v26  ;;  %v8399_v48 = vld [vmem:[#allocation19_spill] sm:$0xff] }
 0x2d0   : > { %v4863_v8 = vpop.f32.mrf.mxu1  ;;  %v4927_v21 = vpop.f32.mrf.mxu0  ;;  %3827 = vmatmul.mubr.bf16.gmra.mxu1 %v2105_v41  ;;  %3924 = vmatmul.mubr.bf16.gmra.mxu0 %v2107_v62  ;;  %v2140_v32 = vpack.c.bf16 %v2012_v4, %v1996_v54  ;;  %v8398_v41 = vld [vmem:[#allocation5_spill] sm:$0xff]  ;;  %v1749_v22 = vadd.f32 %v8399_v48, %v7558_v18 }
 0x2d1   : > { %v3242_v19 = vadd.f32 %v4862_v34, %v7619_v30  ;;  %3834 = vmatprep.mubr.bf16.mxu1 %v2122_v12  ;;  %3931 = vmatprep.mubr.bf16.mxu0 %v2124_v29  ;;  %v1636_v62 = vadd.f32 %v8398_v41, %v7553_v9  ;;  %v2009_v12 = vmax.f32 %v1640_v58, 0.0  ;;  %v2011_v29 = vmax.f32 %v1753_v37, 0.0 }
 0x2d2   : > { %v4864_v13 = vpop.f32.mrf.mxu1  ;;  %v4928_v28 = vpop.f32.mrf.mxu0  ;;  %v1995_v47 = vmax.f32 %v1749_v22, 0.0 }
 0x2d3   : > { %v7729_v7 = vadd.f32 %v4926_v44, %v3242_v19  ;;  %v4865_v36 = vadd.f32 %v4864_v13, %v4863_v8  ;;  %v4929_v20 = vadd.f32 %v4928_v28, %v4927_v21  ;;  %v1993_v9 = vmax.f32 %v1636_v62, 0.0 }
 0x2d4   : > { %v4866_v56 = vpop.f32.mrf.mxu1  ;;  %v4930_v43 = vpop.f32.mrf.mxu0  ;;  %v2139_v21 = vpack.c.bf16 %v2011_v29, %v1995_v47 }
 0x2d5   : > { %v3247_v1 = vadd.f32 %v4865_v36, %v7619_v30  ;;  %v2137_v8 = vpack.c.bf16 %v2009_v12, %v1993_v9 }
 0x2d6   : > { %v4867_v0 = vpop.f32.mrf.mxu1  ;;  %v4931_v39 = vpop.f32.mrf.mxu0 }
 0x2d7   : > { %v7736_v38 = vadd.f32 %v4929_v20, %v3247_v1  ;;  %v4868_v49 = vadd.f32 %v4867_v0, %v4866_v56  ;;  %v4932_v25 = vadd.f32 %v4931_v39, %v4930_v43 }
 0x2d8   : > { %v4869_v6 = vpop.f32.mrf.mxu1  ;;  %v4933_v27 = vpop.f32.mrf.mxu0  ;;  %3835 = vmatmul.mubr.bf16.gmra.mxu1 %v2121_v53  ;;  %3932 = vmatmul.mubr.bf16.gmra.mxu0 %v2123_v59 }
 0x2d9   : > { %v3250_v10 = vadd.f32 %v4868_v49, %v7619_v30  ;;  %3842 = vmatprep.mubr.bf16.mxu1 %v2138_v3  ;;  %3939 = vmatprep.mubr.bf16.mxu0 %v2140_v32 }
 0x2da   : > { %v4870_v11 = vpop.f32.mrf.mxu1  ;;  %v4934_v31 = vpop.f32.mrf.mxu0 }
 0x2db   : > { %v7743_v34 = vadd.f32 %v4932_v25, %v3250_v10  ;;  %v4871_v60 = vadd.f32 %v4870_v11, %v4869_v6  ;;  %v4935_v50 = vadd.f32 %v4934_v31, %v4933_v27 }
 0x2dc   : > { %v4872_v35 = vpop.f32.mrf.mxu1  ;;  %v4936_v18 = vpop.f32.mrf.mxu0 }
 0x2dd   : > { %v3255_v5 = vadd.f32 %v4871_v60, %v7619_v30 }
 0x2de   : > { %v4873_v52 = vpop.f32.mrf.mxu1  ;;  %v4937_v14 = vpop.f32.mrf.mxu0 }
 0x2df   : > { %v7746_v19 = vadd.f32 %v4935_v50, %v3255_v5  ;;  %v4874_v44 = vadd.f32 %v4873_v52, %v4872_v35  ;;  %v4938_v28 = vadd.f32 %v4937_v14, %v4936_v18 }
 0x2e0   : > { %v4875_v17 = vpop.f32.mrf.mxu1  ;;  %v4939_v45 = vpop.f32.mrf.mxu0  ;;  %3843 = vmatmul.mubr.bf16.gmra.mxu1 %v2137_v8  ;;  %3940 = vmatmul.mubr.bf16.gmra.mxu0 %v2139_v21 }
 0x2e1   : > { %v3258_v13 = vadd.f32 %v4874_v44, %v7619_v30 }
 0x2e2   : > { %v4876_v55 = vpop.f32.mrf.mxu1  ;;  %v4940_v4 = vpop.f32.mrf.mxu0 }
 0x2e3   : > { %v7749_v36 = vadd.f32 %v4938_v28, %v3258_v13  ;;  %v4877_v33 = vadd.f32 %v4876_v55, %v4875_v17  ;;  %v4941_v26 = vadd.f32 %v4940_v4, %v4939_v45 }
 0x2e4   : > { %v4878_v24 = vpop.f32.mrf.mxu1  ;;  %v4942_v56 = vpop.f32.mrf.mxu0 }
 0x2e5   : > { %v3263_v43 = vadd.f32 %v4877_v33, %v7619_v30 }
 0x2e6   : > { %v4879_v54 = vpop.f32.mrf.mxu1  ;;  %v4943_v1 = vpop.f32.mrf.mxu0 }
 0x2e7   : > { %v7752_v20 = vadd.f32 %v4941_v26, %v3263_v43  ;;  %v4880_v53 = vadd.f32 %v4879_v54, %v4878_v24  ;;  %v4944_v23 = vadd.f32 %v4943_v1, %v4942_v56 }
 0x2e8   : > { %v4961_v59 = vpop.f32.mrf.mxu1  ;;  %v5025_v15 = vpop.f32.mrf.mxu0 }
 0x2e9   : > { %v3266_v58 = vadd.f32 %v4880_v53, %v7619_v30 }
 0x2ea   : > { %v4962_v37 = vpop.f32.mrf.mxu1  ;;  %v5026_v0 = vpop.f32.mrf.mxu0 }
 0x2eb   : > { %v7755_v39 = vadd.f32 %v4944_v23, %v3266_v58  ;;  %v4963_v49 = vadd.f32 %v4962_v37, %v4961_v59  ;;  %v5027_v3 = vadd.f32 %v5026_v0, %v5025_v15 }
 0x2ec   : > { %v4964_v32 = vpop.f32.mrf.mxu1  ;;  %v5028_v41 = vpop.f32.mrf.mxu0 }
 0x2ed   : > { %v3401_v62 = vadd.f32 %v4963_v49, %v7634_v46 }
 0x2ee   : > { %v4965_v48 = vpop.f32.mrf.mxu1  ;;  %v5029_v22 = vpop.f32.mrf.mxu0 }
 0x2ef   : > { %v7758_v6 = vadd.f32 %v5027_v3, %v3401_v62  ;;  %v4966_v27 = vadd.f32 %v4965_v48, %v4964_v32  ;;  %v5030_v10 = vadd.f32 %v5029_v22, %v5028_v41 }
 0x2f0   : > { %v4967_v25 = vpop.f32.mrf.mxu1  ;;  %v5031_v12 = vpop.f32.mrf.mxu0 }
 0x2f1   : > { %v3404_v30 = vadd.f32 %v4966_v27, %v7641_v51 }
 0x2f2   : > { %v4968_v29 = vpop.f32.mrf.mxu1  ;;  %v5032_v11 = vpop.f32.mrf.mxu0 }
 0x2f3   : > { %v7761_v31 = vadd.f32 %v5030_v10, %v3404_v30  ;;  %v4969_v60 = vadd.f32 %v4968_v29, %v4967_v25  ;;  %v5033_v9 = vadd.f32 %v5032_v11, %v5031_v12 }
 0x2f4   : > { %v4970_v47 = vpop.f32.mrf.mxu1  ;;  %v5034_v35 = vpop.f32.mrf.mxu0 }
 0x2f5   : > { %v3409_v46 = vadd.f32 %v4969_v60, %v7656_v57 }
 0x2f6   : > { %v4971_v18 = vpop.f32.mrf.mxu1  ;;  %v5035_v5 = vpop.f32.mrf.mxu0 }
 0x2f7   : > { %v7764_v50 = vadd.f32 %v5033_v9, %v3409_v46  ;;  %v4972_v8 = vadd.f32 %v4971_v18, %v4970_v47  ;;  %v5036_v21 = vadd.f32 %v5035_v5, %v5034_v35 }
 0x2f8   : > { %v4973_v52 = vpop.f32.mrf.mxu1  ;;  %v5037_v14 = vpop.f32.mrf.mxu0 }
 0x2f9   : > { %v3412_v51 = vadd.f32 %v4972_v8, %v7663_v40 }
 0x2fa   : > { %v4974_v44 = vpop.f32.mrf.mxu1  ;;  %v5038_v17 = vpop.f32.mrf.mxu0 }
 0x2fb   : > { %v7767_v45 = vadd.f32 %v5036_v21, %v3412_v51  ;;  %v4975_v13 = vadd.f32 %v4974_v44, %v4973_v52  ;;  %v5039_v28 = vadd.f32 %v5038_v17, %v5037_v14 }
 0x2fc   : > { %v4976_v55 = vpop.f32.mrf.mxu1  ;;  %v5040_v4 = vpop.f32.mrf.mxu0 }
 0x2fd   : > { %v3417_v57 = vadd.f32 %v4975_v13, %v7678_v2 }
 0x2fe   : > { %v4977_v33 = vpop.f32.mrf.mxu1  ;;  %v5041_v24 = vpop.f32.mrf.mxu0 }
 0x2ff   : > { %v7770_v56 = vadd.f32 %v5039_v28, %v3417_v57  ;;  %v4978_v43 = vadd.f32 %v4977_v33, %v4976_v55  ;;  %v5042_v26 = vadd.f32 %v5041_v24, %v5040_v4 }
 0x300   : > { %v4979_v54 = vpop.f32.mrf.mxu1  ;;  %v5043_v1 = vpop.f32.mrf.mxu0 }
 0x301   : > { %v3420_v40 = vadd.f32 %v4978_v43, %v7685_v16 }
 0x302   : > { %v4980_v53 = vpop.f32.mrf.mxu1  ;;  %v5044_v59 = vpop.f32.mrf.mxu0 }
 0x303   : > { %v7773_v15 = vadd.f32 %v5042_v26, %v3420_v40  ;;  %v4981_v58 = vadd.f32 %v4980_v53, %v4979_v54  ;;  %v5045_v23 = vadd.f32 %v5044_v59, %v5043_v1 }
 0x304   : > { %v4982_v37 = vpop.f32.mrf.mxu1  ;;  %v5046_v0 = vpop.f32.mrf.mxu0 }
 0x305   : > { %v3425_v2 = vadd.f32 %v4981_v58, %v7700_v63 }
 0x306   : > { %v4983_v49 = vpop.f32.mrf.mxu1  ;;  %v5047_v3 = vpop.f32.mrf.mxu0 }
 0x307   : > { %v7776_v32 = vadd.f32 %v5045_v23, %v3425_v2  ;;  %v4984_v41 = vadd.f32 %v4983_v49, %v4982_v37  ;;  %v5048_v62 = vadd.f32 %v5047_v3, %v5046_v0 }
 0x308   : > { %v4985_v48 = vpop.f32.mrf.mxu1  ;;  %v5049_v22 = vpop.f32.mrf.mxu0 }
 0x309   : > { %v3428_v16 = vadd.f32 %v4984_v41, %v7707_v42 }
 0x30a   : > { %v4986_v27 = vpop.f32.mrf.mxu1  ;;  %v5050_v10 = vpop.f32.mrf.mxu0 }
 0x30b   : > { %v7779_v25 = vadd.f32 %v5048_v62, %v3428_v16  ;;  %v4987_v12 = vadd.f32 %v4986_v27, %v4985_v48  ;;  %v5051_v30 = vadd.f32 %v5050_v10, %v5049_v22 }
 0x30c   : > { %v4988_v29 = vpop.f32.mrf.mxu1  ;;  %v5052_v11 = vpop.f32.mrf.mxu0 }
 0x30d   : > { %v3433_v63 = vadd.f32 %v4987_v12, %v7718_v61 }
 0x30e   : > { %v4989_v60 = vpop.f32.mrf.mxu1  ;;  %v5053_v9 = vpop.f32.mrf.mxu0 }
 0x30f   : > { %v7782_v47 = vadd.f32 %v5051_v30, %v3433_v63  ;;  %v4990_v35 = vadd.f32 %v4989_v60, %v4988_v29  ;;  %v5054_v46 = vadd.f32 %v5053_v9, %v5052_v11 }
 0x310   : > { %v4991_v18 = vpop.f32.mrf.mxu1  ;;  %v5055_v5 = vpop.f32.mrf.mxu0 }
 0x311   : > { %v3436_v42 = vadd.f32 %v4990_v35, %v7729_v7 }
 0x312   : > { %v4992_v8 = vpop.f32.mrf.mxu1  ;;  %v5056_v21 = vpop.f32.mrf.mxu0 }
 0x313   : > { %v7785_v52 = vadd.f32 %v5054_v46, %v3436_v42  ;;  %v4993_v14 = vadd.f32 %v4992_v8, %v4991_v18  ;;  %v5057_v51 = vadd.f32 %v5056_v21, %v5055_v5  ;;  %v5610_v21 = vld [vmem:[%s8269_s7 + $0x8] sm:$0xff]  }
 0x314   : > { %v4994_v44 = vpop.f32.mrf.mxu1  ;;  %v5058_v17 = vpop.f32.mrf.mxu0  ;;  %5377 = vmatprep.subr.bf16.mxu1 %v5610_v21 }
 0x315   : > { %v3441_v61 = vadd.f32 %v4993_v14, %v7736_v38  ;;  %5378 = vmatpush3.bf16.msra.mxu1 %v5610_v21 }
 0x316   : > { %v4995_v13 = vpop.f32.mrf.mxu1  ;;  %v5059_v28 = vpop.f32.mrf.mxu0 }
 0x317   : > { %v7788_v55 = vadd.f32 %v5057_v51, %v3441_v61  ;;  %v4996_v4 = vadd.f32 %v4995_v13, %v4994_v44  ;;  %v5060_v57 = vadd.f32 %v5059_v28, %v5058_v17 }
 0x318   : > { %v4997_v33 = vpop.f32.mrf.mxu1  ;;  %v5061_v24 = vpop.f32.mrf.mxu0 }
 0x319   : > { %8400 = vst [vmem:[#allocation7_spill] sm:$0xff] %v7788_v55  ;;  %v3444_v7 = vadd.f32 %v4996_v4, %v7743_v34 }
 0x31a   : > { %v4998_v43 = vpop.f32.mrf.mxu1  ;;  %v5062_v26 = vpop.f32.mrf.mxu0 }
 0x31b   : > { %v7791_v54 = vadd.f32 %v5060_v57, %v3444_v7  ;;  %v4999_v1 = vadd.f32 %v4998_v43, %v4997_v33  ;;  %v5063_v40 = vadd.f32 %v5062_v26, %v5061_v24 }
 0x31c   : > { %v5000_v53 = vpop.f32.mrf.mxu1  ;;  %v5064_v59 = vpop.f32.mrf.mxu0 }
 0x31d   : > { %8401 = vst [vmem:[#allocation14_spill] sm:$0xff] %v7791_v54  ;;  %v3449_v38 = vadd.f32 %v4999_v1, %v7746_v19 }
 0x31e   : > { %v5001_v58 = vpop.f32.mrf.mxu1  ;;  %v5065_v23 = vpop.f32.mrf.mxu0 }
 0x31f   : > { %v7794_v37 = vadd.f32 %v5063_v40, %v3449_v38  ;;  %v5002_v0 = vadd.f32 %v5001_v58, %v5000_v53  ;;  %v5066_v2 = vadd.f32 %v5065_v23, %v5064_v59 }
 0x320   : > { %v5003_v49 = vpop.f32.mrf.mxu1  ;;  %v5067_v3 = vpop.f32.mrf.mxu0 }
 0x321   : > { %8402 = vst [vmem:[#allocation6_spill] sm:$0xff] %v7794_v37  ;;  %v3452_v34 = vadd.f32 %v5002_v0, %v7749_v36 }
 0x322   : > { %v5004_v41 = vpop.f32.mrf.mxu1  ;;  %v5068_v62 = vpop.f32.mrf.mxu0 }
 0x323   : > { %v7797_v48 = vadd.f32 %v5066_v2, %v3452_v34  ;;  %v5005_v22 = vadd.f32 %v5004_v41, %v5003_v49  ;;  %v5069_v16 = vadd.f32 %v5068_v62, %v5067_v3 }
 0x324   : > { %v5006_v27 = vpop.f32.mrf.mxu1  ;;  %v5070_v10 = vpop.f32.mrf.mxu0 }
 0x325   : > { %8403 = vst [vmem:[#allocation12_spill] sm:$0xff] %v7797_v48  ;;  %v3457_v19 = vadd.f32 %v5005_v22, %v7752_v20 }
 0x326   : > { %v5007_v12 = vpop.f32.mrf.mxu1  ;;  %v5071_v30 = vpop.f32.mrf.mxu0 }
 0x327   : > { %v7800_v29 = vadd.f32 %v5069_v16, %v3457_v19  ;;  %v5008_v11 = vadd.f32 %v5007_v12, %v5006_v27  ;;  %v5072_v63 = vadd.f32 %v5071_v30, %v5070_v10 }
 0x328   : > { %v7802_v60 = vpop.f32.mrf.mxu1  ;;  %v7804_v9 = vpop.f32.mrf.mxu0 }
 0x329   : > { %8404 = vst [vmem:[#allocation13_spill] sm:$0xff] %v7800_v29  ;;  %v3460_v36 = vadd.f32 %v5008_v11, %v7755_v39 }
 0x32a   : > { %v5090_v35 = vpop.f32.mrf.mxu1  ;;  %v7807_v46 = vpop.f32.mrf.mxu0 }
 0x32b   : > { %v7809_v18 = vadd.f32 %v5072_v63, %v3460_v36 }
 0x32c   : > { %v5092_v5 = vpop.f32.mrf.mxu1  ;;  %v7811_v42 = vpop.f32.mrf.mxu0 }
 0x32d   : > { %8405 = vst [vmem:[#allocation18_spill] sm:$0xff] %v7809_v18 }
 0x32e   : > { %v5093_v20 = vpop.f32.mrf.mxu1  ;;  %v7813_v8 = vpop.f32.mrf.mxu0 }
 0x330   : > { %v7818_v14 = vpop.f32.mrf.mxu1  ;;  %v7820_v51 = vpop.f32.mrf.mxu0 }
 0x332   : > { %v7822_v39 = vpop.f32.mrf.mxu1  ;;  %v7824_v44 = vpop.f32.mrf.mxu0 }
 0x334   : > { %v7826_v17 = vpop.f32.mrf.mxu1  ;;  %v7828_v61 = vpop.f32.mrf.mxu0 }
 0x336   : > { %v7830_v13 = vpop.f32.mrf.mxu1  ;;  %v7832_v28 = vpop.f32.mrf.mxu0 }
 0x338   : > { %v7834_v4 = vpop.f32.mrf.mxu1  ;;  %v7836_v57 = vpop.f32.mrf.mxu0 }
 0x33a   : > { %v7838_v33 = vpop.f32.mrf.mxu1  ;;  %v7840_v24 = vpop.f32.mrf.mxu0 }
 0x33c   : > { %v7842_v7 = vpop.f32.mrf.mxu1  ;;  %v7844_v43 = vpop.f32.mrf.mxu0 }
 0x33e   : > { %v7846_v26 = vpop.f32.mrf.mxu1  ;;  %v7848_v1 = vpop.f32.mrf.mxu0 }
 0x340   : > { %v7850_v40 = vpop.f32.mrf.mxu1  ;;  %v7852_v53 = vpop.f32.mrf.mxu0 }
 0x342   : > { %v7854_v59 = vpop.f32.mrf.mxu1  ;;  %v7856_v38 = vpop.f32.mrf.mxu0 }
 0x344   : > { %v7858_v58 = vpop.f32.mrf.mxu1  ;;  %v7860_v23 = vpop.f32.mrf.mxu0 }
 0x346   : > { %v7862_v0 = vpop.f32.mrf.mxu1  ;;  %v7864_v2 = vpop.f32.mrf.mxu0 }
 0x348   : > { %v7866_v49 = vpop.f32.mrf.mxu1  ;;  %v7868_v3 = vpop.f32.mrf.mxu0 }
 0x34a   : > { %v7870_v34 = vpop.f32.mrf.mxu1  ;;  %v7872_v41 = vpop.f32.mrf.mxu0 }
 0x34c   : > { %v7874_v62 = vpop.f32.mrf.mxu1  ;;  %v7876_v22 = vpop.f32.mrf.mxu0 }
 0x34d   : > { %8406 = vst [vmem:[#allocation16_spill] sm:$0xff] %v7876_v22 }
 0x34e   : > { %v7878_v16 = vpop.f32.mrf.mxu1  ;;  %v7880_v27 = vpop.f32.mrf.mxu0 }
 0x34f   : > { %8407 = vst [vmem:[#allocation17_spill] sm:$0xff] %v7880_v27 }
 0x350   : > { %v7882_v10 = vpop.f32.mrf.mxu1  ;;  %v7884_v19 = vpop.f32.mrf.mxu0 }
 0x351   : > { %8408 = vst [vmem:[#allocation8_spill] sm:$0xff] %v7884_v19 }
 0x352   : > { %v7886_v12 = vpop.f32.mrf.mxu1  ;;  %v7888_v30 = vpop.f32.mrf.mxu0 }
 0x353   : > { %8409 = vst [vmem:[#allocation9_spill] sm:$0xff] %v7888_v30 }
 0x354   : > { %v7890_v11 = vpop.f32.mrf.mxu1  ;;  %v7892_v63 = vpop.f32.mrf.mxu0 }
 0x355   : > { %8410 = vst [vmem:[#allocation10_spill] sm:$0xff] %v7890_v11  ;;  %8411 = vst [vmem:[#allocation11_spill] sm:$0xff] %v7892_v63 }
 0x356   : > { %v7894_v36 = vpop.f32.mrf.mxu1  ;;  %v7896_v21 = vpop.f32.mrf.mxu0 }
 0x357   : > { %8412 = vst [vmem:[#allocation15_spill] sm:$0xff] %v7894_v36  ;;  %8413 = vst [vmem:[#allocation5_spill] sm:$0xff] %v7896_v21 }
 0x358   : > { %v7898_v18 = vpop.f32.mrf.mxu1  ;;  %v7900_v29 = vpop.f32.mrf.mxu0 }
 0x359   : > { %8414 = vst [vmem:[#allocation19_spill] sm:$0xff] %v7898_v18  ;;  %8415 = vst [vmem:[#allocation20_spill] sm:$0xff] %v7900_v29  ;;  %v5091_v29 = vadd.f32 %v5090_v35, %v7802_v60 }
 0x35a   : > { %v7902_v48 = vpop.f32.mrf.mxu1  ;;  %v7904_v37 = vpop.f32.mrf.mxu0 }
 0x35b   : > { %8416 = vst [vmem:[#allocation21_spill] sm:$0xff] %v7902_v48  ;;  %8417 = vst [vmem:[#allocation22_spill] sm:$0xff] %v7904_v37 }
 0x35c   : > { %v7906_v54 = vpop.f32.mrf.mxu1  ;;  %v7908_v19 = vpop.f32.mrf.mxu0 }
 0x35d   : > { %8418 = vst [vmem:[#allocation23_spill] sm:$0xff] %v7906_v54  ;;  %8419 = vst [vmem:[#allocation24_spill] sm:$0xff] %v7908_v19  ;;  %v5094_v54 = vadd.f32 %v5093_v20, %v5092_v5  ;;  %v5158_v20 = vadd.f32 %v7813_v8, %v7811_v42  ;;  %v5161_v42 = vadd.f32 %v7824_v44, %v7820_v51 }
 0x35e   : > { %v7910_v30 = vpop.f32.mrf.mxu1  ;;  %v7912_v11 = vpop.f32.mrf.mxu0 }
 0x35f   : > { %8420 = vst [vmem:[#allocation25_spill] sm:$0xff] %v7910_v30  ;;  %8421 = vst [vmem:[#allocation26_spill] sm:$0xff] %v7912_v11  ;;  %v3595_v11 = vadd.f32 %v5091_v29, %v7758_v6 }
 0x360   : > { %v7914_v63 = vpop.f32.mrf.mxu1  ;;  %v7916_v36 = vpop.f32.mrf.mxu0 }
 0x361   : > { %8422 = vst [vmem:[#allocation27_spill] sm:$0xff] %v7914_v63  ;;  %8423 = vst [vmem:[#allocation28_spill] sm:$0xff] %v7916_v36  ;;  %v5155_v36 = vadd.f32 %v7807_v46, %v7804_v9 }
 0x362   : > { %v7918_v21 = vpop.f32.mrf.mxu1  ;;  %v7920_v18 = vpop.f32.mrf.mxu0 }
 0x363   : > { %8424 = vst [vmem:[#allocation29_spill] sm:$0xff] %v7918_v21  ;;  %8425 = vst [vmem:[#allocation30_spill] sm:$0xff] %v7920_v18  ;;  %v3598_v18 = vadd.f32 %v5094_v54, %v7761_v31  ;;  %v3692_v35 = vadd.f32 %v5155_v36, %v3595_v11  ;;  %v5100_v31 = vadd.f32 %v7830_v13, %v7826_v17 }
 0x364   : > { %v7923_v48 = vpop.f32.mrf.mxu1  ;;  %v7925_v37 = vpop.f32.mrf.mxu0 }
 0x365   : > { %8426 = vst [vmem:[#allocation31_spill] sm:$0xff] %v7923_v48  ;;  %8427 = vst [vmem:[#allocation32_spill] sm:$0xff] %v7925_v37  ;;  %v5097_v37 = vadd.f32 %v7822_v39, %v7818_v14  ;;  %v3695_v48 = vadd.f32 %v5158_v20, %v3598_v18  ;;  %v5103_v18 = vadd.f32 %v7838_v33, %v7834_v4 }
 0x366   : > { %v7927_v19 = vpop.f32.mrf.mxu1  ;;  %v7929_v30 = vpop.f32.mrf.mxu0  ;;  %v3606_v13 = vadd.f32 %v5100_v31, %v7767_v45  ;;  %v5106_v45 = vadd.f32 %v7846_v26, %v7842_v7  ;;  %v5109_v7 = vadd.f32 %v7854_v59, %v7850_v40 }
 0x367   : > { %8428 = vst [vmem:[#allocation33_spill] sm:$0xff] %v7927_v19  ;;  %8429 = vst [vmem:[#allocation34_spill] sm:$0xff] %v7929_v30  ;;  %v3603_v9 = vadd.f32 %v5097_v37, %v7764_v50  ;;  %v3611_v4 = vadd.f32 %v5103_v18, %v7770_v56 }
 0x368   : > { %v5217_v63 = vpop.f32.mrf.mxu1  ;;  %v5281_v55 = vpop.f32.mrf.mxu0  ;;  %v3619_v59 = vadd.f32 %v5109_v7, %v7776_v32  ;;  %v5115_v32 = vadd.f32 %v7870_v34, %v7866_v49  ;;  %v5118_v49 = vadd.f32 %v7878_v16, %v7874_v62 }
 0x369   : > { %v3700_v17 = vadd.f32 %v5161_v42, %v3603_v9 }
 0x36a   : > { %v5218_v21 = vpop.f32.mrf.mxu1  ;;  %v5282_v60 = vpop.f32.mrf.mxu0  ;;  %v3630_v16 = vadd.f32 %v5118_v49, %v7785_v52  ;;  %v8433_v52 = vld [vmem:[#allocation10_spill] sm:$0xff] }
 0x36b   : > { %v5219_v5 = vadd.f32 %v5218_v21, %v5217_v63  ;;  %v5283_v29 = vadd.f32 %v5282_v60, %v5281_v55 }
 0x36c   : > { %v5220_v30 = vpop.f32.mrf.mxu1  ;;  %v5284_v19 = vpop.f32.mrf.mxu0 }
 0x36d   : > { %v3789_v6 = vadd.f32 %v5219_v5, %v3692_v35 }
 0x36e   : > { %v5221_v27 = vpop.f32.mrf.mxu1  ;;  %v5285_v22 = vpop.f32.mrf.mxu0 }
 0x36f   : > { %v5222_v54 = vadd.f32 %v5221_v27, %v5220_v30  ;;  %v7942_v46 = vadd.f32 %v5283_v29, %v3789_v6  ;;  %v5286_v11 = vadd.f32 %v5285_v22, %v5284_v19 }
 0x370   : > { %v5223_v14 = vpop.f32.mrf.mxu1  ;;  %v5287_v39 = vpop.f32.mrf.mxu0 }
 0x371   : > { %v3792_v8 = vadd.f32 %v5222_v54, %v3695_v48  ;;  %v3948_v55 = vsel %vm828_vm1, %v7942_v46, -inf  ;;  %v5164_v48 = vadd.f32 %v7832_v28, %v7828_v61  ;;  %v5167_v61 = vadd.f32 %v7840_v24, %v7836_v57 }
 0x372   : > { %v5224_v50 = vpop.f32.mrf.mxu1  ;;  %v5288_v37 = vpop.f32.mrf.mxu0  ;;  %3949 = vmax.xlane.f32.xlu0 %v3948_v55  ;;  %v3614_v54 = vadd.f32 %v5106_v45, %v7773_v15  ;;  %v5112_v55 = vadd.f32 %v7862_v0, %v7858_v58 }
 0x373   : > { %v5225_v27 = vadd.f32 %v5224_v50, %v5223_v14  ;;  %v7951_v30 = vadd.f32 %v5286_v11, %v3792_v8  ;;  %v5289_v44 = vadd.f32 %v5288_v37, %v5287_v39  ;;  %v3703_v21 = vadd.f32 %v5164_v48, %v3606_v13 }
 0x374   : > { %v5226_v63 = vpop.f32.mrf.mxu1  ;;  %v5290_v36 = vpop.f32.mrf.mxu0  ;;  %v3708_v29 = vadd.f32 %v5167_v61, %v3611_v4  ;;  %v5170_v39 = vadd.f32 %v7848_v1, %v7844_v43  ;;  %v5173_v43 = vadd.f32 %v7856_v38, %v7852_v53  ;;  %v3622_v58 = vadd.f32 %v5112_v55, %v7779_v25  ;;  %v8434_v55 = vld [vmem:[#allocation15_spill] sm:$0xff] }
 0x375   : > { %v3797_v51 = vadd.f32 %v5225_v27, %v3700_v17  ;;  %v3951_v22 = vsel %vm828_vm1, %v7951_v30, -inf  ;;  %v5176_v53 = vadd.f32 %v7864_v2, %v7860_v23 }
 0x376   : > { %v5227_v33 = vpop.f32.mrf.mxu1  ;;  %v5291_v19 = vpop.f32.mrf.mxu0  ;;  %3952 = vmax.xlane.f32.xlu0 %v3951_v22  ;;  %v3711_v40 = vadd.f32 %v5170_v39, %v3614_v54  ;;  %v3716_v48 = vadd.f32 %v5173_v43, %v3619_v59  ;;  %v8435_v59 = vld [vmem:[#allocation8_spill] sm:$0xff] }
 0x377   : > { %v5228_v60 = vadd.f32 %v5227_v33, %v5226_v63  ;;  %v7960_v35 = vadd.f32 %v5289_v44, %v3797_v51  ;;  %v5292_v6 = vadd.f32 %v5291_v19, %v5290_v36  ;;  %v3719_v19 = vadd.f32 %v5176_v53, %v3622_v58  ;;  %v8439_v53 = vld [vmem:[#allocation21_spill] sm:$0xff] }
 0x378   : > { %v5229_v28 = vpop.f32.mrf.mxu1  ;;  %v5293_v5 = vpop.f32.mrf.mxu0 }
 0x379   : > { %v3800_v20 = vadd.f32 %v5228_v60, %v3703_v21  ;;  %v3954_v56 = vsel %vm828_vm1, %v7960_v35, -inf  ;;  %v3627_v60 = vadd.f32 %v5115_v32, %v7782_v47 }
 0x37a   : > { %v5230_v9 = vpop.f32.mrf.mxu1  ;;  %v5294_v31 = vpop.f32.mrf.mxu0  ;;  %3955 = vmax.xlane.f32.xlu1 %v3954_v56  ;;  %v5121_v56 = vadd.f32 %v7886_v12, %v7882_v10  ;;  %v8432_v10 = vld [vmem:[#allocation7_spill] sm:$0xff] }
 0x37b   : > { %v5231_v26 = vadd.f32 %v5230_v9, %v5229_v28  ;;  %v7969_v14 = vadd.f32 %v5292_v6, %v3800_v20  ;;  %v5295_v8 = vadd.f32 %v5294_v31, %v5293_v5  ;;  %v5179_v28 = vadd.f32 %v7872_v41, %v7868_v3  ;;  %v8430_v3 = vld [vmem:[#allocation16_spill] sm:$0xff]  ;;  %v8431_v41 = vld [vmem:[#allocation17_spill] sm:$0xff] }
 0x37c   : > { %v5232_v57 = vpop.f32.mrf.mxu1  ;;  %v5296_v24 = vpop.f32.mrf.mxu0  ;;  %v3635_v12 = vadd.f32 %v5121_v56, %v8432_v10  ;;  %v8444_v56 = vld [vmem:[#allocation6_spill] sm:$0xff] }
 0x37d   : > { %v3805_v42 = vadd.f32 %v5231_v26, %v3708_v29  ;;  %v3957_v11 = vsel %vm828_vm1, %v7969_v14, -inf  ;;  %v3724_v62 = vadd.f32 %v5179_v28, %v3627_v60  ;;  %v5182_v26 = vadd.f32 %v8431_v41, %v8430_v3  ;;  %v8446_v3 = vld [vmem:[#allocation22_spill] sm:$0xff] }
 0x37e   : > { %v5233_v15 = vpop.f32.mrf.mxu1  ;;  %v5297_v18 = vpop.f32.mrf.mxu0  ;;  %3958 = vmax.xlane.f32.xlu1 %v3957_v11 }
 0x37f   : > { %v5234_v50 = vadd.f32 %v5233_v15, %v5232_v57  ;;  %v7978_v37 = vadd.f32 %v5295_v8, %v3805_v42  ;;  %v5298_v27 = vadd.f32 %v5297_v18, %v5296_v24  ;;  %v3727_v11 = vadd.f32 %v5182_v26, %v3630_v16  ;;  %v5611_v16 = vld [vmem:[%s8269_s7] sm:$0xff]  }
 0x380   : > { %v5235_v17 = vpop.f32.mrf.mxu1  ;;  %v5299_v13 = vpop.f32.mrf.mxu0  ;;  %v5124_v15 = vadd.f32 %v8434_v55, %v8433_v52  ;;  %5379 = vmatprep.subr.bf16.mxu1 %v5611_v16  ;;  %v8449_v52 = vld [vmem:[#allocation29_spill] sm:$0xff] }
 0x381   : > { %v3808_v1 = vadd.f32 %v5234_v50, %v3711_v40  ;;  %v3960_v63 = vsel %vm828_vm1, %v7978_v37, -inf  ;;  %v8436_v50 = vld [vmem:[#allocation9_spill] sm:$0xff]  ;;  %5380 = vmatpush3.bf16.msra.mxu1 %v5611_v16 }
 0x382   : > { %v5236_v0 = vpop.f32.mrf.mxu1  ;;  %v5300_v36 = vpop.f32.mrf.mxu0  ;;  %3961 = vmax.xlane.f32.xlu0 %v3960_v63 }
 0x383   : > { %v5237_v51 = vadd.f32 %v5236_v0, %v5235_v17  ;;  %v7987_v44 = vadd.f32 %v5298_v27, %v3808_v1  ;;  %v5301_v33 = vadd.f32 %v5300_v36, %v5299_v13  ;;  %v5185_v17 = vadd.f32 %v8436_v50, %v8435_v59  ;;  %v8450_v59 = vld [vmem:[#allocation24_spill] sm:$0xff]  ;;  %v8451_v50 = vld [vmem:[#allocation26_spill] sm:$0xff] }
 0x384   : > { %v5238_v38 = vpop.f32.mrf.mxu1  ;;  %v5302_v22 = vpop.f32.mrf.mxu0 }
 0x385   : > { %v3813_v4 = vadd.f32 %v5237_v51, %v3716_v48  ;;  %v3963_v25 = vsel %vm828_vm1, %v7987_v44, -inf  ;;  %v3732_v58 = vadd.f32 %v5185_v17, %v3635_v12  ;;  %v8437_v48 = vld [vmem:[#allocation14_spill] sm:$0xff]  ;;  %v8438_v51 = vld [vmem:[#allocation19_spill] sm:$0xff]  ;;  %v5194_v17 = vadd.f32 %v8451_v50, %v8450_v59 }
 0x386   : > { %v5239_v21 = vpop.f32.mrf.mxu1  ;;  %v5303_v45 = vpop.f32.mrf.mxu0  ;;  %3964 = vmax.xlane.f32.xlu1 %v3963_v25  ;;  %v3638_v32 = vadd.f32 %v5124_v15, %v8437_v48  ;;  %v8452_v48 = vld [vmem:[#allocation13_spill] sm:$0xff] }
 0x387   : > { %v5240_v34 = vadd.f32 %v5239_v21, %v5238_v38  ;;  %v7996_v61 = vadd.f32 %v5301_v33, %v3813_v4  ;;  %v5304_v20 = vadd.f32 %v5303_v45, %v5302_v22  ;;  %v5127_v38 = vadd.f32 %v8439_v53, %v8438_v51  ;;  %v8441_v21 = vld [vmem:[#allocation5_spill] sm:$0xff]  ;;  %v8453_v51 = vld [vmem:[#allocation31_spill] sm:$0xff] }
 0x388   : > { %v5241_v23 = vpop.f32.mrf.mxu1  ;;  %v5305_v2 = vpop.f32.mrf.mxu0  ;;  %v8454_v53 = vld [vmem:[#allocation33_spill] sm:$0xff] }
 0x389   : > { %v3816_v5 = vadd.f32 %v5240_v34, %v3719_v19  ;;  %v3966_v6 = vsel %vm828_vm1, %v7996_v61, -inf  ;;  %v8440_v19 = vld [vmem:[#allocation11_spill] sm:$0xff] }
 0x38a   : > { %v5242_v47 = vpop.f32.mrf.mxu1  ;;  %v5306_v29 = vpop.f32.mrf.mxu0  ;;  %3967 = vmax.xlane.f32.xlu0 %v3966_v6  ;;  %v5188_v45 = vadd.f32 %v8441_v21, %v8440_v19  ;;  %v8455_v21 = vld [vmem:[#allocation28_spill] sm:$0xff] }
 0x38b   : > { %v5243_v9 = vadd.f32 %v5242_v47, %v5241_v23  ;;  %v8005_v31 = vadd.f32 %v5304_v20, %v3816_v5  ;;  %v5307_v24 = vadd.f32 %v5306_v29, %v5305_v2  ;;  %v8442_v23 = vld [vmem:[#allocation23_spill] sm:$0xff]  ;;  %v8443_v2 = vld [vmem:[#allocation25_spill] sm:$0xff]  ;;  %v3643_v47 = vadd.f32 %v5127_v38, %v8444_v56 }
 0x38c   : > { %v5244_v54 = vpop.f32.mrf.mxu1  ;;  %v5308_v7 = vpop.f32.mrf.mxu0  ;;  %v5130_v28 = vadd.f32 %v8443_v2, %v8442_v23  ;;  %v3735_v6 = vadd.f32 %v5188_v45, %v3638_v32  ;;  %v5136_v38 = vadd.f32 %v8454_v53, %v8453_v51  ;;  %v8456_v45 = vld [vmem:[#allocation30_spill] sm:$0xff] }
 0x38d   : > { %v3821_v57 = vadd.f32 %v5243_v9, %v3724_v62  ;;  %v3969_v39 = vsel %vm828_vm1, %v8005_v31, -inf }
 0x38e   : > { %v5245_v42 = vpop.f32.mrf.mxu1  ;;  %v5309_v8 = vpop.f32.mrf.mxu0  ;;  %3970 = vmax.xlane.f32.xlu1 %v3969_v39  ;;  %v8447_v39 = vld [vmem:[#allocation12_spill] sm:$0xff] }
 0x38f   : > { %v5246_v18 = vadd.f32 %v5245_v42, %v5244_v54  ;;  %v8014_v40 = vadd.f32 %v5307_v24, %v3821_v57  ;;  %v5310_v27 = vadd.f32 %v5309_v8, %v5308_v7  ;;  %v8445_v7 = vld [vmem:[#allocation20_spill] sm:$0xff]  ;;  %v3646_v10 = vadd.f32 %v5130_v28, %v8447_v39 }
 0x390   : > { %v5247_v13 = vpop.f32.mrf.mxu1  ;;  %v5311_v43 = vpop.f32.mrf.mxu0  ;;  %v5191_v41 = vadd.f32 %v8446_v3, %v8445_v7 }
 0x391   : > { %v3824_v1 = vadd.f32 %v5246_v18, %v3727_v11  ;;  %v3972_v63 = vsel %vm828_vm1, %v8014_v40, -inf  ;;  %v8448_v11 = vld [vmem:[#allocation27_spill] sm:$0xff] }
 0x392   : > { %v5248_v0 = vpop.f32.mrf.mxu1  ;;  %v5312_v36 = vpop.f32.mrf.mxu0  ;;  %3973 = vmax.xlane.f32.xlu0 %v3972_v63  ;;  %v3740_v8 = vadd.f32 %v5191_v41, %v3643_v47  ;;  %v5133_v55 = vadd.f32 %v8449_v52, %v8448_v11 }
 0x393   : > { %v5249_v22 = vadd.f32 %v5248_v0, %v5247_v13  ;;  %v8023_v4 = vadd.f32 %v5310_v27, %v3824_v1  ;;  %v5313_v49 = vadd.f32 %v5312_v36, %v5311_v43 }
 0x394   : > { %v5250_v33 = vpop.f32.mrf.mxu1  ;;  %v5314_v25 = vpop.f32.mrf.mxu0  ;;  %v3651_v32 = vadd.f32 %v5133_v55, %v8452_v48 }
 0x395   : > { %v3829_v60 = vadd.f32 %v5249_v22, %v3732_v58  ;;  %v3975_v34 = vsel %vm828_vm1, %v8023_v4, -inf  ;;  %v3743_v58 = vadd.f32 %v5194_v17, %v3646_v10 }
 0x396   : > { %v5251_v5 = vpop.f32.mrf.mxu1  ;;  %v5315_v20 = vpop.f32.mrf.mxu0  ;;  %3976 = vmax.xlane.f32.xlu1 %v3975_v34 }
 0x397   : > { %v5252_v29 = vadd.f32 %v5251_v5, %v5250_v33  ;;  %v8032_v62 = vadd.f32 %v5313_v49, %v3829_v60  ;;  %v5316_v57 = vadd.f32 %v5315_v20, %v5314_v25  ;;  %v5197_v60 = vadd.f32 %v8456_v45, %v8455_v21  ;;  %v8457_v20 = vld [vmem:[#allocation18_spill] sm:$0xff] }
 0x398   : > { %v5253_v9 = vpop.f32.mrf.mxu1  ;;  %v5317_v54 = vpop.f32.mrf.mxu0 }
 0x399   : > { %v3832_v26 = vadd.f32 %v5252_v29, %v3735_v6  ;;  %v3978_v24 = vsel %vm828_vm1, %v8032_v62, -inf  ;;  %v3748_v5 = vadd.f32 %v5197_v60, %v3651_v32  ;;  %v3654_v6 = vadd.f32 %v5136_v38, %v8457_v20 }
 0x39a   : > { %v5254_v12 = vpop.f32.mrf.mxu1  ;;  %v5318_v42 = vpop.f32.mrf.mxu0  ;;  %3979 = vmax.xlane.f32.xlu0 %v3978_v24 }
 0x39b   : > { %v5255_v15 = vadd.f32 %v5254_v12, %v5253_v9  ;;  %v8044_v18 = vadd.f32 %v5316_v57, %v3832_v26  ;;  %v5319_v27 = vadd.f32 %v5318_v42, %v5317_v54  ;;  %v8458_v9 = vld [vmem:[#allocation32_spill] sm:$0xff]  ;;  %v8459_v54 = vld [vmem:[#allocation34_spill] sm:$0xff] }
 0x39c   : > { %v5256_v13 = vpop.f32.mrf.mxu1  ;;  %v5320_v43 = vpop.f32.mrf.mxu0  ;;  %v5200_v7 = vadd.f32 %v8459_v54, %v8458_v9 }
 0x39d   : > { %v3837_v1 = vadd.f32 %v5255_v15, %v3740_v8  ;;  %v3981_v63 = vsel %vm828_vm1, %v8044_v18, -inf  ;;  %v4240_v15 = vld [vmem:[%s8270_s8 + $0x18] sm:$0xff] }
 0x39e   : > { %v5257_v0 = vpop.f32.mrf.mxu1  ;;  %v5321_v36 = vpop.f32.mrf.mxu0  ;;  %3982 = vmax.xlane.f32.xlu1 %v3981_v63  ;;  %v3751_v39 = vadd.f32 %v5200_v7, %v3654_v6  ;;  %5397 = vmatprep.subr.mxu0 %v4240_v15 }
 0x39f   : > { %v5258_v22 = vadd.f32 %v5257_v0, %v5256_v13  ;;  %v8053_v33 = vadd.f32 %v5319_v27, %v3837_v1  ;;  %v5322_v34 = vadd.f32 %v5321_v36, %v5320_v43  ;;  %5398 = vmatpush3.msra.mxu0 %v4240_v15 }
 0x3a0   : > { %v5259_v25 = vpop.f32.mrf.mxu1  ;;  %v5323_v19 = vpop.f32.mrf.mxu0 }
 0x3a1   : > { %v3840_v49 = vadd.f32 %v5258_v22, %v3743_v58  ;;  %v3984_v23 = vsel %vm828_vm1, %v8053_v33, -inf }
 0x3a2   : > { %v5260_v2 = vpop.f32.mrf.mxu1  ;;  %v5324_v28 = vpop.f32.mrf.mxu0  ;;  %3985 = vmax.xlane.f32.xlu0 %v3984_v23 }
 0x3a3   : > { %v5261_v56 = vadd.f32 %v5260_v2, %v5259_v25  ;;  %v8060_v47 = vadd.f32 %v5322_v34, %v3840_v49  ;;  %v5325_v41 = vadd.f32 %v5324_v28, %v5323_v19 }
 0x3a4   : > { %v5262_v29 = vpop.f32.mrf.mxu1  ;;  %v5326_v16 = vpop.f32.mrf.mxu0 }
 0x3a5   : > { %v3845_v3 = vadd.f32 %v5261_v56, %v3748_v5  ;;  %v3987_v26 = vsel %vm828_vm1, %v8060_v47, -inf }
 0x3a6   : > { %v5263_v57 = vpop.f32.mrf.mxu1  ;;  %v5327_v24 = vpop.f32.mrf.mxu0  ;;  %3988 = vmax.xlane.f32.xlu1 %v3987_v26 }
 0x3a7   : > { %v5264_v10 = vadd.f32 %v5263_v57, %v5262_v29  ;;  %v8066_v12 = vadd.f32 %v5325_v41, %v3845_v3  ;;  %v5328_v8 = vadd.f32 %v5327_v24, %v5326_v16 }
 0x3a9   : > { %v3848_v42 = vadd.f32 %v5264_v10, %v3751_v39  ;;  %v3990_v11 = vsel %vm828_vm1, %v8066_v12, -inf }
 0x3aa   : > { %3991 = vmax.xlane.f32.xlu0 %v3990_v11 }
 0x3ab   : > { %v8070_v52 = vadd.f32 %v5328_v8, %v3848_v42 }
 0x3ad   : > { %v3993_v55 = vsel %vm828_vm1, %v8070_v52, -inf }
 0x3ae   : > { %3994 = vmax.xlane.f32.xlu1 %v3993_v55 }
 0x3fb   : > { %v3950_v59 = vpop.xlane.xlu0 %3949 }
 0x3fc   : > { %v3996_v50 = vsub.f32 %v7942_v46, %v3950_v59 }
 0x3fe   : > { %v4012_v17 = vmul.f32 1.442695, %v3996_v50 }
 0x3ff   : > { %v3953_v13 = vpop.xlane.xlu0 %3952 }
 0x400   : > { %v3997_v43 = vsub.f32 %v7951_v30, %v3953_v13  ;;  %5612 = vpow2.f32 %v4012_v17 }
 0x402   : > { %v4014_v1 = vmul.f32 1.442695, %v3997_v43 }
 0x403   : > { %v3956_v27 = vpop.xlane.xlu1 %3955 }
 0x404   : > { %5614 = vpow2.f32 %v4014_v1  ;;  %v3998_v63 = vsub.f32 %v7960_v35, %v3956_v27 }
 0x406   : > { %v4016_v58 = vmul.f32 1.442695, %v3998_v63 }
 0x407   : > { %v3959_v0 = vpop.xlane.xlu1 %3958 }
 0x408   : > { %v3999_v36 = vsub.f32 %v7969_v14, %v3959_v0  ;;  %5616 = vpow2.f32 %v4016_v58  ;;  %v4239_v58 = vld [vmem:[%s8270_s8 + $0x10] sm:$0xff]  ;;  %v4238_v0 = vld [vmem:[%s8270_s8 + $0x8] sm:$0xff] }
 0x409   : > { %5399 = vmatprep.subr.mxu0 %v4239_v58 }
 0x40a   : > { %v4018_v48 = vmul.f32 1.442695, %v3999_v36  ;;  %5400 = vmatpush3.msra.mxu0 %v4239_v58  ;;  %v4237_v36 = vld [vmem:[%s8270_s8] sm:$0xff] }
 0x40b   : > { %v3962_v32 = vpop.xlane.xlu0 %3961  ;;  %5401 = vmatprep.subr.mxu0 %v4238_v0 }
 0x40c   : > { %5618 = vpow2.f32 %v4018_v48  ;;  %v4000_v46 = vsub.f32 %v7978_v37, %v3962_v32  ;;  %5402 = vmatpush3.msra.mxu0 %v4238_v0 }
 0x40d   : > { %v8082_v38 = vpop.eup %5612  ;;  %5403 = vmatprep.subr.mxu0 %v4237_v36 }
 0x40e   : > { %v4020_v51 = vmul.f32 1.442695, %v4000_v46  ;;  %5404 = vmatpush3.msra.mxu0 %v4237_v36 }
 0x40f   : > { %v3965_v53 = vpop.xlane.xlu1 %3964 }
 0x410   : > { %v4001_v30 = vsub.f32 %v7987_v44, %v3965_v53  ;;  %5620 = vpow2.f32 %v4020_v51 }
 0x411   : > { %v8085_v22 = vpop.eup %5614 }
 0x412   : > { %v4022_v25 = vmul.f32 1.442695, %v4001_v30  ;;  %v4044_v35 = vpack.c.bf16 %v8085_v22, %v8082_v38 }
 0x413   : > { %v3968_v14 = vpop.xlane.xlu0 %3967 }
 0x414   : > { %5622 = vpow2.f32 %v4022_v25  ;;  %v4002_v19 = vsub.f32 %v7996_v61, %v3968_v14  ;;  %5381 = vmatprep.mubr.msk.bf16.mxu1 %vm828_vm1, %v4044_v35 }
 0x415   : > { %v8091_v45 = vpop.eup %5616 }
 0x416   : > { %v4024_v37 = vmul.f32 1.442695, %v4002_v19 }
 0x417   : > { %v3971_v21 = vpop.xlane.xlu1 %3970 }
 0x418   : > { %v4003_v60 = vsub.f32 %v8005_v31, %v3971_v21  ;;  %5624 = vpow2.f32 %v4024_v37 }
 0x419   : > { %v8094_v44 = vpop.eup %5618 }
 0x41a   : > { %v4045_v49 = vpack.c.bf16 %v8094_v44, %v8091_v45  ;;  %v4026_v34 = vmul.f32 1.442695, %v4003_v60 }
 0x41b   : > { %v3974_v23 = vpop.xlane.xlu0 %3973 }
 0x41c   : > { %5626 = vpow2.f32 %v4026_v34  ;;  %v4004_v2 = vsub.f32 %v8014_v40, %v3974_v23  ;;  %5382 = vmatmul.mubr.msk.bf16.vlgmr.msra.gmra.mxu1 %vm828_vm1, %v4045_v49 }
 0x41d   : > { %v8100_v5 = vpop.eup %5620 }
 0x41e   : > { %v4028_v61 = vmul.f32 1.442695, %v4004_v2 }
 0x41f   : > { %v3977_v28 = vpop.xlane.xlu1 %3976 }
 0x420   : > { %v4005_v20 = vsub.f32 %v8023_v4, %v3977_v28  ;;  %5628 = vpow2.f32 %v4028_v61 }
 0x421   : > { %v8103_v31 = vpop.eup %5622 }
 0x422   : > { %v4030_v6 = vmul.f32 1.442695, %v4005_v20  ;;  %v4046_v56 = vpack.c.bf16 %v8103_v31, %v8100_v5 }
 0x423   : > { %v3980_v29 = vpop.xlane.xlu0 %3979 }
 0x424   : > { %5630 = vpow2.f32 %v4030_v6  ;;  %v4006_v16 = vsub.f32 %v8032_v62, %v3980_v29  ;;  %5385 = vmatprep.mubr.msk.bf16.mxu1 %vm828_vm1, %v4046_v56 }
 0x425   : > { %v8109_v54 = vpop.eup %5624 }
 0x426   : > { %v4032_v40 = vmul.f32 1.442695, %v4006_v16 }
 0x427   : > { %v3983_v9 = vpop.xlane.xlu1 %3982 }
 0x428   : > { %v4007_v7 = vsub.f32 %v8044_v18, %v3983_v9  ;;  %5632 = vpow2.f32 %v4032_v40 }
 0x429   : > { %v8112_v4 = vpop.eup %5626 }
 0x42a   : > { %v4034_v3 = vmul.f32 1.442695, %v4007_v7  ;;  %v4047_v41 = vpack.c.bf16 %v8112_v4, %v8109_v54 }
 0x42b   : > { %v3986_v26 = vpop.xlane.xlu0 %3985 }
 0x42c   : > { %5634 = vpow2.f32 %v4034_v3  ;;  %v4008_v57 = vsub.f32 %v8053_v33, %v3986_v26  ;;  %5386 = vmatmul.mubr.msk.bf16.gmra.mxu1 %vm828_vm1, %v4047_v41 }
 0x42d   : > { %v8118_v39 = vpop.eup %5628 }
 0x42e   : > { %v4036_v62 = vmul.f32 1.442695, %v4008_v57 }
 0x42f   : > { %v3989_v24 = vpop.xlane.xlu1 %3988 }
 0x430   : > { %v4009_v10 = vsub.f32 %v8060_v47, %v3989_v24  ;;  %5636 = vpow2.f32 %v4036_v62 }
 0x431   : > { %v8121_v18 = vpop.eup %5630 }
 0x432   : > { %v4038_v42 = vmul.f32 1.442695, %v4009_v10  ;;  %v4048_v8 = vpack.c.bf16 %v8121_v18, %v8118_v39 }
 0x433   : > { %v3992_v11 = vpop.xlane.xlu0 %3991 }
 0x434   : > { %5638 = vpow2.f32 %v4038_v42  ;;  %v4010_v55 = vsub.f32 %v8066_v12, %v3992_v11  ;;  %5389 = vmatprep.mubr.msk.bf16.mxu1 %vm828_vm1, %v4048_v8 }
 0x435   : > { %v8127_v59 = vpop.eup %5632 }
 0x436   : > { %v4040_v33 = vmul.f32 1.442695, %v4010_v55 }
 0x437   : > { %v3995_v15 = vpop.xlane.xlu1 %3994 }
 0x438   : > { %v4011_v50 = vsub.f32 %v8070_v52, %v3995_v15  ;;  %5640 = vpow2.f32 %v4040_v33 }
 0x439   : > { %v8130_v47 = vpop.eup %5634 }
 0x43a   : > { %v4042_v17 = vmul.f32 1.442695, %v4011_v50  ;;  %v4049_v13 = vpack.c.bf16 %v8130_v47, %v8127_v59 }
 0x43c   : > { %5642 = vpow2.f32 %v4042_v17  ;;  %5390 = vmatmul.mubr.msk.bf16.gmra.mxu1 %vm828_vm1, %v4049_v13 }
 0x43d   : > { %v8135_v43 = vpop.eup %5636 }
 0x441   : > { %v8137_v12 = vpop.eup %5638 }
 0x442   : > { %v4050_v1 = vpack.c.bf16 %v8137_v12, %v8135_v43 }
 0x444   : > { %5393 = vmatprep.mubr.msk.bf16.mxu1 %vm828_vm1, %v4050_v1 }
 0x445   : > { %v8142_v52 = vpop.eup %5640 }
 0x449   : > { %v8144_v27 = vpop.eup %5642 }
 0x44a   : > { %v4051_v63 = vpack.c.bf16 %v8144_v27, %v8142_v52 }
 0x44c   : > { %5394 = vmatmul.mubr.msk.bf16.gmra.mxu1 %vm828_vm1, %v4051_v63 }
 0x4dc   : > { %v5383_v48 = vpop.f32.mrf.mxu1 }
 0x4de   : > { %v4126_v32 = vpop.f32.mrf.mxu1 }
 0x4df   : > { %5644 = vrcp.f32 %v4126_v32 }
 0x4e0   : > { %5646 = vrcp.f32 %v5383_v48  ;;  %v5384_v46 = vpop.f32.mrf.mxu1 }
 0x4e1   : > { %5648 = vrcp.f32 %v5384_v46 }
 0x4e2   : > { %v4129_v51 = vpop.f32.mrf.mxu1 }
 0x4e3   : > { %5650 = vrcp.f32 %v4129_v51 }
 0x4ec   : > { %v5645_v53 = vpop.eup %5644  ;;  %v5387_v30 = vpop.f32.mrf.mxu1 }
 0x4ed   : > { %v5647_v25 = vpop.eup %5646  ;;  %v4205_v35 = vmul.f32 %v5645_v53, %v8082_v38 }
 0x4ee   : > { %v4142_v14 = vpop.f32.mrf.mxu1  ;;  %v5649_v19 = vpop.eup %5648  ;;  %v4207_v49 = vmul.f32 %v5647_v25, %v8091_v45 }
 0x4ef   : > { %5652 = vrcp.f32 %v4142_v14  ;;  %v4221_v37 = vmax.f32 %v4205_v35, 0.001  ;;  %v4208_v61 = vmul.f32 %v5649_v19, %v8094_v44 }
 0x4f0   : > { %v5651_v21 = vpop.eup %5650  ;;  %5654 = vrcp.f32 %v5387_v30  ;;  %v5388_v60 = vpop.f32.mrf.mxu1  ;;  %v4223_v38 = vmax.f32 %v4207_v49, 0.001 }
 0x4f1   : > { %v4206_v34 = vmul.f32 %v5651_v21, %v8085_v22  ;;  %5405 = vmatprep.mubr.msk.f32.mxu0 %vm828_vm1, %v4221_v37  ;;  %5656 = vrcp.f32 %v5388_v60  ;;  %v4224_v28 = vmax.f32 %v4208_v61, 0.001 }
 0x4f2   : > { %v4145_v23 = vpop.f32.mrf.mxu1 }
 0x4f3   : > { %v4222_v2 = vmax.f32 %v4206_v34, 0.001  ;;  %5658 = vrcp.f32 %v4145_v23 }
 0x4f5   : > { %5406 = vmatmul.mubr.msk.f32.vlgmr.msra.gmra.mxu0 %vm828_vm1, %v4222_v2 }
 0x4f6   : > { %5408 = vmatprep.mubr.msk.f32.mxu0 %vm828_vm1, %v4223_v38 }
 0x4f9   : > { %5409 = vmatmul.mubr.msk.f32.gmra.mxu0 %vm828_vm1, %v4224_v28 }
 0x4fc   : > { %v5653_v20 = vpop.eup %5652  ;;  %v5391_v45 = vpop.f32.mrf.mxu1 }
 0x4fd   : > { %v5655_v6 = vpop.eup %5654  ;;  %v4209_v22 = vmul.f32 %v5653_v20, %v8100_v5 }
 0x4fe   : > { %v4158_v56 = vpop.f32.mrf.mxu1  ;;  %v5657_v29 = vpop.eup %5656  ;;  %v4211_v9 = vmul.f32 %v5655_v6, %v8109_v54 }
 0x4ff   : > { %5660 = vrcp.f32 %v4158_v56  ;;  %v4225_v16 = vmax.f32 %v4209_v22, 0.001  ;;  %v4212_v26 = vmul.f32 %v5657_v29, %v8112_v4 }
 0x500   : > { %v5659_v40 = vpop.eup %5658  ;;  %5662 = vrcp.f32 %v5391_v45  ;;  %v5392_v44 = vpop.f32.mrf.mxu1  ;;  %v4227_v5 = vmax.f32 %v4211_v9, 0.001 }
 0x501   : > { %5411 = vmatprep.mubr.msk.f32.mxu0 %vm828_vm1, %v4225_v16  ;;  %v4210_v7 = vmul.f32 %v5659_v40, %v8103_v31  ;;  %5664 = vrcp.f32 %v5392_v44  ;;  %v4228_v57 = vmax.f32 %v4212_v26, 0.001 }
 0x502   : > { %v4161_v3 = vpop.f32.mrf.mxu1 }
 0x503   : > { %5666 = vrcp.f32 %v4161_v3  ;;  %v4226_v41 = vmax.f32 %v4210_v7, 0.001 }
 0x505   : > { %5412 = vmatmul.mubr.msk.f32.gmra.mxu0 %vm828_vm1, %v4226_v41 }
 0x506   : > { %5414 = vmatprep.mubr.msk.f32.mxu0 %vm828_vm1, %v4227_v5 }
 0x509   : > { %5415 = vmatmul.mubr.msk.f32.gmra.mxu0 %vm828_vm1, %v4228_v57 }
 0x50c   : > { %v5661_v62 = vpop.eup %5660  ;;  %v5395_v54 = vpop.f32.mrf.mxu1 }
 0x50d   : > { %v5663_v24 = vpop.eup %5662  ;;  %v4213_v10 = vmul.f32 %v5661_v62, %v8118_v39 }
 0x50e   : > { %v4174_v31 = vpop.f32.mrf.mxu1  ;;  %v5665_v42 = vpop.eup %5664  ;;  %v4215_v55 = vmul.f32 %v5663_v24, %v8127_v59 }
 0x50f   : > { %5668 = vrcp.f32 %v4174_v31  ;;  %v4229_v8 = vmax.f32 %v4213_v10, 0.001  ;;  %v4216_v17 = vmul.f32 %v5665_v42, %v8130_v47 }
 0x510   : > { %v5667_v11 = vpop.eup %5666  ;;  %5670 = vrcp.f32 %v5395_v54  ;;  %v5396_v4 = vpop.f32.mrf.mxu1  ;;  %v4231_v39 = vmax.f32 %v4215_v55, 0.001 }
 0x511   : > { %5417 = vmatprep.mubr.msk.f32.mxu0 %vm828_vm1, %v4229_v8  ;;  %v4214_v33 = vmul.f32 %v5667_v11, %v8121_v18  ;;  %5672 = vrcp.f32 %v5396_v4  ;;  %v4232_v13 = vmax.f32 %v4216_v17, 0.001 }
 0x512   : > { %v4177_v15 = vpop.f32.mrf.mxu1 }
 0x513   : > { %5674 = vrcp.f32 %v4177_v15  ;;  %v4230_v50 = vmax.f32 %v4214_v33, 0.001 }
 0x515   : > { %5418 = vmatmul.mubr.msk.f32.gmra.mxu0 %vm828_vm1, %v4230_v50 }
 0x516   : > { %5420 = vmatprep.mubr.msk.f32.mxu0 %vm828_vm1, %v4231_v39 }
 0x519   : > { %5421 = vmatmul.mubr.msk.f32.gmra.mxu0 %vm828_vm1, %v4232_v13 }
 0x51c   : > { %v5669_v1 = vpop.eup %5668 }
 0x51d   : > { %v5671_v59 = vpop.eup %5670  ;;  %v4217_v18 = vmul.f32 %v5669_v1, %v8135_v43 }
 0x51e   : > { %v5673_v63 = vpop.eup %5672  ;;  %v4219_v36 = vmul.f32 %v5671_v59, %v8142_v52 }
 0x51f   : > { %v4233_v58 = vmax.f32 %v4217_v18, 0.001  ;;  %v4220_v32 = vmul.f32 %v5673_v63, %v8144_v27 }
 0x520   : > { %v5675_v0 = vpop.eup %5674  ;;  %v4235_v46 = vmax.f32 %v4219_v36, 0.001 }
 0x521   : > { %5423 = vmatprep.mubr.msk.f32.mxu0 %vm828_vm1, %v4233_v58  ;;  %v4218_v47 = vmul.f32 %v5675_v0, %v8137_v12  ;;  %v4236_v51 = vmax.f32 %v4220_v32, 0.001 }
 0x523   : > { %v4234_v48 = vmax.f32 %v4218_v47, 0.001 }
 0x525   : > { %5424 = vmatmul.mubr.msk.f32.gmra.mxu0 %vm828_vm1, %v4234_v48 }
 0x526   : > { %5426 = vmatprep.mubr.msk.f32.mxu0 %vm828_vm1, %v4235_v46 }
 0x529   : > { %5427 = vmatmul.mubr.msk.f32.gmra.mxu0 %vm828_vm1, %v4236_v51 }
 0x5b5   : > { %v5407_v43 = vpop.f32.mrf.mxu0 }
 0x5b6   : > { %4435 = vst [vmem:[%s8193_s22 + $0x8] sm:$0xff] %v5407_v43 }
 0x5b7   : > { %v4355_v12 = vpop.f32.mrf.mxu0 }
 0x5b8   : > { %4434 = vst [vmem:[%s8193_s22] sm:$0xff] %v4355_v12 }
 0x5b9   : > { %v5410_v52 = vpop.f32.mrf.mxu0 }
 0x5ba   : > { %4437 = vst [vmem:[%s8193_s22 + $0x18] sm:$0xff] %v5410_v52 }
 0x5bb   : > { %v4365_v27 = vpop.f32.mrf.mxu0 }
 0x5bc   : > { %4436 = vst [vmem:[%s8193_s22 + $0x10] sm:$0xff] %v4365_v27 }
 0x5c5   : > { %v5413_v53 = vpop.f32.mrf.mxu0 }
 0x5c6   : > { %4439 = vst [vmem:[%s8193_s22 + $0x28] sm:$0xff] %v5413_v53 }
 0x5c7   : > { %v4375_v30 = vpop.f32.mrf.mxu0 }
 0x5c8   : > { %4438 = vst [vmem:[%s8193_s22 + $0x20] sm:$0xff] %v4375_v30 }
 0x5c9   : > { %v5416_v25 = vpop.f32.mrf.mxu0 }
 0x5ca   : > { %4441 = vst [vmem:[%s8193_s22 + $0x38] sm:$0xff] %v5416_v25 }
 0x5cb   : > { %v4385_v35 = vpop.f32.mrf.mxu0 }
 0x5cc   : > { %4440 = vst [vmem:[%s8193_s22 + $0x30] sm:$0xff] %v4385_v35 }
 0x5d5   : > { %v5419_v14 = vpop.f32.mrf.mxu0 }
 0x5d6   : > { %4443 = vst [vmem:[%s8193_s22 + $0x48] sm:$0xff] %v5419_v14 }
 0x5d7   : > { %v4395_v19 = vpop.f32.mrf.mxu0 }
 0x5d8   : > { %4442 = vst [vmem:[%s8193_s22 + $0x40] sm:$0xff] %v4395_v19 }
 0x5d9   : > { %v5422_v37 = vpop.f32.mrf.mxu0 }
 0x5da   : > { %4445 = vst [vmem:[%s8193_s22 + $0x58] sm:$0xff] %v5422_v37 }
 0x5db   : > { %v4405_v21 = vpop.f32.mrf.mxu0 }
 0x5dc   : > { %4444 = vst [vmem:[%s8193_s22 + $0x50] sm:$0xff] %v4405_v21 }
 0x5e5   : > { %v5425_v60 = vpop.f32.mrf.mxu0 }
 0x5e6   : > { %4447 = vst [vmem:[%s8193_s22 + $0x68] sm:$0xff] %v5425_v60 }
 0x5e7   : > { %v4415_v49 = vpop.f32.mrf.mxu0 }
 0x5e8   : > { %4446 = vst [vmem:[%s8193_s22 + $0x60] sm:$0xff] %v4415_v49 }
 0x5e9   : > { %v5428_v34 = vpop.f32.mrf.mxu0 }
 0x5ea   : > { %4449 = vst [vmem:[%s8193_s22 + $0x78] sm:$0xff] %v5428_v34 }
 0x5eb   : > { %v4425_v23 = vpop.f32.mrf.mxu0 }
 0x5ec   : > { %4448 = vst [vmem:[%s8193_s22 + $0x70] sm:$0xff] %v4425_v23 }
 0x5ed   : > { %5689 = shalt.err (!%p5686_p3)
}
 0x5ee   : > { %s5690_s17 = scalar_lea.hbm %s8214_s27, 2048  ;;  %s5694_s24 = scalar_lea.hbm %s8271_s9, 4096 }
 0x5ef   : > { %p5691_p4 = scmp.ne.s32.totalorder %s8214_s27, %s5690_s17  ;;  %p5695_p9 = scmp.lt.s32.totalorder %s8214_s27, %s8271_s9 }
 0x5f0   : > { %p5696_p10 = scmp.lt.s32.totalorder %s5694_s24, %s5690_s17 }
 0x5f1   : > { %p5692_p7 = pnand %p5691_p4, %p5830_p5 }
 0x5f2   : > { %p5697_p11 = por %p5696_p10, %p5695_p9 }
 0x5f3   : > { %p5693_p8 = pneg %p5692_p7 }
 0x5f5   : > { %p5698_p12 = pnand %p5697_p11, %p5693_p8 }
 0x5f7   : > { %5701 = shalt.err (!%p5698_p12)
}
 0x5f8   : > { %s5740_s13 = smov 128   ;;  %s5741_s29 = smov 8  }
 0x5f9   : > { %5431 = dma.vmem_to_hbm [thread:$0]  (%p5830_p5), %s8216_s23, 2048, %s8214_s27, %s8222_s28, %s5740_s13, %s5740_s13, %s5741_s29  }
 0x5fa PF: > { %p5437_p13 = scmp.ge.s32.totalorder %s5736_s12, 2  ;;  %s4479_s14 = sand.u32 1, %s5724_s30  }
 0x5fb   : > { %s4480_s16 = scalar_lea.sflag [#allocation3], %s4479_s14 }
 0x5fc   : > { %p5434_p0 = pnand %p5437_p13, %p5834_p6 }
 0x5fe   : > { %p5435_p1 = pneg %p5434_p0 }
 0x600   : > { %5719 = dma.done.wait (%p5435_p1), %s4480_s16, 2048  }
 0x601   : > { %5721 = vsyncadd (%p5435_p1), %s4480_s16, 4294965248  ;;  %p19_p2 = scmp.ge.s32.totalorder %s5817_s15, 4   ;;  %s8460_s30 = smov %s5728_s10 }
 0x602   : > { %s8461_s10 = smov %s5732_s11  ;;  %s8462_s11 = smov %s5828_s18 }
 0x603   : > { %s8463_s12 = smov %s5817_s15  ;;  %21 = sbr.rel (!%p19_p2) target bundleno = 3 (0x3), region = 91 }
 0x608   :  { %4485 = vsyncpa [#allocation3], 1 }
 0x609   :  { %4487 = vsyncpa [#allocation3 + $0x1], 1 }

</bundles_post_ra>
